<compile_context>
chip_gen: v6e
topology: v6e:2x2x1
jax: 0.10.0
libtpu: 0.0.40
codegen_flags: <defaults>
</compile_context>

<pallas_src>
import functools

import numpy as np
import jax
import jax.numpy as jnp
from jax.experimental import pallas as pl
from jax.experimental.pallas import tpu as pltpu


def _cbam_kernel(x_ref, w1_ref, w2t_ref, wtap_ref, o_ref, *, TB, C, H, W, K,
                 hidden):
    """x_ref/o_ref: (TB, C, H*W) VMEM (lane-dense).
    w1_ref: (hidden, C), w2t_ref: (hidden, C) VMEM.
    wtap_ref: (2*K*K, HW) VMEM -- per-tap conv weights with the SAME-padding
    boundary mask already folded in (rows [0,K*K) = max half, rest = avg)."""
    HW = H * W
    P = K // 2
    KK = K * K
    f32 = jnp.float32

    x = x_ref[...]                                            # (TB, C, HW)

    # ---- channel attention: global max/avg pool over HW + shared MLP -------
    ch_mx = jnp.max(x, axis=2).astype(f32)                     # (TB, C)
    ch_av = jnp.sum(x, axis=2, dtype=f32) * (1.0 / HW)         # (TB, C)
    pooled = jnp.concatenate([ch_mx, ch_av], axis=0)           # (2*TB, C)

    if hidden <= 8:
        # Degenerate MXU shape (N/K dim = hidden) -> do the MLP on the VPU as
        # broadcast FMAs + lane reductions instead of paying MXU latency.
        mlp_out = jnp.zeros((2 * TB, C), f32)
        for j in range(hidden):
            w1_row = w1_ref[j:j + 1, :].astype(f32)            # (1, C)
            hj = jnp.maximum(
                jnp.sum(pooled * w1_row, axis=1, keepdims=True), 0.0)  # (2TB,1)
            mlp_out = mlp_out + hj * w2t_ref[j:j + 1, :].astype(f32)
    else:
        hid = jnp.maximum(
            jax.lax.dot_general(pooled, w1_ref[...].astype(f32),
                                (((1,), (1,)), ((), ())),
                                preferred_element_type=f32), 0.0)   # (2TB, hid)
        mlp_out = jnp.dot(hid, w2t_ref[...].astype(f32),
                          preferred_element_type=f32)               # (2TB, C)

    ch_att = jax.nn.sigmoid(mlp_out[:TB] + mlp_out[TB:])       # (TB, C)
    x_ca = x * ch_att[:, :, None].astype(x.dtype)              # (TB, C, HW)

    # ---- spatial attention: channel max/mean, lane-dense KxK conv ----------
    sp_mx = jnp.max(x_ca, axis=1).astype(f32)                  # (TB, HW)
    sp_av = jnp.sum(x_ca, axis=1, dtype=f32) * (1.0 / C)       # (TB, HW)

    acc_mx = jnp.zeros((TB, HW), f32)
    acc_av = jnp.zeros((TB, HW), f32)
    for kh in range(K):
        dh = kh - P
        for kw in range(K):
            dw = kw - P
            t = kh * K + kw
            delta = dh * W + dw            # flat lane offset of this tap
            shift = (-delta) % HW          # rolled[i] = map[i + delta]
            if shift == 0:
                r_mx, r_av = sp_mx, sp_av
            else:
                r_mx = pltpu.roll(sp_mx, shift=shift, axis=1)
                r_av = pltpu.roll(sp_av, shift=shift, axis=1)
            # Weight * boundary-mask is pre-folded into wtap -> one FMA each.
            acc_mx = acc_mx + r_mx * wtap_ref[t:t + 1, :]
            acc_av = acc_av + r_av * wtap_ref[KK + t:KK + t + 1, :]

    sp = jax.nn.sigmoid(acc_mx + acc_av)                       # (TB, HW)

    # One dense, unmasked store of the whole (TB, C, HW) tile.
    o_ref[...] = (x_ca * sp[:, None, :].astype(x_ca.dtype)).astype(o_ref.dtype)


def _pick_tb(B, C, HW, itemsize, vmem_budget, max_tb=256):
    """Largest divisor of B that fits the VMEM budget (double-buffered in/out
    blocks + in-kernel temporaries) and keeps grid length >= 2 when possible
    (so both v7x TensorCores get work)."""
    per_img = C * HW * itemsize
    feas = [d for d in range(1, B + 1)
            if B % d == 0 and d <= max_tb and 6 * d * per_img <= vmem_budget]
    if not feas:
        feas = [1]
    multi = [d for d in feas if B // d >= 2]
    return max(multi) if multi else max(feas)


def cbam_pallas(x, w1, w2, wconv):
    """x: (B, C, H, W). w1: (C//r, C), w2: (C, C//r), wconv: (1, 2, K, K)."""
    B, C, H, W = x.shape
    hidden = w1.shape[0]
    assert wconv.ndim == 4 and wconv.shape[:2] == (1, 2), "conv must be (1,2,K,K)"
    K = wconv.shape[-1]
    assert wconv.shape[2] == K and K % 2 == 1, "spatial kernel must be square & odd"
    assert w1.shape == (hidden, C) and w2.shape == (C, hidden)
    HW = H * W
    P = K // 2

    # Generation-aware VMEM budget (v5e/v6e: 128 MiB physical, v7x: 64 MiB).
    try:
        cap = int(pltpu.get_tpu_info().vmem_capacity_bytes)
    except Exception:
        cap = 64 << 20
    budget = max(16 << 20, min(cap // 3, 64 << 20))
    vmem_limit = int(min(cap, max(32 << 20, 2 * budget)))

    TB = _pick_tb(B, C, HW, jnp.dtype(x.dtype).itemsize, vmem_budget=budget)
    assert B % TB == 0

    # Per-tap conv weights with the SAME-padding boundary mask folded in,
    # lane-dense over HW.  Computed once here (tiny: 2*K*K*HW floats).
    off = np.arange(K) - P
    h_ok = ((np.arange(H)[None, :] + off[:, None] >= 0)
            & (np.arange(H)[None, :] + off[:, None] < H))          # (K, H)
    w_ok = ((np.arange(W)[None, :] + off[:, None] >= 0)
            & (np.arange(W)[None, :] + off[:, None] < W))          # (K, W)
    mask = (h_ok[:, None, :, None] & w_ok[None, :, None, :]).astype(np.float32)
    mask = jnp.asarray(mask.reshape(K * K, HW))                     # (K*K, HW)
    wtap = (wconv.reshape(2, K * K).astype(jnp.float32)[:, :, None]
            * mask[None, :, :]).reshape(2 * K * K, HW)              # (2*K*K, HW)

    w2t = jnp.transpose(w2)                  # (hidden, C)
    x_flat = x.reshape(B, C, HW)             # lane-dense layout for the kernel

    kernel = functools.partial(_cbam_kernel, TB=TB, C=C, H=H, W=W, K=K,
                               hidden=hidden)

    grid_spec = pltpu.PrefetchScalarGridSpec(
        num_scalar_prefetch=0,
        grid=(B // TB,),
        in_specs=[
            pl.BlockSpec((TB, C, HW), lambda b: (b, 0, 0)),
            pl.BlockSpec((hidden, C), lambda b: (0, 0)),
            pl.BlockSpec((hidden, C), lambda b: (0, 0)),
            pl.BlockSpec((2 * K * K, HW), lambda b: (0, 0)),
        ],
        out_specs=pl.BlockSpec((TB, C, HW), lambda b: (b, 0, 0)),
    )

    out_flat = pl.pallas_call(
        kernel,
        out_shape=jax.ShapeDtypeStruct((B, C, HW), x.dtype),
        grid_spec=grid_spec,
        compiler_params=pltpu.CompilerParams(
            dimension_semantics=("parallel",),
            vmem_limit_bytes=vmem_limit,
        ),
    )(x_flat, w1, w2t, wtap)

    return out_flat.reshape(B, C, H, W)


def cbam_reference(x, w1, w2, wconv):
    """Pure-JAX reference mirroring the PyTorch forward (for validation)."""
    mx = jnp.max(x, axis=(2, 3))
    av = jnp.mean(x, axis=(2, 3))

    def mlp(v):
        return jnp.maximum(v @ w1.T, 0.0) @ w2.T

    ch = jax.nn.sigmoid(mlp(mx) + mlp(av))                  # (B, C)
    x_ca = x * ch[:, :, None, None]
    max_c = jnp.max(x_ca, axis=1, keepdims=True)
    avg_c = jnp.mean(x_ca, axis=1, keepdims=True)
    cat = jnp.concatenate([max_c, avg_c], axis=1)           # (B, 2, H, W)
    sp = jax.lax.conv_general_dilated(
        cat, wconv, window_strides=(1, 1), padding="SAME",
        dimension_numbers=("NCHW", "OIHW", "NCHW"),
    )
    return x_ca * jax.nn.sigmoid(sp)


if __name__ == "__main__":
    B, C, H, W = 8, 32, 16, 16
    reduction, K = 16, 7
    hidden = C // reduction

    key = jax.random.PRNGKey(0)
    kx, k1, k2, k3 = jax.random.split(key, 4)
    x = jax.random.normal(kx, (B, C, H, W), dtype=jnp.float32)
    w1 = 0.2 * jax.random.normal(k1, (hidden, C), dtype=jnp.float32)
    w2 = 0.2 * jax.random.normal(k2, (C, hidden), dtype=jnp.float32)
    wconv = 0.1 * jax.random.normal(k3, (1, 2, K, K), dtype=jnp.float32)

    out = jax.block_until_ready(cbam_pallas(x, w1, w2, wconv))
    ref = jax.block_until_ready(cbam_reference(x, w1, w2, wconv))

    assert out.shape == (B, C, H, W)
    assert jnp.allclose(out, ref, atol=1e-5, rtol=1e-5), "mismatch vs reference"
    print("KERNEL_OK")
</pallas_src>

<mosaic_0001>
module attributes {stable_mosaic.version = 11 : i64} {
  func.func @_cbam_kernel(%arg0: i32, %arg1: memref<4x32x256xf32, #tpu.memory_space<vmem>>, %arg2: memref<2x32xf32, #tpu.memory_space<vmem>>, %arg3: memref<2x32xf32, #tpu.memory_space<vmem>>, %arg4: memref<98x256xf32, #tpu.memory_space<vmem>>, %arg5: memref<4x32x256xf32, #tpu.memory_space<vmem>>) attributes {dimension_semantics = [#tpu.dimension_semantics<parallel>], iteration_bounds = array<i64: 2>, scalar_prefetch = 0 : i64, scratch_operands = 0 : i64, tpu.core_type = #tpu.core_type<tc>, window_params = [{transform_indices = @transform_0, window_bounds = array<i64: 4, 32, 256>}, {pipeline_mode = #tpu.pipeline_mode<synchronous>, transform_indices = @transform_1, window_bounds = array<i64: 2, 32>}, {pipeline_mode = #tpu.pipeline_mode<synchronous>, transform_indices = @transform_2, window_bounds = array<i64: 2, 32>}, {pipeline_mode = #tpu.pipeline_mode<synchronous>, transform_indices = @transform_3, window_bounds = array<i64: 98, 256>}, {transform_indices = @transform_4, window_bounds = array<i64: 4, 32, 256>}]} {
    %c0 = arith.constant 0 : index
    %c0_0 = arith.constant 0 : index
    %c0_1 = arith.constant 0 : index
    %0 = vector.load %arg1[%c0, %c0_0, %c0_1] : memref<4x32x256xf32, #tpu.memory_space<vmem>>, vector<4x32x256xf32>
    %cst = arith.constant dense<0xFF800000> : vector<4x32xf32>
    %1 = vector.multi_reduction <maximumf>, %0, %cst [2] : vector<4x32x256xf32> to vector<4x32xf32>
    %cst_2 = arith.constant dense<0.000000e+00> : vector<4x32xf32>
    %2 = vector.multi_reduction <add>, %0, %cst_2 [2] : vector<4x32x256xf32> to vector<4x32xf32>
    %cst_3 = arith.constant 3.906250e-03 : f32
    %3 = vector.broadcast %cst_3 : f32 to vector<4x32xf32>
    %4 = arith.mulf %2, %3 : vector<4x32xf32>
    %5 = tpu.concatenate %1, %4 in 0 : vector<4x32xf32>, vector<4x32xf32> -> vector<8x32xf32>
    %cst_4 = arith.constant 0.000000e+00 : f32
    %6 = vector.broadcast %cst_4 : f32 to vector<8x32xf32>
    %c0_5 = arith.constant 0 : index
    %c0_6 = arith.constant 0 : index
    %7 = vector.load %arg2[%c0_5, %c0_6] : memref<2x32xf32, #tpu.memory_space<vmem>>, vector<1x32xf32>
    %8 = vector.broadcast %7 : vector<1x32xf32> to vector<8x32xf32>
    %9 = arith.mulf %5, %8 : vector<8x32xf32>
    %cst_7 = arith.constant dense<0.000000e+00> : vector<8xf32>
    %10 = vector.multi_reduction <add>, %9, %cst_7 [1] : vector<8x32xf32> to vector<8xf32>
    %11 = vector.shape_cast %10 : vector<8xf32> to vector<8x1xf32>
    %cst_8 = arith.constant 0.000000e+00 : f32
    %12 = vector.broadcast %cst_8 : f32 to vector<8x1xf32>
    %13 = arith.maximumf %11, %12 : vector<8x1xf32>
    %c0_9 = arith.constant 0 : index
    %c0_10 = arith.constant 0 : index
    %14 = vector.load %arg3[%c0_9, %c0_10] : memref<2x32xf32, #tpu.memory_space<vmem>>, vector<1x32xf32>
    %15 = vector.broadcast %13 : vector<8x1xf32> to vector<8x32xf32>
    %16 = vector.broadcast %14 : vector<1x32xf32> to vector<8x32xf32>
    %17 = arith.mulf %15, %16 : vector<8x32xf32>
    %18 = arith.addf %6, %17 : vector<8x32xf32>
    %c1 = arith.constant 1 : index
    %c0_11 = arith.constant 0 : index
    %19 = vector.load %arg2[%c1, %c0_11] : memref<2x32xf32, #tpu.memory_space<vmem>>, vector<1x32xf32>
    %20 = vector.broadcast %19 : vector<1x32xf32> to vector<8x32xf32>
    %21 = arith.mulf %5, %20 : vector<8x32xf32>
    %cst_12 = arith.constant dense<0.000000e+00> : vector<8xf32>
    %22 = vector.multi_reduction <add>, %21, %cst_12 [1] : vector<8x32xf32> to vector<8xf32>
    %23 = vector.shape_cast %22 : vector<8xf32> to vector<8x1xf32>
    %cst_13 = arith.constant 0.000000e+00 : f32
    %24 = vector.broadcast %cst_13 : f32 to vector<8x1xf32>
    %25 = arith.maximumf %23, %24 : vector<8x1xf32>
    %c1_14 = arith.constant 1 : index
    %c0_15 = arith.constant 0 : index
    %26 = vector.load %arg3[%c1_14, %c0_15] : memref<2x32xf32, #tpu.memory_space<vmem>>, vector<1x32xf32>
    %27 = vector.broadcast %25 : vector<8x1xf32> to vector<8x32xf32>
    %28 = vector.broadcast %26 : vector<1x32xf32> to vector<8x32xf32>
    %29 = arith.mulf %27, %28 : vector<8x32xf32>
    %30 = arith.addf %18, %29 : vector<8x32xf32>
    %31 = vector.extract_strided_slice %30 {offsets = [0, 0], sizes = [4, 32], strides = [1, 1]} : vector<8x32xf32> to vector<4x32xf32>
    %32 = vector.extract_strided_slice %30 {offsets = [4, 0], sizes = [4, 32], strides = [1, 1]} : vector<8x32xf32> to vector<4x32xf32>
    %33 = arith.addf %31, %32 : vector<4x32xf32>
    %34 = arith.negf %33 : vector<4x32xf32>
    %35 = math.exp %34 : vector<4x32xf32>
    %cst_16 = arith.constant 1.000000e+00 : f32
    %36 = vector.broadcast %cst_16 : f32 to vector<4x32xf32>
    %37 = arith.addf %36, %35 : vector<4x32xf32>
    %38 = arith.divf %36, %37 : vector<4x32xf32>
    %39 = vector.shape_cast %38 : vector<4x32xf32> to vector<4x32x1xf32>
    %40 = vector.broadcast %39 : vector<4x32x1xf32> to vector<4x32x256xf32>
    %41 = arith.mulf %0, %40 : vector<4x32x256xf32>
    %cst_17 = arith.constant dense<0xFF800000> : vector<4x256xf32>
    %42 = vector.multi_reduction <maximumf>, %41, %cst_17 [1] : vector<4x32x256xf32> to vector<4x256xf32>
    %cst_18 = arith.constant dense<0.000000e+00> : vector<4x256xf32>
    %43 = vector.multi_reduction <add>, %41, %cst_18 [1] : vector<4x32x256xf32> to vector<4x256xf32>
    %cst_19 = arith.constant 3.125000e-02 : f32
    %44 = vector.broadcast %cst_19 : f32 to vector<4x256xf32>
    %45 = arith.mulf %43, %44 : vector<4x256xf32>
    %cst_20 = arith.constant 0.000000e+00 : f32
    %46 = vector.broadcast %cst_20 : f32 to vector<4x256xf32>
    %cst_21 = arith.constant 0.000000e+00 : f32
    %47 = vector.broadcast %cst_21 : f32 to vector<4x256xf32>
    %c51_i32 = arith.constant 51 : i32
    %48 = tpu.dynamic_rotate %42 by %c51_i32 dim 1 : vector<4x256xf32>, i32 -> vector<4x256xf32>
    %c51_i32_22 = arith.constant 51 : i32
    %49 = tpu.dynamic_rotate %45 by %c51_i32_22 dim 1 : vector<4x256xf32>, i32 -> vector<4x256xf32>
    %c0_23 = arith.constant 0 : index
    %c0_24 = arith.constant 0 : index
    %50 = vector.load %arg4[%c0_23, %c0_24] : memref<98x256xf32, #tpu.memory_space<vmem>>, vector<1x256xf32>
    %51 = vector.broadcast %50 : vector<1x256xf32> to vector<4x256xf32>
    %52 = arith.mulf %48, %51 : vector<4x256xf32>
    %53 = arith.addf %46, %52 : vector<4x256xf32>
    %c49 = arith.constant 49 : index
    %c0_25 = arith.constant 0 : index
    %54 = vector.load %arg4[%c49, %c0_25] : memref<98x256xf32, #tpu.memory_space<vmem>>, vector<1x256xf32>
    %55 = vector.broadcast %54 : vector<1x256xf32> to vector<4x256xf32>
    %56 = arith.mulf %49, %55 : vector<4x256xf32>
    %57 = arith.addf %47, %56 : vector<4x256xf32>
    %c50_i32 = arith.constant 50 : i32
    %58 = tpu.dynamic_rotate %42 by %c50_i32 dim 1 : vector<4x256xf32>, i32 -> vector<4x256xf32>
    %c50_i32_26 = arith.constant 50 : i32
    %59 = tpu.dynamic_rotate %45 by %c50_i32_26 dim 1 : vector<4x256xf32>, i32 -> vector<4x256xf32>
    %c1_27 = arith.constant 1 : index
    %c0_28 = arith.constant 0 : index
    %60 = vector.load %arg4[%c1_27, %c0_28] : memref<98x256xf32, #tpu.memory_space<vmem>>, vector<1x256xf32>
    %61 = vector.broadcast %60 : vector<1x256xf32> to vector<4x256xf32>
    %62 = arith.mulf %58, %61 : vector<4x256xf32>
    %63 = arith.addf %53, %62 : vector<4x256xf32>
    %c50 = arith.constant 50 : index
    %c0_29 = arith.constant 0 : index
    %64 = vector.load %arg4[%c50, %c0_29] : memref<98x256xf32, #tpu.memory_space<vmem>>, vector<1x256xf32>
    %65 = vector.broadcast %64 : vector<1x256xf32> to vector<4x256xf32>
    %66 = arith.mulf %59, %65 : vector<4x256xf32>
    %67 = arith.addf %57, %66 : vector<4x256xf32>
    %c49_i32 = arith.constant 49 : i32
    %68 = tpu.dynamic_rotate %42 by %c49_i32 dim 1 : vector<4x256xf32>, i32 -> vector<4x256xf32>
    %c49_i32_30 = arith.constant 49 : i32
    %69 = tpu.dynamic_rotate %45 by %c49_i32_30 dim 1 : vector<4x256xf32>, i32 -> vector<4x256xf32>
    %c2 = arith.constant 2 : index
    %c0_31 = arith.constant 0 : index
    %70 = vector.load %arg4[%c2, %c0_31] : memref<98x256xf32, #tpu.memory_space<vmem>>, vector<1x256xf32>
    %71 = vector.broadcast %70 : vector<1x256xf32> to vector<4x256xf32>
    %72 = arith.mulf %68, %71 : vector<4x256xf32>
    %73 = arith.addf %63, %72 : vector<4x256xf32>
    %c51 = arith.constant 51 : index
    %c0_32 = arith.constant 0 : index
    %74 = vector.load %arg4[%c51, %c0_32] : memref<98x256xf32, #tpu.memory_space<vmem>>, vector<1x256xf32>
    %75 = vector.broadcast %74 : vector<1x256xf32> to vector<4x256xf32>
    %76 = arith.mulf %69, %75 : vector<4x256xf32>
    %77 = arith.addf %67, %76 : vector<4x256xf32>
    %c48_i32 = arith.constant 48 : i32
    %78 = tpu.dynamic_rotate %42 by %c48_i32 dim 1 : vector<4x256xf32>, i32 -> vector<4x256xf32>
    %c48_i32_33 = arith.constant 48 : i32
    %79 = tpu.dynamic_rotate %45 by %c48_i32_33 dim 1 : vector<4x256xf32>, i32 -> vector<4x256xf32>
    %c3 = arith.constant 3 : index
    %c0_34 = arith.constant 0 : index
    %80 = vector.load %arg4[%c3, %c0_34] : memref<98x256xf32, #tpu.memory_space<vmem>>, vector<1x256xf32>
    %81 = vector.broadcast %80 : vector<1x256xf32> to vector<4x256xf32>
    %82 = arith.mulf %78, %81 : vector<4x256xf32>
    %83 = arith.addf %73, %82 : vector<4x256xf32>
    %c52 = arith.constant 52 : index
    %c0_35 = arith.constant 0 : index
    %84 = vector.load %arg4[%c52, %c0_35] : memref<98x256xf32, #tpu.memory_space<vmem>>, vector<1x256xf32>
    %85 = vector.broadcast %84 : vector<1x256xf32> to vector<4x256xf32>
    %86 = arith.mulf %79, %85 : vector<4x256xf32>
    %87 = arith.addf %77, %86 : vector<4x256xf32>
    %c47_i32 = arith.constant 47 : i32
    %88 = tpu.dynamic_rotate %42 by %c47_i32 dim 1 : vector<4x256xf32>, i32 -> vector<4x256xf32>
    %c47_i32_36 = arith.constant 47 : i32
    %89 = tpu.dynamic_rotate %45 by %c47_i32_36 dim 1 : vector<4x256xf32>, i32 -> vector<4x256xf32>
    %c4 = arith.constant 4 : index
    %c0_37 = arith.constant 0 : index
    %90 = vector.load %arg4[%c4, %c0_37] : memref<98x256xf32, #tpu.memory_space<vmem>>, vector<1x256xf32>
    %91 = vector.broadcast %90 : vector<1x256xf32> to vector<4x256xf32>
    %92 = arith.mulf %88, %91 : vector<4x256xf32>
    %93 = arith.addf %83, %92 : vector<4x256xf32>
    %c53 = arith.constant 53 : index
    %c0_38 = arith.constant 0 : index
    %94 = vector.load %arg4[%c53, %c0_38] : memref<98x256xf32, #tpu.memory_space<vmem>>, vector<1x256xf32>
    %95 = vector.broadcast %94 : vector<1x256xf32> to vector<4x256xf32>
    %96 = arith.mulf %89, %95 : vector<4x256xf32>
    %97 = arith.addf %87, %96 : vector<4x256xf32>
    %c46_i32 = arith.constant 46 : i32
    %98 = tpu.dynamic_rotate %42 by %c46_i32 dim 1 : vector<4x256xf32>, i32 -> vector<4x256xf32>
    %c46_i32_39 = arith.constant 46 : i32
    %99 = tpu.dynamic_rotate %45 by %c46_i32_39 dim 1 : vector<4x256xf32>, i32 -> vector<4x256xf32>
    %c5 = arith.constant 5 : index
    %c0_40 = arith.constant 0 : index
    %100 = vector.load %arg4[%c5, %c0_40] : memref<98x256xf32, #tpu.memory_space<vmem>>, vector<1x256xf32>
    %101 = vector.broadcast %100 : vector<1x256xf32> to vector<4x256xf32>
    %102 = arith.mulf %98, %101 : vector<4x256xf32>
    %103 = arith.addf %93, %102 : vector<4x256xf32>
    %c54 = arith.constant 54 : index
    %c0_41 = arith.constant 0 : index
    %104 = vector.load %arg4[%c54, %c0_41] : memref<98x256xf32, #tpu.memory_space<vmem>>, vector<1x256xf32>
    %105 = vector.broadcast %104 : vector<1x256xf32> to vector<4x256xf32>
    %106 = arith.mulf %99, %105 : vector<4x256xf32>
    %107 = arith.addf %97, %106 : vector<4x256xf32>
    %c45_i32 = arith.constant 45 : i32
    %108 = tpu.dynamic_rotate %42 by %c45_i32 dim 1 : vector<4x256xf32>, i32 -> vector<4x256xf32>
    %c45_i32_42 = arith.constant 45 : i32
    %109 = tpu.dynamic_rotate %45 by %c45_i32_42 dim 1 : vector<4x256xf32>, i32 -> vector<4x256xf32>
    %c6 = arith.constant 6 : index
    %c0_43 = arith.constant 0 : index
    %110 = vector.load %arg4[%c6, %c0_43] : memref<98x256xf32, #tpu.memory_space<vmem>>, vector<1x256xf32>
    %111 = vector.broadcast %110 : vector<1x256xf32> to vector<4x256xf32>
    %112 = arith.mulf %108, %111 : vector<4x256xf32>
    %113 = arith.addf %103, %112 : vector<4x256xf32>
    %c55 = arith.constant 55 : index
    %c0_44 = arith.constant 0 : index
    %114 = vector.load %arg4[%c55, %c0_44] : memref<98x256xf32, #tpu.memory_space<vmem>>, vector<1x256xf32>
    %115 = vector.broadcast %114 : vector<1x256xf32> to vector<4x256xf32>
    %116 = arith.mulf %109, %115 : vector<4x256xf32>
    %117 = arith.addf %107, %116 : vector<4x256xf32>
    %c35_i32 = arith.constant 35 : i32
    %118 = tpu.dynamic_rotate %42 by %c35_i32 dim 1 : vector<4x256xf32>, i32 -> vector<4x256xf32>
    %c35_i32_45 = arith.constant 35 : i32
    %119 = tpu.dynamic_rotate %45 by %c35_i32_45 dim 1 : vector<4x256xf32>, i32 -> vector<4x256xf32>
    %c7 = arith.constant 7 : index
    %c0_46 = arith.constant 0 : index
    %120 = vector.load %arg4[%c7, %c0_46] : memref<98x256xf32, #tpu.memory_space<vmem>>, vector<1x256xf32>
    %121 = vector.broadcast %120 : vector<1x256xf32> to vector<4x256xf32>
    %122 = arith.mulf %118, %121 : vector<4x256xf32>
    %123 = arith.addf %113, %122 : vector<4x256xf32>
    %c56 = arith.constant 56 : index
    %c0_47 = arith.constant 0 : index
    %124 = vector.load %arg4[%c56, %c0_47] : memref<98x256xf32, #tpu.memory_space<vmem>>, vector<1x256xf32>
    %125 = vector.broadcast %124 : vector<1x256xf32> to vector<4x256xf32>
    %126 = arith.mulf %119, %125 : vector<4x256xf32>
    %127 = arith.addf %117, %126 : vector<4x256xf32>
    %c34_i32 = arith.constant 34 : i32
    %128 = tpu.dynamic_rotate %42 by %c34_i32 dim 1 : vector<4x256xf32>, i32 -> vector<4x256xf32>
    %c34_i32_48 = arith.constant 34 : i32
    %129 = tpu.dynamic_rotate %45 by %c34_i32_48 dim 1 : vector<4x256xf32>, i32 -> vector<4x256xf32>
    %c8 = arith.constant 8 : index
    %c0_49 = arith.constant 0 : index
    %130 = vector.load %arg4[%c8, %c0_49] : memref<98x256xf32, #tpu.memory_space<vmem>>, vector<1x256xf32>
    %131 = vector.broadcast %130 : vector<1x256xf32> to vector<4x256xf32>
    %132 = arith.mulf %128, %131 : vector<4x256xf32>
    %133 = arith.addf %123, %132 : vector<4x256xf32>
    %c57 = arith.constant 57 : index
    %c0_50 = arith.constant 0 : index
    %134 = vector.load %arg4[%c57, %c0_50] : memref<98x256xf32, #tpu.memory_space<vmem>>, vector<1x256xf32>
    %135 = vector.broadcast %134 : vector<1x256xf32> to vector<4x256xf32>
    %136 = arith.mulf %129, %135 : vector<4x256xf32>
    %137 = arith.addf %127, %136 : vector<4x256xf32>
    %c33_i32 = arith.constant 33 : i32
    %138 = tpu.dynamic_rotate %42 by %c33_i32 dim 1 : vector<4x256xf32>, i32 -> vector<4x256xf32>
    %c33_i32_51 = arith.constant 33 : i32
    %139 = tpu.dynamic_rotate %45 by %c33_i32_51 dim 1 : vector<4x256xf32>, i32 -> vector<4x256xf32>
    %c9 = arith.constant 9 : index
    %c0_52 = arith.constant 0 : index
    %140 = vector.load %arg4[%c9, %c0_52] : memref<98x256xf32, #tpu.memory_space<vmem>>, vector<1x256xf32>
    %141 = vector.broadcast %140 : vector<1x256xf32> to vector<4x256xf32>
    %142 = arith.mulf %138, %141 : vector<4x256xf32>
    %143 = arith.addf %133, %142 : vector<4x256xf32>
    %c58 = arith.constant 58 : index
    %c0_53 = arith.constant 0 : index
    %144 = vector.load %arg4[%c58, %c0_53] : memref<98x256xf32, #tpu.memory_space<vmem>>, vector<1x256xf32>
    %145 = vector.broadcast %144 : vector<1x256xf32> to vector<4x256xf32>
    %146 = arith.mulf %139, %145 : vector<4x256xf32>
    %147 = arith.addf %137, %146 : vector<4x256xf32>
    %c32_i32 = arith.constant 32 : i32
    %148 = tpu.dynamic_rotate %42 by %c32_i32 dim 1 : vector<4x256xf32>, i32 -> vector<4x256xf32>
    %c32_i32_54 = arith.constant 32 : i32
    %149 = tpu.dynamic_rotate %45 by %c32_i32_54 dim 1 : vector<4x256xf32>, i32 -> vector<4x256xf32>
    %c10 = arith.constant 10 : index
    %c0_55 = arith.constant 0 : index
    %150 = vector.load %arg4[%c10, %c0_55] : memref<98x256xf32, #tpu.memory_space<vmem>>, vector<1x256xf32>
    %151 = vector.broadcast %150 : vector<1x256xf32> to vector<4x256xf32>
    %152 = arith.mulf %148, %151 : vector<4x256xf32>
    %153 = arith.addf %143, %152 : vector<4x256xf32>
    %c59 = arith.constant 59 : index
    %c0_56 = arith.constant 0 : index
    %154 = vector.load %arg4[%c59, %c0_56] : memref<98x256xf32, #tpu.memory_space<vmem>>, vector<1x256xf32>
    %155 = vector.broadcast %154 : vector<1x256xf32> to vector<4x256xf32>
    %156 = arith.mulf %149, %155 : vector<4x256xf32>
    %157 = arith.addf %147, %156 : vector<4x256xf32>
    %c31_i32 = arith.constant 31 : i32
    %158 = tpu.dynamic_rotate %42 by %c31_i32 dim 1 : vector<4x256xf32>, i32 -> vector<4x256xf32>
    %c31_i32_57 = arith.constant 31 : i32
    %159 = tpu.dynamic_rotate %45 by %c31_i32_57 dim 1 : vector<4x256xf32>, i32 -> vector<4x256xf32>
    %c11 = arith.constant 11 : index
    %c0_58 = arith.constant 0 : index
    %160 = vector.load %arg4[%c11, %c0_58] : memref<98x256xf32, #tpu.memory_space<vmem>>, vector<1x256xf32>
    %161 = vector.broadcast %160 : vector<1x256xf32> to vector<4x256xf32>
    %162 = arith.mulf %158, %161 : vector<4x256xf32>
    %163 = arith.addf %153, %162 : vector<4x256xf32>
    %c60 = arith.constant 60 : index
    %c0_59 = arith.constant 0 : index
    %164 = vector.load %arg4[%c60, %c0_59] : memref<98x256xf32, #tpu.memory_space<vmem>>, vector<1x256xf32>
    %165 = vector.broadcast %164 : vector<1x256xf32> to vector<4x256xf32>
    %166 = arith.mulf %159, %165 : vector<4x256xf32>
    %167 = arith.addf %157, %166 : vector<4x256xf32>
    %c30_i32 = arith.constant 30 : i32
    %168 = tpu.dynamic_rotate %42 by %c30_i32 dim 1 : vector<4x256xf32>, i32 -> vector<4x256xf32>
    %c30_i32_60 = arith.constant 30 : i32
    %169 = tpu.dynamic_rotate %45 by %c30_i32_60 dim 1 : vector<4x256xf32>, i32 -> vector<4x256xf32>
    %c12 = arith.constant 12 : index
    %c0_61 = arith.constant 0 : index
    %170 = vector.load %arg4[%c12, %c0_61] : memref<98x256xf32, #tpu.memory_space<vmem>>, vector<1x256xf32>
    %171 = vector.broadcast %170 : vector<1x256xf32> to vector<4x256xf32>
    %172 = arith.mulf %168, %171 : vector<4x256xf32>
    %173 = arith.addf %163, %172 : vector<4x256xf32>
    %c61 = arith.constant 61 : index
    %c0_62 = arith.constant 0 : index
    %174 = vector.load %arg4[%c61, %c0_62] : memref<98x256xf32, #tpu.memory_space<vmem>>, vector<1x256xf32>
    %175 = vector.broadcast %174 : vector<1x256xf32> to vector<4x256xf32>
    %176 = arith.mulf %169, %175 : vector<4x256xf32>
    %177 = arith.addf %167, %176 : vector<4x256xf32>
    %c29_i32 = arith.constant 29 : i32
    %178 = tpu.dynamic_rotate %42 by %c29_i32 dim 1 : vector<4x256xf32>, i32 -> vector<4x256xf32>
    %c29_i32_63 = arith.constant 29 : i32
    %179 = tpu.dynamic_rotate %45 by %c29_i32_63 dim 1 : vector<4x256xf32>, i32 -> vector<4x256xf32>
    %c13 = arith.constant 13 : index
    %c0_64 = arith.constant 0 : index
    %180 = vector.load %arg4[%c13, %c0_64] : memref<98x256xf32, #tpu.memory_space<vmem>>, vector<1x256xf32>
    %181 = vector.broadcast %180 : vector<1x256xf32> to vector<4x256xf32>
    %182 = arith.mulf %178, %181 : vector<4x256xf32>
    %183 = arith.addf %173, %182 : vector<4x256xf32>
    %c62 = arith.constant 62 : index
    %c0_65 = arith.constant 0 : index
    %184 = vector.load %arg4[%c62, %c0_65] : memref<98x256xf32, #tpu.memory_space<vmem>>, vector<1x256xf32>
    %185 = vector.broadcast %184 : vector<1x256xf32> to vector<4x256xf32>
    %186 = arith.mulf %179, %185 : vector<4x256xf32>
    %187 = arith.addf %177, %186 : vector<4x256xf32>
    %c19_i32 = arith.constant 19 : i32
    %188 = tpu.dynamic_rotate %42 by %c19_i32 dim 1 : vector<4x256xf32>, i32 -> vector<4x256xf32>
    %c19_i32_66 = arith.constant 19 : i32
    %189 = tpu.dynamic_rotate %45 by %c19_i32_66 dim 1 : vector<4x256xf32>, i32 -> vector<4x256xf32>
    %c14 = arith.constant 14 : index
    %c0_67 = arith.constant 0 : index
    %190 = vector.load %arg4[%c14, %c0_67] : memref<98x256xf32, #tpu.memory_space<vmem>>, vector<1x256xf32>
    %191 = vector.broadcast %190 : vector<1x256xf32> to vector<4x256xf32>
    %192 = arith.mulf %188, %191 : vector<4x256xf32>
    %193 = arith.addf %183, %192 : vector<4x256xf32>
    %c63 = arith.constant 63 : index
    %c0_68 = arith.constant 0 : index
    %194 = vector.load %arg4[%c63, %c0_68] : memref<98x256xf32, #tpu.memory_space<vmem>>, vector<1x256xf32>
    %195 = vector.broadcast %194 : vector<1x256xf32> to vector<4x256xf32>
    %196 = arith.mulf %189, %195 : vector<4x256xf32>
    %197 = arith.addf %187, %196 : vector<4x256xf32>
    %c18_i32 = arith.constant 18 : i32
    %198 = tpu.dynamic_rotate %42 by %c18_i32 dim 1 : vector<4x256xf32>, i32 -> vector<4x256xf32>
    %c18_i32_69 = arith.constant 18 : i32
    %199 = tpu.dynamic_rotate %45 by %c18_i32_69 dim 1 : vector<4x256xf32>, i32 -> vector<4x256xf32>
    %c15 = arith.constant 15 : index
    %c0_70 = arith.constant 0 : index
    %200 = vector.load %arg4[%c15, %c0_70] : memref<98x256xf32, #tpu.memory_space<vmem>>, vector<1x256xf32>
    %201 = vector.broadcast %200 : vector<1x256xf32> to vector<4x256xf32>
    %202 = arith.mulf %198, %201 : vector<4x256xf32>
    %203 = arith.addf %193, %202 : vector<4x256xf32>
    %c64 = arith.constant 64 : index
    %c0_71 = arith.constant 0 : index
    %204 = vector.load %arg4[%c64, %c0_71] : memref<98x256xf32, #tpu.memory_space<vmem>>, vector<1x256xf32>
    %205 = vector.broadcast %204 : vector<1x256xf32> to vector<4x256xf32>
    %206 = arith.mulf %199, %205 : vector<4x256xf32>
    %207 = arith.addf %197, %206 : vector<4x256xf32>
    %c17_i32 = arith.constant 17 : i32
    %208 = tpu.dynamic_rotate %42 by %c17_i32 dim 1 : vector<4x256xf32>, i32 -> vector<4x256xf32>
    %c17_i32_72 = arith.constant 17 : i32
    %209 = tpu.dynamic_rotate %45 by %c17_i32_72 dim 1 : vector<4x256xf32>, i32 -> vector<4x256xf32>
    %c16 = arith.constant 16 : index
    %c0_73 = arith.constant 0 : index
    %210 = vector.load %arg4[%c16, %c0_73] : memref<98x256xf32, #tpu.memory_space<vmem>>, vector<1x256xf32>
    %211 = vector.broadcast %210 : vector<1x256xf32> to vector<4x256xf32>
    %212 = arith.mulf %208, %211 : vector<4x256xf32>
    %213 = arith.addf %203, %212 : vector<4x256xf32>
    %c65 = arith.constant 65 : index
    %c0_74 = arith.constant 0 : index
    %214 = vector.load %arg4[%c65, %c0_74] : memref<98x256xf32, #tpu.memory_space<vmem>>, vector<1x256xf32>
    %215 = vector.broadcast %214 : vector<1x256xf32> to vector<4x256xf32>
    %216 = arith.mulf %209, %215 : vector<4x256xf32>
    %217 = arith.addf %207, %216 : vector<4x256xf32>
    %c16_i32 = arith.constant 16 : i32
    %218 = tpu.dynamic_rotate %42 by %c16_i32 dim 1 : vector<4x256xf32>, i32 -> vector<4x256xf32>
    %c16_i32_75 = arith.constant 16 : i32
    %219 = tpu.dynamic_rotate %45 by %c16_i32_75 dim 1 : vector<4x256xf32>, i32 -> vector<4x256xf32>
    %c17 = arith.constant 17 : index
    %c0_76 = arith.constant 0 : index
    %220 = vector.load %arg4[%c17, %c0_76] : memref<98x256xf32, #tpu.memory_space<vmem>>, vector<1x256xf32>
    %221 = vector.broadcast %220 : vector<1x256xf32> to vector<4x256xf32>
    %222 = arith.mulf %218, %221 : vector<4x256xf32>
    %223 = arith.addf %213, %222 : vector<4x256xf32>
    %c66 = arith.constant 66 : index
    %c0_77 = arith.constant 0 : index
    %224 = vector.load %arg4[%c66, %c0_77] : memref<98x256xf32, #tpu.memory_space<vmem>>, vector<1x256xf32>
    %225 = vector.broadcast %224 : vector<1x256xf32> to vector<4x256xf32>
    %226 = arith.mulf %219, %225 : vector<4x256xf32>
    %227 = arith.addf %217, %226 : vector<4x256xf32>
    %c15_i32 = arith.constant 15 : i32
    %228 = tpu.dynamic_rotate %42 by %c15_i32 dim 1 : vector<4x256xf32>, i32 -> vector<4x256xf32>
    %c15_i32_78 = arith.constant 15 : i32
    %229 = tpu.dynamic_rotate %45 by %c15_i32_78 dim 1 : vector<4x256xf32>, i32 -> vector<4x256xf32>
    %c18 = arith.constant 18 : index
    %c0_79 = arith.constant 0 : index
    %230 = vector.load %arg4[%c18, %c0_79] : memref<98x256xf32, #tpu.memory_space<vmem>>, vector<1x256xf32>
    %231 = vector.broadcast %230 : vector<1x256xf32> to vector<4x256xf32>
    %232 = arith.mulf %228, %231 : vector<4x256xf32>
    %233 = arith.addf %223, %232 : vector<4x256xf32>
    %c67 = arith.constant 67 : index
    %c0_80 = arith.constant 0 : index
    %234 = vector.load %arg4[%c67, %c0_80] : memref<98x256xf32, #tpu.memory_space<vmem>>, vector<1x256xf32>
    %235 = vector.broadcast %234 : vector<1x256xf32> to vector<4x256xf32>
    %236 = arith.mulf %229, %235 : vector<4x256xf32>
    %237 = arith.addf %227, %236 : vector<4x256xf32>
    %c14_i32 = arith.constant 14 : i32
    %238 = tpu.dynamic_rotate %42 by %c14_i32 dim 1 : vector<4x256xf32>, i32 -> vector<4x256xf32>
    %c14_i32_81 = arith.constant 14 : i32
    %239 = tpu.dynamic_rotate %45 by %c14_i32_81 dim 1 : vector<4x256xf32>, i32 -> vector<4x256xf32>
    %c19 = arith.constant 19 : index
    %c0_82 = arith.constant 0 : index
    %240 = vector.load %arg4[%c19, %c0_82] : memref<98x256xf32, #tpu.memory_space<vmem>>, vector<1x256xf32>
    %241 = vector.broadcast %240 : vector<1x256xf32> to vector<4x256xf32>
    %242 = arith.mulf %238, %241 : vector<4x256xf32>
    %243 = arith.addf %233, %242 : vector<4x256xf32>
    %c68 = arith.constant 68 : index
    %c0_83 = arith.constant 0 : index
    %244 = vector.load %arg4[%c68, %c0_83] : memref<98x256xf32, #tpu.memory_space<vmem>>, vector<1x256xf32>
    %245 = vector.broadcast %244 : vector<1x256xf32> to vector<4x256xf32>
    %246 = arith.mulf %239, %245 : vector<4x256xf32>
    %247 = arith.addf %237, %246 : vector<4x256xf32>
    %c13_i32 = arith.constant 13 : i32
    %248 = tpu.dynamic_rotate %42 by %c13_i32 dim 1 : vector<4x256xf32>, i32 -> vector<4x256xf32>
    %c13_i32_84 = arith.constant 13 : i32
    %249 = tpu.dynamic_rotate %45 by %c13_i32_84 dim 1 : vector<4x256xf32>, i32 -> vector<4x256xf32>
    %c20 = arith.constant 20 : index
    %c0_85 = arith.constant 0 : index
    %250 = vector.load %arg4[%c20, %c0_85] : memref<98x256xf32, #tpu.memory_space<vmem>>, vector<1x256xf32>
    %251 = vector.broadcast %250 : vector<1x256xf32> to vector<4x256xf32>
    %252 = arith.mulf %248, %251 : vector<4x256xf32>
    %253 = arith.addf %243, %252 : vector<4x256xf32>
    %c69 = arith.constant 69 : index
    %c0_86 = arith.constant 0 : index
    %254 = vector.load %arg4[%c69, %c0_86] : memref<98x256xf32, #tpu.memory_space<vmem>>, vector<1x256xf32>
    %255 = vector.broadcast %254 : vector<1x256xf32> to vector<4x256xf32>
    %256 = arith.mulf %249, %255 : vector<4x256xf32>
    %257 = arith.addf %247, %256 : vector<4x256xf32>
    %c3_i32 = arith.constant 3 : i32
    %258 = tpu.dynamic_rotate %42 by %c3_i32 dim 1 : vector<4x256xf32>, i32 -> vector<4x256xf32>
    %c3_i32_87 = arith.constant 3 : i32
    %259 = tpu.dynamic_rotate %45 by %c3_i32_87 dim 1 : vector<4x256xf32>, i32 -> vector<4x256xf32>
    %c21 = arith.constant 21 : index
    %c0_88 = arith.constant 0 : index
    %260 = vector.load %arg4[%c21, %c0_88] : memref<98x256xf32, #tpu.memory_space<vmem>>, vector<1x256xf32>
    %261 = vector.broadcast %260 : vector<1x256xf32> to vector<4x256xf32>
    %262 = arith.mulf %258, %261 : vector<4x256xf32>
    %263 = arith.addf %253, %262 : vector<4x256xf32>
    %c70 = arith.constant 70 : index
    %c0_89 = arith.constant 0 : index
    %264 = vector.load %arg4[%c70, %c0_89] : memref<98x256xf32, #tpu.memory_space<vmem>>, vector<1x256xf32>
    %265 = vector.broadcast %264 : vector<1x256xf32> to vector<4x256xf32>
    %266 = arith.mulf %259, %265 : vector<4x256xf32>
    %267 = arith.addf %257, %266 : vector<4x256xf32>
    %c2_i32 = arith.constant 2 : i32
    %268 = tpu.dynamic_rotate %42 by %c2_i32 dim 1 : vector<4x256xf32>, i32 -> vector<4x256xf32>
    %c2_i32_90 = arith.constant 2 : i32
    %269 = tpu.dynamic_rotate %45 by %c2_i32_90 dim 1 : vector<4x256xf32>, i32 -> vector<4x256xf32>
    %c22 = arith.constant 22 : index
    %c0_91 = arith.constant 0 : index
    %270 = vector.load %arg4[%c22, %c0_91] : memref<98x256xf32, #tpu.memory_space<vmem>>, vector<1x256xf32>
    %271 = vector.broadcast %270 : vector<1x256xf32> to vector<4x256xf32>
    %272 = arith.mulf %268, %271 : vector<4x256xf32>
    %273 = arith.addf %263, %272 : vector<4x256xf32>
    %c71 = arith.constant 71 : index
    %c0_92 = arith.constant 0 : index
    %274 = vector.load %arg4[%c71, %c0_92] : memref<98x256xf32, #tpu.memory_space<vmem>>, vector<1x256xf32>
    %275 = vector.broadcast %274 : vector<1x256xf32> to vector<4x256xf32>
    %276 = arith.mulf %269, %275 : vector<4x256xf32>
    %277 = arith.addf %267, %276 : vector<4x256xf32>
    %c1_i32 = arith.constant 1 : i32
    %278 = tpu.dynamic_rotate %42 by %c1_i32 dim 1 : vector<4x256xf32>, i32 -> vector<4x256xf32>
    %c1_i32_93 = arith.constant 1 : i32
    %279 = tpu.dynamic_rotate %45 by %c1_i32_93 dim 1 : vector<4x256xf32>, i32 -> vector<4x256xf32>
    %c23 = arith.constant 23 : index
    %c0_94 = arith.constant 0 : index
    %280 = vector.load %arg4[%c23, %c0_94] : memref<98x256xf32, #tpu.memory_space<vmem>>, vector<1x256xf32>
    %281 = vector.broadcast %280 : vector<1x256xf32> to vector<4x256xf32>
    %282 = arith.mulf %278, %281 : vector<4x256xf32>
    %283 = arith.addf %273, %282 : vector<4x256xf32>
    %c72 = arith.constant 72 : index
    %c0_95 = arith.constant 0 : index
    %284 = vector.load %arg4[%c72, %c0_95] : memref<98x256xf32, #tpu.memory_space<vmem>>, vector<1x256xf32>
    %285 = vector.broadcast %284 : vector<1x256xf32> to vector<4x256xf32>
    %286 = arith.mulf %279, %285 : vector<4x256xf32>
    %287 = arith.addf %277, %286 : vector<4x256xf32>
    %c24 = arith.constant 24 : index
    %c0_96 = arith.constant 0 : index
    %288 = vector.load %arg4[%c24, %c0_96] : memref<98x256xf32, #tpu.memory_space<vmem>>, vector<1x256xf32>
    %289 = vector.broadcast %288 : vector<1x256xf32> to vector<4x256xf32>
    %290 = arith.mulf %42, %289 : vector<4x256xf32>
    %291 = arith.addf %283, %290 : vector<4x256xf32>
    %c73 = arith.constant 73 : index
    %c0_97 = arith.constant 0 : index
    %292 = vector.load %arg4[%c73, %c0_97] : memref<98x256xf32, #tpu.memory_space<vmem>>, vector<1x256xf32>
    %293 = vector.broadcast %292 : vector<1x256xf32> to vector<4x256xf32>
    %294 = arith.mulf %45, %293 : vector<4x256xf32>
    %295 = arith.addf %287, %294 : vector<4x256xf32>
    %c255_i32 = arith.constant 255 : i32
    %296 = tpu.dynamic_rotate %42 by %c255_i32 dim 1 : vector<4x256xf32>, i32 -> vector<4x256xf32>
    %c255_i32_98 = arith.constant 255 : i32
    %297 = tpu.dynamic_rotate %45 by %c255_i32_98 dim 1 : vector<4x256xf32>, i32 -> vector<4x256xf32>
    %c25 = arith.constant 25 : index
    %c0_99 = arith.constant 0 : index
    %298 = vector.load %arg4[%c25, %c0_99] : memref<98x256xf32, #tpu.memory_space<vmem>>, vector<1x256xf32>
    %299 = vector.broadcast %298 : vector<1x256xf32> to vector<4x256xf32>
    %300 = arith.mulf %296, %299 : vector<4x256xf32>
    %301 = arith.addf %291, %300 : vector<4x256xf32>
    %c74 = arith.constant 74 : index
    %c0_100 = arith.constant 0 : index
    %302 = vector.load %arg4[%c74, %c0_100] : memref<98x256xf32, #tpu.memory_space<vmem>>, vector<1x256xf32>
    %303 = vector.broadcast %302 : vector<1x256xf32> to vector<4x256xf32>
    %304 = arith.mulf %297, %303 : vector<4x256xf32>
    %305 = arith.addf %295, %304 : vector<4x256xf32>
    %c254_i32 = arith.constant 254 : i32
    %306 = tpu.dynamic_rotate %42 by %c254_i32 dim 1 : vector<4x256xf32>, i32 -> vector<4x256xf32>
    %c254_i32_101 = arith.constant 254 : i32
    %307 = tpu.dynamic_rotate %45 by %c254_i32_101 dim 1 : vector<4x256xf32>, i32 -> vector<4x256xf32>
    %c26 = arith.constant 26 : index
    %c0_102 = arith.constant 0 : index
    %308 = vector.load %arg4[%c26, %c0_102] : memref<98x256xf32, #tpu.memory_space<vmem>>, vector<1x256xf32>
    %309 = vector.broadcast %308 : vector<1x256xf32> to vector<4x256xf32>
    %310 = arith.mulf %306, %309 : vector<4x256xf32>
    %311 = arith.addf %301, %310 : vector<4x256xf32>
    %c75 = arith.constant 75 : index
    %c0_103 = arith.constant 0 : index
    %312 = vector.load %arg4[%c75, %c0_103] : memref<98x256xf32, #tpu.memory_space<vmem>>, vector<1x256xf32>
    %313 = vector.broadcast %312 : vector<1x256xf32> to vector<4x256xf32>
    %314 = arith.mulf %307, %313 : vector<4x256xf32>
    %315 = arith.addf %305, %314 : vector<4x256xf32>
    %c253_i32 = arith.constant 253 : i32
    %316 = tpu.dynamic_rotate %42 by %c253_i32 dim 1 : vector<4x256xf32>, i32 -> vector<4x256xf32>
    %c253_i32_104 = arith.constant 253 : i32
    %317 = tpu.dynamic_rotate %45 by %c253_i32_104 dim 1 : vector<4x256xf32>, i32 -> vector<4x256xf32>
    %c27 = arith.constant 27 : index
    %c0_105 = arith.constant 0 : index
    %318 = vector.load %arg4[%c27, %c0_105] : memref<98x256xf32, #tpu.memory_space<vmem>>, vector<1x256xf32>
    %319 = vector.broadcast %318 : vector<1x256xf32> to vector<4x256xf32>
    %320 = arith.mulf %316, %319 : vector<4x256xf32>
    %321 = arith.addf %311, %320 : vector<4x256xf32>
    %c76 = arith.constant 76 : index
    %c0_106 = arith.constant 0 : index
    %322 = vector.load %arg4[%c76, %c0_106] : memref<98x256xf32, #tpu.memory_space<vmem>>, vector<1x256xf32>
    %323 = vector.broadcast %322 : vector<1x256xf32> to vector<4x256xf32>
    %324 = arith.mulf %317, %323 : vector<4x256xf32>
    %325 = arith.addf %315, %324 : vector<4x256xf32>
    %c243_i32 = arith.constant 243 : i32
    %326 = tpu.dynamic_rotate %42 by %c243_i32 dim 1 : vector<4x256xf32>, i32 -> vector<4x256xf32>
    %c243_i32_107 = arith.constant 243 : i32
    %327 = tpu.dynamic_rotate %45 by %c243_i32_107 dim 1 : vector<4x256xf32>, i32 -> vector<4x256xf32>
    %c28 = arith.constant 28 : index
    %c0_108 = arith.constant 0 : index
    %328 = vector.load %arg4[%c28, %c0_108] : memref<98x256xf32, #tpu.memory_space<vmem>>, vector<1x256xf32>
    %329 = vector.broadcast %328 : vector<1x256xf32> to vector<4x256xf32>
    %330 = arith.mulf %326, %329 : vector<4x256xf32>
    %331 = arith.addf %321, %330 : vector<4x256xf32>
    %c77 = arith.constant 77 : index
    %c0_109 = arith.constant 0 : index
    %332 = vector.load %arg4[%c77, %c0_109] : memref<98x256xf32, #tpu.memory_space<vmem>>, vector<1x256xf32>
    %333 = vector.broadcast %332 : vector<1x256xf32> to vector<4x256xf32>
    %334 = arith.mulf %327, %333 : vector<4x256xf32>
    %335 = arith.addf %325, %334 : vector<4x256xf32>
    %c242_i32 = arith.constant 242 : i32
    %336 = tpu.dynamic_rotate %42 by %c242_i32 dim 1 : vector<4x256xf32>, i32 -> vector<4x256xf32>
    %c242_i32_110 = arith.constant 242 : i32
    %337 = tpu.dynamic_rotate %45 by %c242_i32_110 dim 1 : vector<4x256xf32>, i32 -> vector<4x256xf32>
    %c29 = arith.constant 29 : index
    %c0_111 = arith.constant 0 : index
    %338 = vector.load %arg4[%c29, %c0_111] : memref<98x256xf32, #tpu.memory_space<vmem>>, vector<1x256xf32>
    %339 = vector.broadcast %338 : vector<1x256xf32> to vector<4x256xf32>
    %340 = arith.mulf %336, %339 : vector<4x256xf32>
    %341 = arith.addf %331, %340 : vector<4x256xf32>
    %c78 = arith.constant 78 : index
    %c0_112 = arith.constant 0 : index
    %342 = vector.load %arg4[%c78, %c0_112] : memref<98x256xf32, #tpu.memory_space<vmem>>, vector<1x256xf32>
    %343 = vector.broadcast %342 : vector<1x256xf32> to vector<4x256xf32>
    %344 = arith.mulf %337, %343 : vector<4x256xf32>
    %345 = arith.addf %335, %344 : vector<4x256xf32>
    %c241_i32 = arith.constant 241 : i32
    %346 = tpu.dynamic_rotate %42 by %c241_i32 dim 1 : vector<4x256xf32>, i32 -> vector<4x256xf32>
    %c241_i32_113 = arith.constant 241 : i32
    %347 = tpu.dynamic_rotate %45 by %c241_i32_113 dim 1 : vector<4x256xf32>, i32 -> vector<4x256xf32>
    %c30 = arith.constant 30 : index
    %c0_114 = arith.constant 0 : index
    %348 = vector.load %arg4[%c30, %c0_114] : memref<98x256xf32, #tpu.memory_space<vmem>>, vector<1x256xf32>
    %349 = vector.broadcast %348 : vector<1x256xf32> to vector<4x256xf32>
    %350 = arith.mulf %346, %349 : vector<4x256xf32>
    %351 = arith.addf %341, %350 : vector<4x256xf32>
    %c79 = arith.constant 79 : index
    %c0_115 = arith.constant 0 : index
    %352 = vector.load %arg4[%c79, %c0_115] : memref<98x256xf32, #tpu.memory_space<vmem>>, vector<1x256xf32>
    %353 = vector.broadcast %352 : vector<1x256xf32> to vector<4x256xf32>
    %354 = arith.mulf %347, %353 : vector<4x256xf32>
    %355 = arith.addf %345, %354 : vector<4x256xf32>
    %c240_i32 = arith.constant 240 : i32
    %356 = tpu.dynamic_rotate %42 by %c240_i32 dim 1 : vector<4x256xf32>, i32 -> vector<4x256xf32>
    %c240_i32_116 = arith.constant 240 : i32
    %357 = tpu.dynamic_rotate %45 by %c240_i32_116 dim 1 : vector<4x256xf32>, i32 -> vector<4x256xf32>
    %c31 = arith.constant 31 : index
    %c0_117 = arith.constant 0 : index
    %358 = vector.load %arg4[%c31, %c0_117] : memref<98x256xf32, #tpu.memory_space<vmem>>, vector<1x256xf32>
    %359 = vector.broadcast %358 : vector<1x256xf32> to vector<4x256xf32>
    %360 = arith.mulf %356, %359 : vector<4x256xf32>
    %361 = arith.addf %351, %360 : vector<4x256xf32>
    %c80 = arith.constant 80 : index
    %c0_118 = arith.constant 0 : index
    %362 = vector.load %arg4[%c80, %c0_118] : memref<98x256xf32, #tpu.memory_space<vmem>>, vector<1x256xf32>
    %363 = vector.broadcast %362 : vector<1x256xf32> to vector<4x256xf32>
    %364 = arith.mulf %357, %363 : vector<4x256xf32>
    %365 = arith.addf %355, %364 : vector<4x256xf32>
    %c239_i32 = arith.constant 239 : i32
    %366 = tpu.dynamic_rotate %42 by %c239_i32 dim 1 : vector<4x256xf32>, i32 -> vector<4x256xf32>
    %c239_i32_119 = arith.constant 239 : i32
    %367 = tpu.dynamic_rotate %45 by %c239_i32_119 dim 1 : vector<4x256xf32>, i32 -> vector<4x256xf32>
    %c32 = arith.constant 32 : index
    %c0_120 = arith.constant 0 : index
    %368 = vector.load %arg4[%c32, %c0_120] : memref<98x256xf32, #tpu.memory_space<vmem>>, vector<1x256xf32>
    %369 = vector.broadcast %368 : vector<1x256xf32> to vector<4x256xf32>
    %370 = arith.mulf %366, %369 : vector<4x256xf32>
    %371 = arith.addf %361, %370 : vector<4x256xf32>
    %c81 = arith.constant 81 : index
    %c0_121 = arith.constant 0 : index
    %372 = vector.load %arg4[%c81, %c0_121] : memref<98x256xf32, #tpu.memory_space<vmem>>, vector<1x256xf32>
    %373 = vector.broadcast %372 : vector<1x256xf32> to vector<4x256xf32>
    %374 = arith.mulf %367, %373 : vector<4x256xf32>
    %375 = arith.addf %365, %374 : vector<4x256xf32>
    %c238_i32 = arith.constant 238 : i32
    %376 = tpu.dynamic_rotate %42 by %c238_i32 dim 1 : vector<4x256xf32>, i32 -> vector<4x256xf32>
    %c238_i32_122 = arith.constant 238 : i32
    %377 = tpu.dynamic_rotate %45 by %c238_i32_122 dim 1 : vector<4x256xf32>, i32 -> vector<4x256xf32>
    %c33 = arith.constant 33 : index
    %c0_123 = arith.constant 0 : index
    %378 = vector.load %arg4[%c33, %c0_123] : memref<98x256xf32, #tpu.memory_space<vmem>>, vector<1x256xf32>
    %379 = vector.broadcast %378 : vector<1x256xf32> to vector<4x256xf32>
    %380 = arith.mulf %376, %379 : vector<4x256xf32>
    %381 = arith.addf %371, %380 : vector<4x256xf32>
    %c82 = arith.constant 82 : index
    %c0_124 = arith.constant 0 : index
    %382 = vector.load %arg4[%c82, %c0_124] : memref<98x256xf32, #tpu.memory_space<vmem>>, vector<1x256xf32>
    %383 = vector.broadcast %382 : vector<1x256xf32> to vector<4x256xf32>
    %384 = arith.mulf %377, %383 : vector<4x256xf32>
    %385 = arith.addf %375, %384 : vector<4x256xf32>
    %c237_i32 = arith.constant 237 : i32
    %386 = tpu.dynamic_rotate %42 by %c237_i32 dim 1 : vector<4x256xf32>, i32 -> vector<4x256xf32>
    %c237_i32_125 = arith.constant 237 : i32
    %387 = tpu.dynamic_rotate %45 by %c237_i32_125 dim 1 : vector<4x256xf32>, i32 -> vector<4x256xf32>
    %c34 = arith.constant 34 : index
    %c0_126 = arith.constant 0 : index
    %388 = vector.load %arg4[%c34, %c0_126] : memref<98x256xf32, #tpu.memory_space<vmem>>, vector<1x256xf32>
    %389 = vector.broadcast %388 : vector<1x256xf32> to vector<4x256xf32>
    %390 = arith.mulf %386, %389 : vector<4x256xf32>
    %391 = arith.addf %381, %390 : vector<4x256xf32>
    %c83 = arith.constant 83 : index
    %c0_127 = arith.constant 0 : index
    %392 = vector.load %arg4[%c83, %c0_127] : memref<98x256xf32, #tpu.memory_space<vmem>>, vector<1x256xf32>
    %393 = vector.broadcast %392 : vector<1x256xf32> to vector<4x256xf32>
    %394 = arith.mulf %387, %393 : vector<4x256xf32>
    %395 = arith.addf %385, %394 : vector<4x256xf32>
    %c227_i32 = arith.constant 227 : i32
    %396 = tpu.dynamic_rotate %42 by %c227_i32 dim 1 : vector<4x256xf32>, i32 -> vector<4x256xf32>
    %c227_i32_128 = arith.constant 227 : i32
    %397 = tpu.dynamic_rotate %45 by %c227_i32_128 dim 1 : vector<4x256xf32>, i32 -> vector<4x256xf32>
    %c35 = arith.constant 35 : index
    %c0_129 = arith.constant 0 : index
    %398 = vector.load %arg4[%c35, %c0_129] : memref<98x256xf32, #tpu.memory_space<vmem>>, vector<1x256xf32>
    %399 = vector.broadcast %398 : vector<1x256xf32> to vector<4x256xf32>
    %400 = arith.mulf %396, %399 : vector<4x256xf32>
    %401 = arith.addf %391, %400 : vector<4x256xf32>
    %c84 = arith.constant 84 : index
    %c0_130 = arith.constant 0 : index
    %402 = vector.load %arg4[%c84, %c0_130] : memref<98x256xf32, #tpu.memory_space<vmem>>, vector<1x256xf32>
    %403 = vector.broadcast %402 : vector<1x256xf32> to vector<4x256xf32>
    %404 = arith.mulf %397, %403 : vector<4x256xf32>
    %405 = arith.addf %395, %404 : vector<4x256xf32>
    %c226_i32 = arith.constant 226 : i32
    %406 = tpu.dynamic_rotate %42 by %c226_i32 dim 1 : vector<4x256xf32>, i32 -> vector<4x256xf32>
    %c226_i32_131 = arith.constant 226 : i32
    %407 = tpu.dynamic_rotate %45 by %c226_i32_131 dim 1 : vector<4x256xf32>, i32 -> vector<4x256xf32>
    %c36 = arith.constant 36 : index
    %c0_132 = arith.constant 0 : index
    %408 = vector.load %arg4[%c36, %c0_132] : memref<98x256xf32, #tpu.memory_space<vmem>>, vector<1x256xf32>
    %409 = vector.broadcast %408 : vector<1x256xf32> to vector<4x256xf32>
    %410 = arith.mulf %406, %409 : vector<4x256xf32>
    %411 = arith.addf %401, %410 : vector<4x256xf32>
    %c85 = arith.constant 85 : index
    %c0_133 = arith.constant 0 : index
    %412 = vector.load %arg4[%c85, %c0_133] : memref<98x256xf32, #tpu.memory_space<vmem>>, vector<1x256xf32>
    %413 = vector.broadcast %412 : vector<1x256xf32> to vector<4x256xf32>
    %414 = arith.mulf %407, %413 : vector<4x256xf32>
    %415 = arith.addf %405, %414 : vector<4x256xf32>
    %c225_i32 = arith.constant 225 : i32
    %416 = tpu.dynamic_rotate %42 by %c225_i32 dim 1 : vector<4x256xf32>, i32 -> vector<4x256xf32>
    %c225_i32_134 = arith.constant 225 : i32
    %417 = tpu.dynamic_rotate %45 by %c225_i32_134 dim 1 : vector<4x256xf32>, i32 -> vector<4x256xf32>
    %c37 = arith.constant 37 : index
    %c0_135 = arith.constant 0 : index
    %418 = vector.load %arg4[%c37, %c0_135] : memref<98x256xf32, #tpu.memory_space<vmem>>, vector<1x256xf32>
    %419 = vector.broadcast %418 : vector<1x256xf32> to vector<4x256xf32>
    %420 = arith.mulf %416, %419 : vector<4x256xf32>
    %421 = arith.addf %411, %420 : vector<4x256xf32>
    %c86 = arith.constant 86 : index
    %c0_136 = arith.constant 0 : index
    %422 = vector.load %arg4[%c86, %c0_136] : memref<98x256xf32, #tpu.memory_space<vmem>>, vector<1x256xf32>
    %423 = vector.broadcast %422 : vector<1x256xf32> to vector<4x256xf32>
    %424 = arith.mulf %417, %423 : vector<4x256xf32>
    %425 = arith.addf %415, %424 : vector<4x256xf32>
    %c224_i32 = arith.constant 224 : i32
    %426 = tpu.dynamic_rotate %42 by %c224_i32 dim 1 : vector<4x256xf32>, i32 -> vector<4x256xf32>
    %c224_i32_137 = arith.constant 224 : i32
    %427 = tpu.dynamic_rotate %45 by %c224_i32_137 dim 1 : vector<4x256xf32>, i32 -> vector<4x256xf32>
    %c38 = arith.constant 38 : index
    %c0_138 = arith.constant 0 : index
    %428 = vector.load %arg4[%c38, %c0_138] : memref<98x256xf32, #tpu.memory_space<vmem>>, vector<1x256xf32>
    %429 = vector.broadcast %428 : vector<1x256xf32> to vector<4x256xf32>
    %430 = arith.mulf %426, %429 : vector<4x256xf32>
    %431 = arith.addf %421, %430 : vector<4x256xf32>
    %c87 = arith.constant 87 : index
    %c0_139 = arith.constant 0 : index
    %432 = vector.load %arg4[%c87, %c0_139] : memref<98x256xf32, #tpu.memory_space<vmem>>, vector<1x256xf32>
    %433 = vector.broadcast %432 : vector<1x256xf32> to vector<4x256xf32>
    %434 = arith.mulf %427, %433 : vector<4x256xf32>
    %435 = arith.addf %425, %434 : vector<4x256xf32>
    %c223_i32 = arith.constant 223 : i32
    %436 = tpu.dynamic_rotate %42 by %c223_i32 dim 1 : vector<4x256xf32>, i32 -> vector<4x256xf32>
    %c223_i32_140 = arith.constant 223 : i32
    %437 = tpu.dynamic_rotate %45 by %c223_i32_140 dim 1 : vector<4x256xf32>, i32 -> vector<4x256xf32>
    %c39 = arith.constant 39 : index
    %c0_141 = arith.constant 0 : index
    %438 = vector.load %arg4[%c39, %c0_141] : memref<98x256xf32, #tpu.memory_space<vmem>>, vector<1x256xf32>
    %439 = vector.broadcast %438 : vector<1x256xf32> to vector<4x256xf32>
    %440 = arith.mulf %436, %439 : vector<4x256xf32>
    %441 = arith.addf %431, %440 : vector<4x256xf32>
    %c88 = arith.constant 88 : index
    %c0_142 = arith.constant 0 : index
    %442 = vector.load %arg4[%c88, %c0_142] : memref<98x256xf32, #tpu.memory_space<vmem>>, vector<1x256xf32>
    %443 = vector.broadcast %442 : vector<1x256xf32> to vector<4x256xf32>
    %444 = arith.mulf %437, %443 : vector<4x256xf32>
    %445 = arith.addf %435, %444 : vector<4x256xf32>
    %c222_i32 = arith.constant 222 : i32
    %446 = tpu.dynamic_rotate %42 by %c222_i32 dim 1 : vector<4x256xf32>, i32 -> vector<4x256xf32>
    %c222_i32_143 = arith.constant 222 : i32
    %447 = tpu.dynamic_rotate %45 by %c222_i32_143 dim 1 : vector<4x256xf32>, i32 -> vector<4x256xf32>
    %c40 = arith.constant 40 : index
    %c0_144 = arith.constant 0 : index
    %448 = vector.load %arg4[%c40, %c0_144] : memref<98x256xf32, #tpu.memory_space<vmem>>, vector<1x256xf32>
    %449 = vector.broadcast %448 : vector<1x256xf32> to vector<4x256xf32>
    %450 = arith.mulf %446, %449 : vector<4x256xf32>
    %451 = arith.addf %441, %450 : vector<4x256xf32>
    %c89 = arith.constant 89 : index
    %c0_145 = arith.constant 0 : index
    %452 = vector.load %arg4[%c89, %c0_145] : memref<98x256xf32, #tpu.memory_space<vmem>>, vector<1x256xf32>
    %453 = vector.broadcast %452 : vector<1x256xf32> to vector<4x256xf32>
    %454 = arith.mulf %447, %453 : vector<4x256xf32>
    %455 = arith.addf %445, %454 : vector<4x256xf32>
    %c221_i32 = arith.constant 221 : i32
    %456 = tpu.dynamic_rotate %42 by %c221_i32 dim 1 : vector<4x256xf32>, i32 -> vector<4x256xf32>
    %c221_i32_146 = arith.constant 221 : i32
    %457 = tpu.dynamic_rotate %45 by %c221_i32_146 dim 1 : vector<4x256xf32>, i32 -> vector<4x256xf32>
    %c41 = arith.constant 41 : index
    %c0_147 = arith.constant 0 : index
    %458 = vector.load %arg4[%c41, %c0_147] : memref<98x256xf32, #tpu.memory_space<vmem>>, vector<1x256xf32>
    %459 = vector.broadcast %458 : vector<1x256xf32> to vector<4x256xf32>
    %460 = arith.mulf %456, %459 : vector<4x256xf32>
    %461 = arith.addf %451, %460 : vector<4x256xf32>
    %c90 = arith.constant 90 : index
    %c0_148 = arith.constant 0 : index
    %462 = vector.load %arg4[%c90, %c0_148] : memref<98x256xf32, #tpu.memory_space<vmem>>, vector<1x256xf32>
    %463 = vector.broadcast %462 : vector<1x256xf32> to vector<4x256xf32>
    %464 = arith.mulf %457, %463 : vector<4x256xf32>
    %465 = arith.addf %455, %464 : vector<4x256xf32>
    %c211_i32 = arith.constant 211 : i32
    %466 = tpu.dynamic_rotate %42 by %c211_i32 dim 1 : vector<4x256xf32>, i32 -> vector<4x256xf32>
    %c211_i32_149 = arith.constant 211 : i32
    %467 = tpu.dynamic_rotate %45 by %c211_i32_149 dim 1 : vector<4x256xf32>, i32 -> vector<4x256xf32>
    %c42 = arith.constant 42 : index
    %c0_150 = arith.constant 0 : index
    %468 = vector.load %arg4[%c42, %c0_150] : memref<98x256xf32, #tpu.memory_space<vmem>>, vector<1x256xf32>
    %469 = vector.broadcast %468 : vector<1x256xf32> to vector<4x256xf32>
    %470 = arith.mulf %466, %469 : vector<4x256xf32>
    %471 = arith.addf %461, %470 : vector<4x256xf32>
    %c91 = arith.constant 91 : index
    %c0_151 = arith.constant 0 : index
    %472 = vector.load %arg4[%c91, %c0_151] : memref<98x256xf32, #tpu.memory_space<vmem>>, vector<1x256xf32>
    %473 = vector.broadcast %472 : vector<1x256xf32> to vector<4x256xf32>
    %474 = arith.mulf %467, %473 : vector<4x256xf32>
    %475 = arith.addf %465, %474 : vector<4x256xf32>
    %c210_i32 = arith.constant 210 : i32
    %476 = tpu.dynamic_rotate %42 by %c210_i32 dim 1 : vector<4x256xf32>, i32 -> vector<4x256xf32>
    %c210_i32_152 = arith.constant 210 : i32
    %477 = tpu.dynamic_rotate %45 by %c210_i32_152 dim 1 : vector<4x256xf32>, i32 -> vector<4x256xf32>
    %c43 = arith.constant 43 : index
    %c0_153 = arith.constant 0 : index
    %478 = vector.load %arg4[%c43, %c0_153] : memref<98x256xf32, #tpu.memory_space<vmem>>, vector<1x256xf32>
    %479 = vector.broadcast %478 : vector<1x256xf32> to vector<4x256xf32>
    %480 = arith.mulf %476, %479 : vector<4x256xf32>
    %481 = arith.addf %471, %480 : vector<4x256xf32>
    %c92 = arith.constant 92 : index
    %c0_154 = arith.constant 0 : index
    %482 = vector.load %arg4[%c92, %c0_154] : memref<98x256xf32, #tpu.memory_space<vmem>>, vector<1x256xf32>
    %483 = vector.broadcast %482 : vector<1x256xf32> to vector<4x256xf32>
    %484 = arith.mulf %477, %483 : vector<4x256xf32>
    %485 = arith.addf %475, %484 : vector<4x256xf32>
    %c209_i32 = arith.constant 209 : i32
    %486 = tpu.dynamic_rotate %42 by %c209_i32 dim 1 : vector<4x256xf32>, i32 -> vector<4x256xf32>
    %c209_i32_155 = arith.constant 209 : i32
    %487 = tpu.dynamic_rotate %45 by %c209_i32_155 dim 1 : vector<4x256xf32>, i32 -> vector<4x256xf32>
    %c44 = arith.constant 44 : index
    %c0_156 = arith.constant 0 : index
    %488 = vector.load %arg4[%c44, %c0_156] : memref<98x256xf32, #tpu.memory_space<vmem>>, vector<1x256xf32>
    %489 = vector.broadcast %488 : vector<1x256xf32> to vector<4x256xf32>
    %490 = arith.mulf %486, %489 : vector<4x256xf32>
    %491 = arith.addf %481, %490 : vector<4x256xf32>
    %c93 = arith.constant 93 : index
    %c0_157 = arith.constant 0 : index
    %492 = vector.load %arg4[%c93, %c0_157] : memref<98x256xf32, #tpu.memory_space<vmem>>, vector<1x256xf32>
    %493 = vector.broadcast %492 : vector<1x256xf32> to vector<4x256xf32>
    %494 = arith.mulf %487, %493 : vector<4x256xf32>
    %495 = arith.addf %485, %494 : vector<4x256xf32>
    %c208_i32 = arith.constant 208 : i32
    %496 = tpu.dynamic_rotate %42 by %c208_i32 dim 1 : vector<4x256xf32>, i32 -> vector<4x256xf32>
    %c208_i32_158 = arith.constant 208 : i32
    %497 = tpu.dynamic_rotate %45 by %c208_i32_158 dim 1 : vector<4x256xf32>, i32 -> vector<4x256xf32>
    %c45 = arith.constant 45 : index
    %c0_159 = arith.constant 0 : index
    %498 = vector.load %arg4[%c45, %c0_159] : memref<98x256xf32, #tpu.memory_space<vmem>>, vector<1x256xf32>
    %499 = vector.broadcast %498 : vector<1x256xf32> to vector<4x256xf32>
    %500 = arith.mulf %496, %499 : vector<4x256xf32>
    %501 = arith.addf %491, %500 : vector<4x256xf32>
    %c94 = arith.constant 94 : index
    %c0_160 = arith.constant 0 : index
    %502 = vector.load %arg4[%c94, %c0_160] : memref<98x256xf32, #tpu.memory_space<vmem>>, vector<1x256xf32>
    %503 = vector.broadcast %502 : vector<1x256xf32> to vector<4x256xf32>
    %504 = arith.mulf %497, %503 : vector<4x256xf32>
    %505 = arith.addf %495, %504 : vector<4x256xf32>
    %c207_i32 = arith.constant 207 : i32
    %506 = tpu.dynamic_rotate %42 by %c207_i32 dim 1 : vector<4x256xf32>, i32 -> vector<4x256xf32>
    %c207_i32_161 = arith.constant 207 : i32
    %507 = tpu.dynamic_rotate %45 by %c207_i32_161 dim 1 : vector<4x256xf32>, i32 -> vector<4x256xf32>
    %c46 = arith.constant 46 : index
    %c0_162 = arith.constant 0 : index
    %508 = vector.load %arg4[%c46, %c0_162] : memref<98x256xf32, #tpu.memory_space<vmem>>, vector<1x256xf32>
    %509 = vector.broadcast %508 : vector<1x256xf32> to vector<4x256xf32>
    %510 = arith.mulf %506, %509 : vector<4x256xf32>
    %511 = arith.addf %501, %510 : vector<4x256xf32>
    %c95 = arith.constant 95 : index
    %c0_163 = arith.constant 0 : index
    %512 = vector.load %arg4[%c95, %c0_163] : memref<98x256xf32, #tpu.memory_space<vmem>>, vector<1x256xf32>
    %513 = vector.broadcast %512 : vector<1x256xf32> to vector<4x256xf32>
    %514 = arith.mulf %507, %513 : vector<4x256xf32>
    %515 = arith.addf %505, %514 : vector<4x256xf32>
    %c206_i32 = arith.constant 206 : i32
    %516 = tpu.dynamic_rotate %42 by %c206_i32 dim 1 : vector<4x256xf32>, i32 -> vector<4x256xf32>
    %c206_i32_164 = arith.constant 206 : i32
    %517 = tpu.dynamic_rotate %45 by %c206_i32_164 dim 1 : vector<4x256xf32>, i32 -> vector<4x256xf32>
    %c47 = arith.constant 47 : index
    %c0_165 = arith.constant 0 : index
    %518 = vector.load %arg4[%c47, %c0_165] : memref<98x256xf32, #tpu.memory_space<vmem>>, vector<1x256xf32>
    %519 = vector.broadcast %518 : vector<1x256xf32> to vector<4x256xf32>
    %520 = arith.mulf %516, %519 : vector<4x256xf32>
    %521 = arith.addf %511, %520 : vector<4x256xf32>
    %c96 = arith.constant 96 : index
    %c0_166 = arith.constant 0 : index
    %522 = vector.load %arg4[%c96, %c0_166] : memref<98x256xf32, #tpu.memory_space<vmem>>, vector<1x256xf32>
    %523 = vector.broadcast %522 : vector<1x256xf32> to vector<4x256xf32>
    %524 = arith.mulf %517, %523 : vector<4x256xf32>
    %525 = arith.addf %515, %524 : vector<4x256xf32>
    %c205_i32 = arith.constant 205 : i32
    %526 = tpu.dynamic_rotate %42 by %c205_i32 dim 1 : vector<4x256xf32>, i32 -> vector<4x256xf32>
    %c205_i32_167 = arith.constant 205 : i32
    %527 = tpu.dynamic_rotate %45 by %c205_i32_167 dim 1 : vector<4x256xf32>, i32 -> vector<4x256xf32>
    %c48 = arith.constant 48 : index
    %c0_168 = arith.constant 0 : index
    %528 = vector.load %arg4[%c48, %c0_168] : memref<98x256xf32, #tpu.memory_space<vmem>>, vector<1x256xf32>
    %529 = vector.broadcast %528 : vector<1x256xf32> to vector<4x256xf32>
    %530 = arith.mulf %526, %529 : vector<4x256xf32>
    %531 = arith.addf %521, %530 : vector<4x256xf32>
    %c97 = arith.constant 97 : index
    %c0_169 = arith.constant 0 : index
    %532 = vector.load %arg4[%c97, %c0_169] : memref<98x256xf32, #tpu.memory_space<vmem>>, vector<1x256xf32>
    %533 = vector.broadcast %532 : vector<1x256xf32> to vector<4x256xf32>
    %534 = arith.mulf %527, %533 : vector<4x256xf32>
    %535 = arith.addf %525, %534 : vector<4x256xf32>
    %536 = arith.addf %531, %535 : vector<4x256xf32>
    %537 = arith.negf %536 : vector<4x256xf32>
    %538 = math.exp %537 : vector<4x256xf32>
    %cst_170 = arith.constant 1.000000e+00 : f32
    %539 = vector.broadcast %cst_170 : f32 to vector<4x256xf32>
    %540 = arith.addf %539, %538 : vector<4x256xf32>
    %541 = arith.divf %539, %540 : vector<4x256xf32>
    %542 = vector.shape_cast %541 : vector<4x256xf32> to vector<4x1x256xf32>
    %543 = vector.broadcast %542 : vector<4x1x256xf32> to vector<4x32x256xf32>
    %544 = arith.mulf %41, %543 : vector<4x32x256xf32>
    %c0_171 = arith.constant 0 : index
    %c0_172 = arith.constant 0 : index
    %c0_173 = arith.constant 0 : index
    %545 = vector.load %arg5[%c0_171, %c0_172, %c0_173] : memref<4x32x256xf32, #tpu.memory_space<vmem>>, vector<4x32x256xf32>
    tpu.vector_store %arg5[%c0_171, %c0_172, %c0_173], %544 {strides = array<i32>} : memref<4x32x256xf32, #tpu.memory_space<vmem>>, vector<4x32x256xf32>,
    return
  }
  func.func @transform_0(%arg0: i32) -> (i32, i32, i32) {
    %c0_i32 = arith.constant 0 : i32
    %c0_i32_0 = arith.constant 0 : i32
    %c0_i32_1 = arith.constant 0 : i32
    return %arg0, %c0_i32, %c0_i32_0 : i32, i32, i32
  }
  func.func @transform_1(%arg0: i32) -> (i32, i32) {
    %c0_i32 = arith.constant 0 : i32
    %c0_i32_0 = arith.constant 0 : i32
    %c0_i32_1 = arith.constant 0 : i32
    return %c0_i32, %c0_i32_0 : i32, i32
  }
  func.func @transform_2(%arg0: i32) -> (i32, i32) {
    %c0_i32 = arith.constant 0 : i32
    %c0_i32_0 = arith.constant 0 : i32
    %c0_i32_1 = arith.constant 0 : i32
    return %c0_i32, %c0_i32_0 : i32, i32
  }
  func.func @transform_3(%arg0: i32) -> (i32, i32) {
    %c0_i32 = arith.constant 0 : i32
    %c0_i32_0 = arith.constant 0 : i32
    %c0_i32_1 = arith.constant 0 : i32
    return %c0_i32, %c0_i32_0 : i32, i32
  }
  func.func @transform_4(%arg0: i32) -> (i32, i32, i32) {
    %c0_i32 = arith.constant 0 : i32
    %c0_i32_0 = arith.constant 0 : i32
    %c0_i32_1 = arith.constant 0 : i32
    return %arg0, %c0_i32, %c0_i32_0 : i32, i32, i32
  }
}

</mosaic_0001>

<bundles_post_ra>
// kernel: tpu_custom_call.1
= control target key start
LH: loop header
LB: loop body
LE: loop exit
PB: predicated region body
PF: predicated region fallthrough
CT: control target
= control target key end

     0   :  { %s6613_s0 = inlined_call_operand.hbm [shape: f32[8,32,256], index: 0, kind: input, shape index: {}]   ;;  %s6614_s1 = inlined_call_operand.hbm [shape: f32[2,32], index: 1, kind: input, shape index: {}]   ;;  %s6615_s2 = inlined_call_operand.vmem [shape: f32[2,32], index: 2, kind: input, shape index: {}]   ;;  %s6616_s3 = inlined_call_operand.hbm [shape: f32[98,256], index: 3, kind: input, shape index: {}]   ;;  %s6617_s4 = inlined_call_operand.hbm [shape: f32[8,32,256], index: 4, kind: output, shape index: {}]  }
   0x1   :  { %6813 = sst [smem:[#allocation125_spill]] %s6614_s1 }
   0x2   :  { %9 = vsyncpa [#allocation3], 0 }
   0x3   :  { %11 = vsyncpa [#allocation3 + $0x1], 0 }
   0x4   :  { %12 = vsyncpa [#allocation6], 0 }
   0x5   :  { %13 = vsyncpa [#allocation4], 0 }
   0x6   :  { %15 = vsyncpa [#allocation4 + $0x1], 0  ;;  %s3925_s15 = smov 0   ;;  %s3927_s16 = smov 0  }
   0x7   :  { %s3929_s17 = smov 0   ;;  %s3931_s18 = smov 0  }
   0x8 LB: > { %s3946_s19 = sadd.s32 4294967295, %s3842_s18   ;;  %s3532_s20 = sadd.s32 4294967294, %s3842_s18   ;;  %s3842_s18 = sphi %s3931_s18, %s7163_s18   ;;  %s3838_s17 = sphi %s3929_s17, %s7162_s17   ;;  %s3834_s16 = sphi %s3927_s16, %s7161_s16   ;;  %s3830_s15 = sphi %s3925_s15, %s7160_s15  }
   0x9   : > { %s3950_s21 = sadd.s32 1, %s3842_s18   ;;  %s28_s22 = sadd.s32 1, %s3838_s17 }
   0xa   : > { %s25_s23 = ssub.s32 %s3842_s18, %s3950_s21  ;;  %p35_p0 = scmp.ne.s32.totalorder %s3838_s17, %s3834_s16 }
   0xb   : > { %p26_p1 = scmp.eq.s32.totalorder %s25_s23, 0  ;;  %p36_p2 = scmp.eq.s32.totalorder %s3842_s18, 0 }
   0xc   : > { %p41_p3 = scmp.ne.s32.totalorder %s3834_s16, %s3830_s15  ;;  %p6618_p4 = scmp.eq.s32.totalorder %s3946_s19, 0 }
   0xd   : > { %s3962_s24 = scalar_select %p26_p1, %s3838_s17, %s28_s22  }
   0xe   : > { %p3964_p5 = por %p36_p2, %p35_p0  ;;  %p3970_p6 = por %p6618_p4, %p41_p3 }
   0xf   : > { %p128_p7 = scmp.eq.s32.totalorder %s3946_s19, 1  ;;  %p134_p8 = scmp.eq.s32.totalorder %s3532_s20, 1 }
  0x10   : > { %s6815_s26 = scalar_select %p3970_p6, 1, 0 }
  0x11   : > { %p3533_p9 = scmp.ge.s32.totalorder %s3842_s18, 1  ;;  %p141_p10 = scmp.lt.s32.totalorder %s3842_s18, 3 }
  0x12   : > { %p3977_p11 = por %p128_p7, %p35_p0  ;;  %p3981_p12 = por %p134_p8, %p41_p3 }
  0x13   : > { %p3985_p13 = pnand %p3533_p9, %p141_p10  ;;  %s3844_s30 = smov [#allocation5]  }
  0x14   : > { %s6816_s27 = scalar_select %p3977_p11, 1, 0 }
  0x15   : > { %s6817_s28 = scalar_select %p3981_p12, 1, 0 }
  0x16   : > { %s6818_s29 = scalar_select %p3985_p13, 1, 0 }
  0x17   : > { %p3575_p2 = pneg %p3985_p13  ;;  %s154_s5 = sshll.u32 %s3844_s30, 4  ;;  %s155_s5 = int_to_ptr.vmem [resolvable:$true] %s154_s5 }
  0x18   : > { %p3592_p4 = scmp.lt.s32.totalorder %s3842_s18, 2  ;;  %p6819_p0 = scmp.eq.s32.totalorder %s3946_s19, 0 }
  0x19   : > { %s3845_s8 = smov [#allocation7]   ;;  %s3705_s10 = scalar_lea.vmem %s155_s5, 32 }
  0x1a   : > { %p3995_p7 = pnand %p3575_p2, %p6819_p0  ;;  %p4001_p3 = pnand %p3592_p4, %p3964_p5 }
  0x1b   : > { %s167_s9 = sshll.u32 %s3845_s8, 4  ;;  %p3706_p9 = scmp.ne.s32.totalorder %s155_s5, %s3705_s10  ;;  %s168_s9 = int_to_ptr.vmem [resolvable:$true] %s167_s9 }
  0x1c   : > { %p3696_p8 = pneg %p3995_p7  ;;  %p3713_p0 = scmp.lt.s32.totalorder %s155_s5, %s155_s5 }
  0x1d   : > { %p3714_p1 = scmp.lt.s32.totalorder %s3705_s10, %s3705_s10 }
  0x1e   : > { %p3708_p10 = pnand %p3706_p9, %p3696_p8 }
  0x1f   : > { %p3715_p12 = por %p3714_p1, %p3713_p0 }
  0x20   : > { %p3709_p2 = pneg %p3708_p10 }
  0x22   : > { %p3716_p11 = pnand %p3715_p12, %p3709_p2 }
  0x24   : > { %3719 = shalt.err (!%p3716_p11)
}
  0x25   : > { %s6822_s1 = sld [smem:[#allocation125_spill]]  ;;  %s181_s13 = sand.u32 1, %s3838_s17  }
  0x26   : > { %s3731_s14 = scalar_lea.vmem %s168_s9, 3328  ;;  %p3739_p10 = scmp.lt.s32.totalorder %s168_s9, %s168_s9 }
  0x27   : > { %p3732_p4 = scmp.ne.s32.totalorder %s168_s9, %s3731_s14  ;;  %p3740_p6 = scmp.lt.s32.totalorder %s3731_s14, %s3731_s14 }
  0x29   : > { %p3734_p5 = pnand %p3732_p4, %p3696_p8  ;;  %p3741_p1 = por %p3740_p6, %p3739_p10 }
  0x2b   : > { %3578 = dma.hbm_to_vmem [thread:$0]  (!%p3995_p7), %s6822_s1, 32, %s155_s5, [#allocation6]  }
  0x2c   : > { %p3735_p9 = pneg %p3734_p5 }
  0x2e   : > { %p3742_p12 = pnand %p3741_p1, %p3735_p9 }
  0x30   : > { %3745 = shalt.err (!%p3742_p12)
}
  0x31   : > { %s3846_s20 = smov 256   ;;  %s3847_s22 = smov 16  }
  0x32   : > { %3581 = dma.hbm_to_vmem [thread:$0]  (!%p3995_p7), %s6616_s3, 3328, %s168_s9, [#allocation6], %s3846_s20, %s3846_s20, %s3847_s22  }
  0x33   : > { %s3537_s30 = sshll.u32 %s181_s13, 8  ;;  %s3560_s5 = sshll.u32 %s3842_s18, 12 }
  0x34   : > { %s4031_s11 = scalar_lea.hbm %s6613_s0, %s3560_s5  ;;  %s185_s12 = scalar_lea.vmem [#allocation2], %s3537_s30 }
  0x35   : > { %s193_s14 = sshll.u32 %s185_s12, 4  ;;  %s4035_s6 = scalar_lea.sflag [#allocation3], %s181_s13  ;;  %s4033_s14 = int_to_ptr.vmem [resolvable:$true] %s193_s14 }
  0x36   : > { %s3746_s1 = scalar_lea.hbm %s4031_s11, 4096  ;;  %p3748_p11 = pneg %p4001_p3 }
  0x37   : > { %p3747_p6 = scmp.ne.s32.totalorder %s4031_s11, %s3746_s1  ;;  %s3751_s25 = scalar_lea.hbm %s6613_s0, 8192 }
  0x38   : > { %p3752_p2 = scmp.lt.s32.totalorder %s4031_s11, %s6613_s0  ;;  %p3753_p0 = scmp.lt.s32.totalorder %s3751_s25, %s3746_s1 }
  0x39   : > { %p3749_p7 = pnand %p3748_p11, %p3747_p6 }
  0x3a   : > { %p3754_p4 = por %p3753_p0, %p3752_p2 }
  0x3b   : > { %p3750_p8 = pneg %p3749_p7 }
  0x3d   : > { %p3755_p5 = pnand %p3754_p4, %p3750_p8 }
  0x3f   : > { %3758 = shalt.err (!%p3755_p5)
}
  0x40   : > { %s3759_s13 = scalar_lea.vmem %s4033_s14, 4096  ;;  %s3848_s30 = smov [#allocation2]  }
  0x41   : > { %p3760_p9 = scmp.ne.s32.totalorder %s4033_s14, %s3759_s13  ;;  %s3764_s10 = sshll.u32 %s3848_s30, 4  ;;  %s3765_s10 = int_to_ptr.vmem [resolvable:$false] %s3764_s10 }
  0x42   : > { %s3766_s12 = scalar_lea.vmem %s3765_s10, 8192  ;;  %p3767_p12 = scmp.lt.s32.totalorder %s4033_s14, %s3765_s10 }
  0x43   : > { %p3762_p10 = pnand %p3760_p9, %p3748_p11  ;;  %p3768_p6 = scmp.lt.s32.totalorder %s3766_s12, %s3759_s13 }
  0x45   : > { %p3763_p1 = pneg %p3762_p10  ;;  %p3769_p7 = por %p3768_p6, %p3767_p12 }
  0x47   : > { %p3770_p13 = pnand %p3769_p7, %p3763_p1 }
  0x49   : > { %3773 = shalt.err (!%p3770_p13)
}
  0x4a   : > { %3585 = dma.hbm_to_vmem [thread:$0]  (!%p4001_p3), %s4031_s11, 4096, %s4033_s14, %s4035_s6, %s3846_s20, %s3846_s20, %s3847_s22  }
  0x4b   : > { %p6823_p11 = scmp.ne.s32.totalorder %s6818_s29, 0 }
  0x4d   : > { %205 = sbr.rel (%p6823_p11) target bundleno = 1242 (0x4da), region = 36 }
  0x52   : > { %s4062_s1 = sand.u32 1, %s3834_s16   ;;  %p6824_p13 = scmp.ne.s32.totalorder %s6815_s26, 0 }
  0x53   : > { %s6649_s9 = sshll.u32 %s4062_s1, 8  ;;  %s208_s23 = scalar_lea.sflag [#allocation3], %s4062_s1 }
  0x54   : > { %s4068_s7 = scalar_lea.vmem [#allocation2], %s6649_s9 }
  0x55   : > { %3817 = dma.done.wait (%p6824_p13), %s208_s23, 4096  }
  0x56   : > { %3819 = vsyncadd (%p6824_p13), %s208_s23, 4294963200  ;;  %p6825_p3 = scmp.eq.s32.totalorder %s3946_s19, 0 }
  0x58   : > { %3821 = dma.done.wait (%p6825_p3), [#allocation6], 3360   ;;  %p6826_p8 = pmov %p6825_p3 }
  0x59   : > { %v4079_v0 = vld [vmem:[%s4068_s7 + $0x20] sm:$0xff]  ;;  %v4082_v1 = vld [vmem:[%s4068_s7 + $0x28] sm:$0xff]  ;;  %v4093_v5 = vld [vmem:[%s4068_s7 + $0x10] sm:$0xff]  ;;  %vm417_vm0 = vcmask 130112   ;;  %vm424_vm1 = vcmask 195712   ;;  %vm431_vm2 = vcmask 261312  }
  0x5a   : > { %3823 = vsyncadd (%p6826_p8), [#allocation6], 4294963936  ;;  %v4085_v2 = vld [vmem:[%s4068_s7] sm:$0xff]  ;;  %v284_v3 = vmax.f32 %v4079_v0, %v4082_v1  ;;  %v4090_v4 = vld [vmem:[%s4068_s7 + $0x8] sm:$0xff]  ;;  %v332_v16 = vadd.f32 %v4082_v1, %v4079_v0  ;;  %vm490_vm3 = vcmask 1041409   ;;  %vm589_vm4 = vcmask 1045509  }
  0x5b   : > { %v4096_v6 = vld [vmem:[%s4068_s7 + $0x18] sm:$0xff]  ;;  %v278_v7 = vmax.f32 %v4085_v2, %v4090_v4  ;;  %v326_v8 = vadd.f32 %v4090_v4, %v4085_v2  ;;  %v4105_v10 = vld [vmem:[%s4068_s7 + $0x40] sm:$0xff]  ;;  %v4108_v11 = vld [vmem:[%s4068_s7 + $0x48] sm:$0xff]  ;;  %vm492_vm5 = vcmask 1042434   ;;  %vm591_vm6 = vcmask 1046534   ;;  %s3849_s11 = smov 51  }
  0x5c   : > { %285 = vmax.xlane.f32.xlu1 %v284_v3  ;;  %v281_v9 = vmax.f32 %v4093_v5, %v4096_v6  ;;  %v338_v12 = vadd.f32 %v4108_v11, %v4105_v10  ;;  %v329_v13 = vadd.f32 %v4096_v6, %v4093_v5  ;;  %v4115_v14 = vld [vmem:[%s4068_s7 + $0x50] sm:$0xff]  ;;  %v4118_v15 = vld [vmem:[%s4068_s7 + $0x58] sm:$0xff]  ;;  %v4125_v18 = vld [vmem:[%s4068_s7 + $0x80] sm:$0xff]  ;;  %v290_v26 = vmax.f32 %v4105_v10, %v4108_v11  ;;  %s3850_s14 = smov 50   ;;  %s3851_s6 = smov 49  }
  0x5d   : > { %279 = vmax.xlane.f32.xlu0 %v278_v7  ;;  %v341_v17 = vadd.f32 %v4118_v15, %v4115_v14  ;;  %v4128_v19 = vld [vmem:[%s4068_s7 + $0x88] sm:$0xff]  ;;  %v4131_v20 = vld [vmem:[%s4068_s7 + $0x60] sm:$0xff]  ;;  %v4141_v24 = vld [vmem:[%s4068_s7 + $0x90] sm:$0xff]  ;;  %v293_v31 = vmax.f32 %v4115_v14, %v4118_v15  ;;  %vm494_vm7 = vcmask 1043459   ;;  %vm593_vm8 = vcmask 1047559   ;;  %s3852_s25 = smov 48  }
  0x5e   : > { %v4134_v21 = vld [vmem:[%s4068_s7 + $0x68] sm:$0xff]  ;;  %v350_v22 = vadd.f32 %v4128_v19, %v4125_v18  ;;  %v4144_v25 = vld [vmem:[%s4068_s7 + $0x98] sm:$0xff]  ;;  %v4151_v28 = vld [vmem:[%s4068_s7 + $0x30] sm:$0xff]  ;;  %v302_v44 = vmax.f32 %v4125_v18, %v4128_v19  ;;  %vm596_vm9 = vcmask 1043456   ;;  %vm604_vm10 = vcmask 261120   ;;  %s3853_s5 = smov 47  }
  0x5f   : > { %v344_v23 = vadd.f32 %v4134_v21, %v4131_v20  ;;  %v353_v27 = vadd.f32 %v4144_v25, %v4141_v24  ;;  %v4154_v29 = vld [vmem:[%s4068_s7 + $0x38] sm:$0xff]  ;;  %v4161_v32 = vld [vmem:[%s4068_s7 + $0xa0] sm:$0xff]  ;;  %v4164_v33 = vld [vmem:[%s4068_s7 + $0xa8] sm:$0xff]  ;;  %v296_v45 = vmax.f32 %v4131_v20, %v4134_v21  ;;  %v305_v49 = vmax.f32 %v4141_v24, %v4144_v25  ;;  %s3854_s8 = smov 46   ;;  %s3855_s13 = smov 45  }
  0x60   : > { %327 = vadd.xlane.f32.xlu1 %v326_v8  ;;  %v335_v30 = vadd.f32 %v4154_v29, %v4151_v28  ;;  %v4167_v34 = vld [vmem:[%s4068_s7 + $0x70] sm:$0xff]  ;;  %v4170_v35 = vld [vmem:[%s4068_s7 + $0x78] sm:$0xff]  ;;  %v356_v36 = vadd.f32 %v4164_v33, %v4161_v32  ;;  %v4183_v40 = vld [vmem:[%s4068_s7 + $0xc0] sm:$0xff]  ;;  %v287_v52 = vmax.f32 %v4151_v28, %v4154_v29  ;;  %v308_v54 = vmax.f32 %v4161_v32, %v4164_v33  ;;  %s3856_s30 = smov 35   ;;  %s3857_s10 = smov 34  }
  0x61   : > { %282 = vmax.xlane.f32.xlu0 %v281_v9  ;;  %v347_v37 = vadd.f32 %v4170_v35, %v4167_v34  ;;  %v4177_v38 = vld [vmem:[%s4068_s7 + $0xd0] sm:$0xff]  ;;  %v4180_v39 = vld [vmem:[%s4068_s7 + $0xd8] sm:$0xff]  ;;  %6829 = vst [vmem:[#allocation14_spill] sm:$0xff] %v4183_v40  ;;  %v4186_v41 = vld [vmem:[%s4068_s7 + $0xc8] sm:$0xff]  ;;  %v299_v55 = vmax.f32 %v4167_v34, %v4170_v35  ;;  %s3858_s12 = smov 33   ;;  %s3859_s23 = smov 32  }
  0x62   : > { %6827 = vst [vmem:[#allocation12_spill] sm:$0xff] %v4177_v38  ;;  %6828 = vst [vmem:[#allocation13_spill] sm:$0xff] %v4180_v39  ;;  %v365_v42 = vadd.f32 %v4180_v39, %v4177_v38  ;;  %v362_v43 = vadd.f32 %v4186_v41, %v4183_v40  ;;  %v4197_v46 = vld [vmem:[%s4068_s7 + $0xb0] sm:$0xff]  ;;  %v4200_v47 = vld [vmem:[%s4068_s7 + $0xb8] sm:$0xff]  ;;  %v317_v56 = vmax.f32 %v4177_v38, %v4180_v39  ;;  %s3861_s26 = smov 30   ;;  %s6650_s29 = smov 29  }
  0x63   : > { %6830 = vst [vmem:[#allocation15_spill] sm:$0xff] %v4186_v41  ;;  %6831 = vst [vmem:[#allocation16_spill] sm:$0xff] %v4197_v46  ;;  %v359_v48 = vadd.f32 %v4200_v47, %v4197_v46  ;;  %v4207_v50 = vld [vmem:[%s4068_s7 + $0xe0] sm:$0xff]  ;;  %v4210_v51 = vld [vmem:[%s4068_s7 + $0xe8] sm:$0xff]  ;;  %v314_v57 = vmax.f32 %v4183_v40, %v4186_v41  ;;  %v311_v60 = vmax.f32 %v4197_v46, %v4200_v47  ;;  %s6652_s20 = smov 19   ;;  %s6654_s22 = smov 18  }
  0x64   : > { %339 = vadd.xlane.f32.xlu1 %v338_v12  ;;  %6832 = vst [vmem:[#allocation17_spill] sm:$0xff] %v4200_v47  ;;  %6833 = vst [vmem:[#allocation18_spill] sm:$0xff] %v4207_v50  ;;  %v368_v53 = vadd.f32 %v4210_v51, %v4207_v50  ;;  %v4225_v58 = vld [vmem:[%s4068_s7 + $0xf0] sm:$0xff]  ;;  %v4228_v59 = vld [vmem:[%s4068_s7 + $0xf8] sm:$0xff]  ;;  %v320_v63 = vmax.f32 %v4207_v50, %v4210_v51  ;;  %s3860_s7 = smov 31   ;;  %s6656_s9 = smov 17  }
  0x65   : > { %330 = vadd.xlane.f32.xlu0 %v329_v13  ;;  %6834 = vst [vmem:[#allocation19_spill] sm:$0xff] %v4210_v51  ;;  %6835 = vst [vmem:[#allocation20_spill] sm:$0xff] %v4225_v58  ;;  %v371_v61 = vadd.f32 %v4228_v59, %v4225_v58  ;;  %v323_v62 = vmax.f32 %v4225_v58, %v4228_v59  ;;  %p7157_p0 = scmp.ne.s32.totalorder %s6816_s27, 0 }
  0x66   : > { %6836 = vst [vmem:[#allocation21_spill] sm:$0xff] %v4228_v59 }
  0x68   : > { %333 = vadd.xlane.f32.xlu1 %v332_v16 }
  0x69   : > { %342 = vadd.xlane.f32.xlu0 %v341_v17 }
  0x6c   : > { %351 = vadd.xlane.f32.xlu1 %v350_v22 }
  0x6d   : > { %345 = vadd.xlane.f32.xlu0 %v344_v23 }
  0x70   : > { %291 = vmax.xlane.f32.xlu1 %v290_v26 }
  0x71   : > { %354 = vadd.xlane.f32.xlu0 %v353_v27 }
  0x74   : > { %336 = vadd.xlane.f32.xlu1 %v335_v30 }
  0x75   : > { %294 = vmax.xlane.f32.xlu0 %v293_v31 }
  0x78   : > { %357 = vadd.xlane.f32.xlu1 %v356_v36 }
  0x79   : > { %348 = vadd.xlane.f32.xlu0 %v347_v37 }
  0x7c   : > { %366 = vadd.xlane.f32.xlu1 %v365_v42  ;;  %v406_v42 = vlaneseq }
  0x7d   : > { %363 = vadd.xlane.f32.xlu0 %v362_v43 }
  0x80   : > { %303 = vmax.xlane.f32.xlu1 %v302_v44 }
  0x81   : > { %297 = vmax.xlane.f32.xlu0 %v296_v45  ;;  %v4244_v45 = vand.u32 127, %v406_v42 }
  0x83   : > { %6837 = vst [vmem:[#allocation22_spill] sm:$0xff] %v4244_v45 }
  0x84   : > { %360 = vadd.xlane.f32.xlu1 %v359_v48 }
  0x85   : > { %306 = vmax.xlane.f32.xlu0 %v305_v49  ;;  %v412_v49 = vadd.s32 4294967288, %v4244_v45 }
  0x88   : > { %288 = vmax.xlane.f32.xlu1 %v287_v52 }
  0x89   : > { %369 = vadd.xlane.f32.xlu0 %v368_v53  ;;  %v4251_v53 = vshrl.u32 %v406_v42, 7 }
  0x8b   : > { %6838 = vst [vmem:[#allocation23_spill] sm:$0xff] %v4251_v53 }
  0x8c   : > { %309 = vmax.xlane.f32.xlu1 %v308_v54 }
  0x8d   : > { %300 = vmax.xlane.f32.xlu0 %v299_v55  ;;  %v419_v55 = vadd.s32 4294967280, %v4244_v45 }
  0x8f   : > { %v4267_v42 = vsub.s32 %v419_v55, %v4251_v53 }
  0x90   : > { %318 = vmax.xlane.f32.xlu1 %v317_v56  ;;  %v4255_v56 = vsub.s32 %v412_v49, %v4251_v53 }
  0x91   : > { %315 = vmax.xlane.f32.xlu0 %v314_v57 }
  0x94   : > { %312 = vmax.xlane.f32.xlu1 %v311_v60  ;;  %v4261_v60 = vsub.s32 %v4244_v45, %v4251_v53 }
  0x95   : > { %372 = vadd.xlane.f32.xlu0 %v371_v61 }
  0x98   : > { %324 = vmax.xlane.f32.xlu1 %v323_v62  ;;  %v426_v62 = vadd.s32 4294967272, %v4244_v45 }
  0x99   : > { %321 = vmax.xlane.f32.xlu0 %v320_v63 }
  0x9a   : > { %v4273_v45 = vsub.s32 %v426_v62, %v4251_v53 }
  0xe5   : > { %v4238_v3 = vpop.xlane.xlu1 %285 }
  0xe6   : > { %v280_v7 = vpop.xlane.xlu0 %279 }
  0xe7   : > { %v411_v41 = vrot.slane %v280_v7, %v4261_v60 }
  0xe9   : > { %v328_v8 = vpop.xlane.xlu1 %327 }
  0xea   : > { %v283_v9 = vpop.xlane.xlu0 %282  ;;  %v374_v39 = vmul.f32 0.00390625, %v328_v8 }
  0xeb   : > { %v416_v59 = vrot.slane %v283_v9, %v4255_v56  ;;  %v423_v9 = vrot.slane %v4238_v3, %v4267_v42 }
  0xec   : > { %v516_v7 = vrot.slane %v374_v39, %v4261_v60 }
  0xed   : > { %v340_v12 = vpop.xlane.xlu1 %339 }
  0xee   : > { %v331_v13 = vpop.xlane.xlu0 %330  ;;  %v378_v38 = vmul.f32 0.00390625, %v340_v12 }
  0xef   : > { %v375_v61 = vmul.f32 0.00390625, %v331_v13 }
  0xf1   : > { %v334_v16 = vpop.xlane.xlu1 %333  ;;  %v520_v13 = vrot.slane %v375_v61, %v4255_v56 }
  0xf2   : > { %v343_v17 = vpop.xlane.xlu0 %342  ;;  %v376_v51 = vmul.f32 0.00390625, %v334_v16 }
  0xf3   : > { %v379_v58 = vmul.f32 0.00390625, %v343_v17  ;;  %v418_v17 = vsel %vm417_vm0, %v416_v59, %v411_v41 }
  0xf4   : > { %v425_v39 = vsel %vm424_vm1, %v423_v9, %v418_v17 }
  0xf5   : > { %v352_v22 = vpop.xlane.xlu1 %351  ;;  %v539_v8 = vrot.slane %v379_v58, %v4255_v56  ;;  %v521_v58 = vsel %vm417_vm0, %v520_v13, %v516_v7 }
  0xf6   : > { %v346_v23 = vpop.xlane.xlu0 %345  ;;  %v382_v12 = vmul.f32 0.00390625, %v352_v22 }
  0xf7   : > { %v380_v50 = vmul.f32 0.00390625, %v346_v23  ;;  %v535_v23 = vrot.slane %v378_v38, %v4261_v60 }
  0xf9   : > { %v4240_v26 = vpop.xlane.xlu1 %291  ;;  %v544_v61 = vrot.slane %v380_v50, %v4267_v42  ;;  %v540_v38 = vsel %vm417_vm0, %v539_v8, %v535_v23 }
  0xfa   : > { %v355_v27 = vpop.xlane.xlu0 %354 }
  0xfb   : > { %v383_v40 = vmul.f32 0.00390625, %v355_v27  ;;  %v525_v27 = vrot.slane %v376_v51, %v4267_v42  ;;  %v554_v51 = vrot.slane %v382_v12, %v4261_v60 }
  0xfd   : > { %v337_v30 = vpop.xlane.xlu1 %336  ;;  %v558_v62 = vrot.slane %v383_v40, %v4255_v56  ;;  %v436_v40 = vrot.slane %v4240_v26, %v4261_v60 }
  0xfe   : > { %v4242_v31 = vpop.xlane.xlu0 %294  ;;  %v377_v47 = vmul.f32 0.00390625, %v337_v30 }
  0xff   : > { %v440_v3 = vrot.slane %v4242_v31, %v4255_v56  ;;  %v526_v31 = vsel %vm424_vm1, %v525_v27, %v521_v58  ;;  %v559_v13 = vsel %vm417_vm0, %v558_v62, %v554_v51 }
 0x100   : > { %v530_v9 = vrot.slane %v377_v47, %v4273_v45 }
 0x101   : > { %v358_v36 = vpop.xlane.xlu1 %357  ;;  %v441_v17 = vsel %vm417_vm0, %v440_v3, %v436_v40 }
 0x102   : > { %v349_v37 = vpop.xlane.xlu0 %348  ;;  %v384_v41 = vmul.f32 0.00390625, %v358_v36  ;;  %v545_v36 = vsel %vm424_vm1, %v544_v61, %v540_v38 }
 0x103   : > { %v381_v59 = vmul.f32 0.00390625, %v349_v37 }
 0x104   : > { %v563_v26 = vrot.slane %v384_v41, %v4267_v42 }
 0x105   : > { %v367_v43 = vpop.xlane.xlu1 %366 }
 0x106   : > { %v364_v44 = vpop.xlane.xlu0 %363  ;;  %v387_v22 = vmul.f32 0.00390625, %v367_v43 }
 0x107   : > { %v386_v50 = vmul.f32 0.00390625, %v364_v44  ;;  %v549_v44 = vrot.slane %v381_v59, %v4273_v45 }
 0x108   : > { %v577_v8 = vrot.slane %v387_v22, %v4255_v56 }
 0x109   : > { %v4246_v48 = vpop.xlane.xlu1 %303  ;;  %v573_v7 = vrot.slane %v386_v50, %v4261_v60 }
 0x10a   : > { %v4249_v52 = vpop.xlane.xlu0 %297  ;;  %v455_v47 = vrot.slane %v4246_v48, %v4261_v60 }
 0x10b   : > { %v578_v40 = vsel %vm417_vm0, %v577_v8, %v573_v7 }
 0x10d   : > { %v361_v54 = vpop.xlane.xlu1 %360 }
 0x10e   : > { %v4257_v57 = vpop.xlane.xlu0 %306  ;;  %v385_v37 = vmul.f32 0.00390625, %v361_v54  ;;  %v445_v54 = vrot.slane %v4249_v52, %v4267_v42 }
 0x110   : > { %v568_v62 = vrot.slane %v385_v37, %v4273_v45 }
 0x111   : > { %v4264_v63 = vpop.xlane.xlu1 %288 }
 0x112   : > { %v370_v49 = vpop.xlane.xlu0 %369  ;;  %v430_v58 = vrot.slane %v4264_v63, %v4273_v45 }
 0x113   : > { %v388_v43 = vmul.f32 0.00390625, %v370_v49  ;;  %v459_v49 = vrot.slane %v4257_v57, %v4255_v56  ;;  %v564_v57 = vsel %vm424_vm1, %v563_v26, %v559_v13 }
 0x114   : > { %v432_v13 = vsel %vm431_vm2, %v430_v58, %v425_v39 }
 0x115   : > { %v4275_v55 = vpop.xlane.xlu1 %309  ;;  %v582_v3 = vrot.slane %v388_v43, %v4267_v42  ;;  %v460_v22 = vsel %vm417_vm0, %v459_v49, %v455_v47  ;;  %v531_v43 = vsel %vm431_vm2, %v530_v9, %v526_v31  ;;  %v3548_v31 = vld [vmem:[#allocation5 + $0x1] ss:$0 sm:$0xff]  ;;  %v3546_v9 = vld [vmem:[#allocation5] ss:$0 sm:$0xff] }
 0x116   : > { %v301_v16 = vpop.xlane.xlu0 %300  ;;  %v464_v23 = vrot.slane %v4275_v55, %v4267_v42  ;;  %v550_v55 = vsel %vm431_vm2, %v549_v44, %v545_v36 }
 0x117   : > { %v450_v27 = vrot.slane %v301_v16, %v4273_v45  ;;  %v446_v16 = vsel %vm424_vm1, %v445_v54, %v441_v17  ;;  %v590_v8 = vsel %vm589_vm4, %v550_v55, %v531_v43 }
 0x118   : > { %v465_v50 = vsel %vm424_vm1, %v464_v23, %v460_v22 }
 0x119   : > { %v319_v46 = vpop.xlane.xlu1 %318  ;;  %v451_v37 = vsel %vm431_vm2, %v450_v27, %v446_v16 }
 0x11a   : > { %v316_v30 = vpop.xlane.xlu0 %315  ;;  %v478_v48 = vrot.slane %v319_v46, %v4255_v56  ;;  %v569_v56 = vsel %vm431_vm2, %v568_v62, %v564_v57  ;;  %v491_v44 = vsel %vm490_vm3, %v451_v37, %v432_v13  ;;  %v3549_v62 = vld [vmem:[%s6615_s2 + $0x1] ss:$0 sm:$0xff] }
 0x11b   : > { %v474_v59 = vrot.slane %v316_v30, %v4261_v60  ;;  %v583_v60 = vsel %vm424_vm1, %v582_v3, %v578_v40 }
 0x11d   : > { %v313_v12 = vpop.xlane.xlu1 %312  ;;  %v479_v17 = vsel %vm417_vm0, %v478_v48, %v474_v59 }
 0x11e   : > { %v373_v61 = vpop.xlane.xlu0 %372  ;;  %v469_v52 = vrot.slane %v313_v12, %v4273_v45 }
 0x11f   : > { %v389_v41 = vmul.f32 0.00390625, %v373_v61 }
 0x120   : > { %v470_v30 = vsel %vm431_vm2, %v469_v52, %v465_v50  ;;  %v3547_v52 = vld [vmem:[%s6615_s2] ss:$0 sm:$0xff]  ;;  %v4351_v50 = vsub.s32 0, %v4251_v53 }
 0x121   : > { %v587_v38 = vrot.slane %v389_v41, %v4273_v45  ;;  %v325_v51 = vpop.xlane.xlu1 %324  ;;  %v493_v49 = vsel %vm492_vm5, %v470_v30, %v491_v44 }
 0x122   : > { %v322_v63 = vpop.xlane.xlu0 %321  ;;  %v488_v46 = vrot.slane %v325_v51, %v4273_v45 }
 0x123   : > { %v483_v36 = vrot.slane %v322_v63, %v4267_v42  ;;  %v588_v26 = vsel %vm431_vm2, %v587_v38, %v583_v60  ;;  %v592_v42 = vsel %vm591_vm6, %v569_v56, %v590_v8  ;;  %v4354_v63 = vsub.s32 1, %v4251_v53 }
 0x124   : > { %v594_v12 = vsel %vm593_vm8, %v588_v26, %v592_v42  ;;  %v683_v60 = vsub.s32 2, %v4251_v53 }
 0x125   : > { %v484_v45 = vsel %vm424_vm1, %v483_v36, %v479_v17  ;;  %v702_v36 = vsub.s32 3, %v4251_v53 }
 0x126   : > { %v489_v54 = vsel %vm431_vm2, %v488_v46, %v484_v45 }
 0x127   : > { %v495_v39 = vsel %vm494_vm7, %v489_v54, %v493_v49 }
 0x128   : > { %v597_v7 = vsel %vm596_vm9, %v495_v39, %v594_v12 }
 0x129   : > { %v621_v47 = vmul.f32 %v3548_v31, %v597_v7  ;;  %v603_v23 = vmul.f32 %v3546_v9, %v597_v7 }
 0x12b   : > { %v622_v27 = vsel %vm604_vm10, %v621_v47, 0.0  ;;  %v605_v61 = vsel %vm604_vm10, %v603_v23, 0.0 }
 0x12c   : > { %623 = vadd.xlane.f32.xlu1 %v622_v27  ;;  %606 = vadd.xlane.f32.xlu0 %v605_v61 }
 0x1b5   : > { %v624_v3 = vpop.xlane.xlu1 %623  ;;  %v607_v41 = vpop.xlane.xlu0 %606 }
 0x1b6   : > { %v625_v57 = vmax.f32 %v624_v3, 0.0  ;;  %v608_v58 = vmax.f32 %v607_v41, 0.0 }
 0x1b8   : > { %v631_v48 = vmul.f32 %v3549_v62, %v625_v57  ;;  %v614_v59 = vmul.f32 %v3547_v52, %v608_v58 }
 0x1ba   : > { %v632_v55 = vadd.f32 %v631_v48, %v614_v59 }
 0x1bc   : > { %v634_v16 = vrot.slane %v632_v55, 4 }
 0x1be   : > { %v636_v22 = vadd.f32 %v634_v16, %v632_v55 }
 0x1c0   : > { %v3550_v38 = vmul.f32 -1.442695, %v636_v22 }
 0x1c2   : > { %3682 = vpow2.f32 %v3550_v38 }
 0x1cf   : > { %v3683_v51 = vpop.eup %3682 }
 0x1d0   : > { %v640_v40 = vadd.f32 1.0, %v3683_v51 }
 0x1d2   : > { %3684 = vrcp.f32 %v640_v40 }
 0x1df   : > { %v3685_v37 = vpop.eup %3684 }
 0x1e0   : > { %v646_v46 = vrot.slane %v3685_v37, %v4351_v50  ;;  %v665_v56 = vrot.slane %v3685_v37, %v4354_v63  ;;  %v684_v30 = vrot.slane %v3685_v37, %v683_v60  ;;  %v703_v43 = vrot.slane %v3685_v37, %v702_v36 }
 0x1e2   : > { %652 = vbcast.lane.b32.xlu1 %v646_v46, 264  ;;  %648 = vbcast.lane.b32.xlu0 %v646_v46, 256 }
 0x1e6   : > { %656 = vbcast.lane.b32.xlu1 %v646_v46, 272  ;;  %667 = vbcast.lane.b32.xlu0 %v665_v56, 256 }
 0x1ea   : > { %660 = vbcast.lane.b32.xlu1 %v646_v46, 280  ;;  %675 = vbcast.lane.b32.xlu0 %v665_v56, 272 }
 0x1ee   : > { %671 = vbcast.lane.b32.xlu1 %v665_v56, 264  ;;  %686 = vbcast.lane.b32.xlu0 %v684_v30, 256 }
 0x1f2   : > { %679 = vbcast.lane.b32.xlu1 %v665_v56, 280  ;;  %694 = vbcast.lane.b32.xlu0 %v684_v30, 272 }
 0x1f6   : > { %690 = vbcast.lane.b32.xlu1 %v684_v30, 264  ;;  %705 = vbcast.lane.b32.xlu0 %v703_v43, 256 }
 0x1fa   : > { %698 = vbcast.lane.b32.xlu1 %v684_v30, 280  ;;  %713 = vbcast.lane.b32.xlu0 %v703_v43, 272 }
 0x1fe   : > { %709 = vbcast.lane.b32.xlu1 %v703_v43, 264 }
 0x202   : > { %717 = vbcast.lane.b32.xlu1 %v703_v43, 280 }
 0x254   : > { %v653_v13 = vpop.permute.xlu1 %652  ;;  %v649_v17 = vpop.permute.xlu0 %648 }
 0x255   : > { %v4361_v26 = vmul.f32 %v653_v13, %v4093_v5  ;;  %v4364_v44 = vmul.f32 %v653_v13, %v4096_v6  ;;  %v4367_v45 = vmul.f32 %v649_v17, %v4085_v2  ;;  %v4370_v8 = vmul.f32 %v649_v17, %v4090_v4 }
 0x257   : > { %6839 = vst [vmem:[#allocation24_spill] sm:$0xff] %v4361_v26  ;;  %6840 = vst [vmem:[#allocation25_spill] sm:$0xff] %v4364_v44  ;;  %v751_v5 = vmax.f32 %v4367_v45, %v4361_v26  ;;  %v760_v6 = vmax.f32 %v4370_v8, %v4364_v44  ;;  %v823_v2 = vadd.f32 %v4361_v26, %v4367_v45 }
 0x258   : > { %6841 = vst [vmem:[#allocation26_spill] sm:$0xff] %v4367_v45  ;;  %6842 = vst [vmem:[#allocation27_spill] sm:$0xff] %v4370_v8  ;;  %v657_v54 = vpop.permute.xlu1 %656  ;;  %v668_v31 = vpop.permute.xlu0 %667  ;;  %v832_v4 = vadd.f32 %v4364_v44, %v4370_v8 }
 0x259   : > { %v4373_v49 = vmul.f32 %v657_v54, %v4079_v0  ;;  %v4376_v42 = vmul.f32 %v657_v54, %v4082_v1  ;;  %v4401_v52 = vmul.f32 %v668_v31, %v4105_v10 }
 0x25b   : > { %6843 = vst [vmem:[#allocation28_spill] sm:$0xff] %v4373_v49  ;;  %6844 = vst [vmem:[#allocation29_spill] sm:$0xff] %v4376_v42  ;;  %v752_v9 = vmax.f32 %v751_v5, %v4373_v49  ;;  %v761_v0 = vmax.f32 %v760_v6, %v4376_v42  ;;  %v824_v1 = vadd.f32 %v823_v2, %v4373_v49 }
 0x25c   : > { %v661_v39 = vpop.permute.xlu1 %660  ;;  %v833_v12 = vadd.f32 %v832_v4, %v4376_v42  ;;  %v676_v3 = vpop.permute.xlu0 %675  ;;  %6847 = vst [vmem:[#allocation32_spill] sm:$0xff] %v4401_v52 }
 0x25d   : > { %v4391_v7 = vmul.f32 %v661_v39, %v4151_v28  ;;  %v4394_v47 = vmul.f32 %v661_v39, %v4154_v29  ;;  %v4404_v29 = vmul.f32 %v668_v31, %v4108_v11  ;;  %v4407_v59 = vmul.f32 %v676_v3, %v4131_v20 }
 0x25e   : > { %v4416_v51 = vmul.f32 %v676_v3, %v4134_v21 }
 0x25f   : > { %6845 = vst [vmem:[#allocation30_spill] sm:$0xff] %v4391_v7  ;;  %6846 = vst [vmem:[#allocation31_spill] sm:$0xff] %v4394_v47  ;;  %v753_v23 = vmax.f32 %v752_v9, %v4391_v7  ;;  %v762_v27 = vmax.f32 %v761_v0, %v4394_v47  ;;  %v825_v61 = vadd.f32 %v824_v1, %v4391_v7  ;;  %v2063_v0 = vld [vmem:[#allocation7 + $0x30] ss:$8 sm:$0x3] }
 0x260   : > { %v834_v62 = vadd.f32 %v833_v12, %v4394_v47  ;;  %v672_v41 = vpop.permute.xlu1 %671  ;;  %6848 = vst [vmem:[#allocation33_spill] sm:$0xff] %v4404_v29  ;;  %6849 = vst [vmem:[#allocation34_spill] sm:$0xff] %v4407_v59  ;;  %v687_v13 = vpop.permute.xlu0 %686  ;;  %v4440_v1 = vld [vmem:[#allocation7 + $0x91] ss:$8 sm:$0x3] }
 0x261   : > { %v754_v57 = vrot.slane %v753_v23, 4  ;;  %v763_v58 = vrot.slane %v762_v27, 4  ;;  %v826_v28 = vrot.slane %v825_v61, 4  ;;  %v4410_v55 = vmul.f32 %v672_v41, %v4115_v14  ;;  %6852 = vst [vmem:[#allocation37_spill] sm:$0xff] %v4416_v51 }
 0x262   : > { %v835_v48 = vrot.slane %v834_v62, 4  ;;  %v4413_v16 = vmul.f32 %v672_v41, %v4118_v15 }
 0x263   : > { %6850 = vst [vmem:[#allocation35_spill] sm:$0xff] %v4410_v55  ;;  %v755_v22 = vmax.f32 %v753_v23, %v754_v57  ;;  %v764_v10 = vmax.f32 %v762_v27, %v763_v58  ;;  %v827_v38 = vadd.f32 %v826_v28, %v825_v61  ;;  %v769_v40 = vmax.f32 %v4401_v52, %v4410_v55 }
 0x264   : > { %6851 = vst [vmem:[#allocation36_spill] sm:$0xff] %v4413_v16  ;;  %v778_v11 = vmax.f32 %v4404_v29, %v4413_v16  ;;  %v841_v20 = vadd.f32 %v4410_v55, %v4401_v52  ;;  %v850_v14 = vadd.f32 %v4413_v16, %v4404_v29  ;;  %v680_v15 = vpop.permute.xlu1 %679  ;;  %v836_v46 = vadd.f32 %v835_v48, %v834_v62  ;;  %v695_v41 = vpop.permute.xlu0 %694 }
 0x265   : > { %v828_v37 = vrot.slane %v827_v38, 2  ;;  %v4427_v56 = vmul.f32 %v680_v15, %v4167_v34  ;;  %v4430_v21 = vmul.f32 %v680_v15, %v4170_v35  ;;  %v770_v60 = vmax.f32 %v769_v40, %v4407_v59 }
 0x266   : > { %v779_v30 = vmax.f32 %v778_v11, %v4416_v51  ;;  %v756_v36 = vrot.slane %v755_v22, 2  ;;  %v765_v43 = vrot.slane %v764_v10, 2  ;;  %v842_v31 = vadd.f32 %v841_v20, %v4407_v59 }
 0x267   : > { %6853 = vst [vmem:[#allocation38_spill] sm:$0xff] %v4427_v56  ;;  %6854 = vst [vmem:[#allocation39_spill] sm:$0xff] %v4430_v21  ;;  %v771_v17 = vmax.f32 %v770_v60, %v4427_v56  ;;  %v851_v5 = vadd.f32 %v850_v14, %v4416_v51  ;;  %v829_v34 = vadd.f32 %v828_v37, %v827_v38  ;;  %v837_v6 = vrot.slane %v836_v46, 2 }
 0x268   : > { %v780_v54 = vmax.f32 %v779_v30, %v4430_v21  ;;  %v843_v4 = vadd.f32 %v842_v31, %v4427_v56  ;;  %v691_v39 = vpop.permute.xlu1 %690  ;;  %v757_v12 = vmax.f32 %v755_v22, %v756_v36  ;;  %v766_v23 = vmax.f32 %v764_v10, %v765_v43 }
 0x269   : > { %v772_v2 = vrot.slane %v771_v17, 4  ;;  %v852_v9 = vadd.f32 %v851_v5, %v4430_v21  ;;  %v830_v62 = vrot.slane %v829_v34, 1  ;;  %v838_v3 = vadd.f32 %v837_v6, %v836_v46  ;;  %v6861_v6 = vld [vmem:[#allocation16_spill] sm:$0xff] }
 0x26a   : > { %v781_v35 = vrot.slane %v780_v54, 4  ;;  %v844_v61 = vrot.slane %v843_v4, 4  ;;  %v4443_v38 = vrot.slane %v2063_v0, %v4351_v50  ;;  %v4446_v40 = vrot.slane %v2063_v0, %v4354_v63 }
 0x26b   : > { %v773_v27 = vmax.f32 %v771_v17, %v772_v2  ;;  %v853_v48 = vrot.slane %v852_v9, 4  ;;  %v4450_v11 = vrot.slane %v4440_v1, %v4351_v50  ;;  %v758_v22 = vrot.slane %v757_v12, 1  ;;  %v6863_v2 = vld [vmem:[#allocation17_spill] sm:$0xff] }
 0x26c   : > { %v782_v58 = vmax.f32 %v780_v54, %v781_v35  ;;  %v845_v28 = vadd.f32 %v844_v61, %v843_v4  ;;  %v767_v10 = vrot.slane %v766_v23, 1  ;;  %v4453_v20 = vmul.f32 %v687_v13, %v4125_v18  ;;  %v699_v30 = vpop.permute.xlu1 %698 }
 0x26d   : > { %v774_v57 = vrot.slane %v773_v27, 2  ;;  %v4456_v14 = vmul.f32 %v687_v13, %v4128_v19  ;;  %v831_v15 = vadd.f32 %v830_v62, %v829_v34  ;;  %v839_v37 = vrot.slane %v838_v3, 1  ;;  %v706_v13 = vpop.permute.xlu0 %705 }
 0x26e   : > { %6855 = vst [vmem:[#allocation40_spill] sm:$0xff] %v4453_v20  ;;  %v4459_v46 = vmul.f32 %v691_v39, %v4141_v24  ;;  %v4462_v60 = vmul.f32 %v691_v39, %v4144_v25  ;;  %v783_v43 = vrot.slane %v782_v58, 2  ;;  %v846_v17 = vrot.slane %v845_v28, 2 }
 0x26f   : > { %6856 = vst [vmem:[#allocation41_spill] sm:$0xff] %v4456_v14  ;;  %v775_v36 = vmax.f32 %v773_v27, %v774_v57  ;;  %v854_v54 = vadd.f32 %v853_v48, %v852_v9  ;;  %v4465_v31 = vmul.f32 %v695_v41, %v4161_v32  ;;  %v4468_v18 = vmul.f32 %v695_v41, %v4164_v33 }
 0x270   : > { %6857 = vst [vmem:[#allocation42_spill] sm:$0xff] %v4459_v46  ;;  %6858 = vst [vmem:[#allocation43_spill] sm:$0xff] %v4462_v60  ;;  %v787_v19 = vmax.f32 %v4453_v20, %v4459_v46  ;;  %v796_v24 = vmax.f32 %v4456_v14, %v4462_v60  ;;  %v4474_v25 = vmax.f32 %v757_v12, %v758_v22  ;;  %v4492_v61 = vmul.f32 0.03125, %v831_v15  ;;  %v710_v57 = vpop.permute.xlu1 %709  ;;  %v6867_v15 = vld [vmem:[#allocation15_spill] sm:$0xff] }
 0x271   : > { %6859 = vst [vmem:[#allocation44_spill] sm:$0xff] %v4465_v31  ;;  %6860 = vst [vmem:[#allocation45_spill] sm:$0xff] %v4468_v18  ;;  %v4476_v5 = vmax.f32 %v766_v23, %v767_v10  ;;  %v859_v34 = vadd.f32 %v4459_v46, %v4453_v20  ;;  %v868_v32 = vadd.f32 %v4462_v60, %v4456_v14  ;;  %v776_v0 = vrot.slane %v775_v36, 1  ;;  %v6875_v46 = vld [vmem:[#allocation13_spill] sm:$0xff] }
 0x272   : > { %v4483_v33 = vmul.f32 %v699_v30, %v6861_v6  ;;  %v4486_v35 = vmul.f32 %v699_v30, %v6863_v2  ;;  %v788_v4 = vmax.f32 %v787_v19, %v4465_v31  ;;  %v797_v9 = vmax.f32 %v796_v24, %v4468_v18 }
 0x273   : > { %v784_v39 = vmax.f32 %v782_v58, %v783_v43  ;;  %v847_v12 = vadd.f32 %v846_v17, %v845_v28  ;;  %v855_v23 = vrot.slane %v854_v54, 2  ;;  %v4490_v27 = vadd.f32 %v839_v37, %v838_v3  ;;  %v6865_v28 = vld [vmem:[#allocation14_spill] sm:$0xff]  ;;  %v714_v17 = vpop.permute.xlu0 %713 }
 0x274   : > { %6862 = vst [vmem:[#allocation16_spill] sm:$0xff] %v4483_v33  ;;  %6864 = vst [vmem:[#allocation17_spill] sm:$0xff] %v4486_v35  ;;  %v789_v62 = vmax.f32 %v788_v4, %v4483_v33  ;;  %v798_v41 = vmax.f32 %v797_v9, %v4486_v35  ;;  %v4498_v48 = vmul.f32 %v4443_v38, %v4474_v25 }
 0x275   : > { %v4502_v22 = vmul.f32 %v4446_v40, %v4476_v5  ;;  %v860_v58 = vadd.f32 %v859_v34, %v4465_v31  ;;  %v869_v3 = vadd.f32 %v868_v32, %v4468_v18  ;;  %v4507_v10 = vmul.f32 %v706_v13, %v6865_v28  ;;  %v6869_v32 = vld [vmem:[#allocation18_spill] sm:$0xff]  ;;  %v6871_v28 = vld [vmem:[#allocation19_spill] sm:$0xff] }
 0x276   : > { %v4510_v37 = vmul.f32 %v706_v13, %v6867_v15  ;;  %v790_v30 = vrot.slane %v789_v62, 4  ;;  %v799_v43 = vrot.slane %v798_v41, 4  ;;  %v777_v19 = vmax.f32 %v775_v36, %v776_v0  ;;  %v6873_v13 = vld [vmem:[#allocation12_spill] sm:$0xff] }
 0x277   : > { %6866 = vst [vmem:[#allocation14_spill] sm:$0xff] %v4507_v10  ;;  %v785_v24 = vrot.slane %v784_v39, 1  ;;  %v848_v6 = vrot.slane %v847_v12, 1  ;;  %v856_v2 = vadd.f32 %v855_v23, %v854_v54  ;;  %v861_v60 = vadd.f32 %v860_v58, %v4483_v33 }
 0x278   : > { %6868 = vst [vmem:[#allocation15_spill] sm:$0xff] %v4510_v37  ;;  %v791_v4 = vmax.f32 %v789_v62, %v790_v30  ;;  %v800_v9 = vmax.f32 %v798_v41, %v799_v43  ;;  %v870_v34 = vadd.f32 %v869_v3, %v4486_v35  ;;  %v4515_v18 = vmul.f32 %v714_v17, %v6869_v32  ;;  %v718_v41 = vpop.permute.xlu1 %717  ;;  %v6879_v35 = vld [vmem:[#allocation21_spill] sm:$0xff] }
 0x279   : > { %v4518_v31 = vmul.f32 %v714_v17, %v6871_v28  ;;  %v4521_v15 = vmul.f32 %v710_v57, %v6873_v13  ;;  %v4524_v36 = vmul.f32 %v710_v57, %v6875_v46  ;;  %v862_v23 = vrot.slane %v861_v60, 4  ;;  %v6877_v28 = vld [vmem:[#allocation20_spill] sm:$0xff] }
 0x27a   : > { %6870 = vst [vmem:[#allocation18_spill] sm:$0xff] %v4515_v18  ;;  %v792_v0 = vrot.slane %v791_v4, 2  ;;  %v801_v54 = vrot.slane %v800_v9, 2  ;;  %v871_v62 = vrot.slane %v870_v34, 4  ;;  %v857_v17 = vrot.slane %v856_v2, 1 }
 0x27b   : > { %6872 = vst [vmem:[#allocation19_spill] sm:$0xff] %v4518_v31  ;;  %6874 = vst [vmem:[#allocation12_spill] sm:$0xff] %v4521_v15  ;;  %v805_v58 = vmax.f32 %v4507_v10, %v4521_v15  ;;  %v814_v3 = vmax.f32 %v4510_v37, %v4524_v36  ;;  %v877_v30 = vadd.f32 %v4521_v15, %v4507_v10 }
 0x27c   : > { %6876 = vst [vmem:[#allocation13_spill] sm:$0xff] %v4524_v36  ;;  %v886_v43 = vadd.f32 %v4524_v36, %v4510_v37  ;;  %v793_v46 = vmax.f32 %v791_v4, %v792_v0  ;;  %v863_v57 = vadd.f32 %v862_v23, %v861_v60  ;;  %v872_v32 = vadd.f32 %v871_v62, %v870_v34 }
 0x27d   : > { %v4535_v13 = vmul.f32 %v718_v41, %v6877_v28  ;;  %v4538_v33 = vmul.f32 %v718_v41, %v6879_v35  ;;  %v806_v14 = vmax.f32 %v805_v58, %v4515_v18  ;;  %v815_v20 = vmax.f32 %v814_v3, %v4518_v31 }
 0x27e   : > { %v786_v21 = vmax.f32 %v784_v39, %v785_v24  ;;  %v802_v56 = vmax.f32 %v800_v9, %v801_v54  ;;  %v864_v15 = vrot.slane %v863_v57, 2  ;;  %v873_v10 = vrot.slane %v872_v32, 2 }
 0x27f   : > { %6878 = vst [vmem:[#allocation20_spill] sm:$0xff] %v4535_v13  ;;  %6880 = vst [vmem:[#allocation21_spill] sm:$0xff] %v4538_v33  ;;  %v807_v36 = vmax.f32 %v806_v14, %v4535_v13  ;;  %v816_v4 = vmax.f32 %v815_v20, %v4538_v33  ;;  %v878_v60 = vadd.f32 %v877_v30, %v4515_v18  ;;  %v794_v35 = vrot.slane %v793_v46, 1 }
 0x280   : > { %v887_v34 = vadd.f32 %v886_v43, %v4518_v31  ;;  %v849_v0 = vadd.f32 %v848_v6, %v847_v12  ;;  %v858_v23 = vadd.f32 %v857_v17, %v856_v2  ;;  %v865_v62 = vadd.f32 %v864_v15, %v863_v57 }
 0x281   : > { %v808_v41 = vrot.slane %v807_v36, 4  ;;  %v817_v58 = vrot.slane %v816_v4, 4  ;;  %v879_v3 = vadd.f32 %v878_v60, %v4535_v13  ;;  %v911_v24 = vsel %vm490_vm3, %v777_v19, %v4474_v25 }
 0x282   : > { %v888_v39 = vadd.f32 %v887_v34, %v4538_v33  ;;  %v914_v20 = vsel %vm490_vm3, %v786_v21, %v4476_v5  ;;  %v803_v14 = vrot.slane %v802_v56, 1  ;;  %v874_v9 = vadd.f32 %v873_v10, %v872_v32 }
 0x283   : > { %v2077_v54 = vmul.f32 %v4443_v38, %v777_v19  ;;  %v2078_v12 = vmul.f32 %v4446_v40, %v786_v21  ;;  %v809_v6 = vmax.f32 %v807_v36, %v808_v41  ;;  %v818_v2 = vmax.f32 %v816_v4, %v817_v58 }
 0x284   : > { %v795_v15 = vmax.f32 %v793_v46, %v794_v35  ;;  %v866_v30 = vrot.slane %v865_v62, 1  ;;  %v880_v43 = vrot.slane %v879_v3, 4  ;;  %v889_v17 = vrot.slane %v888_v39, 4 }
 0x285   : > { %v4554_v57 = vmul.f32 0.03125, %v849_v0  ;;  %v4556_v28 = vmul.f32 0.03125, %v858_v23  ;;  %v810_v25 = vrot.slane %v809_v6, 2  ;;  %v819_v60 = vrot.slane %v818_v2, 2 }
 0x286   : > { %v804_v34 = vmax.f32 %v802_v56, %v803_v14  ;;  %v875_v5 = vrot.slane %v874_v9, 1  ;;  %v881_v33 = vadd.f32 %v880_v43, %v879_v3  ;;  %v890_v10 = vadd.f32 %v889_v17, %v888_v39 }
 0x287   : > { %v2091_v32 = vrot.slane %v2077_v54, 7  ;;  %v2097_v19 = vrot.slane %v2078_v12, 7  ;;  %v811_v13 = vmax.f32 %v809_v6, %v810_v25  ;;  %v820_v21 = vmax.f32 %v818_v2, %v819_v60 }
 0x288   : > { %v867_v36 = vadd.f32 %v866_v30, %v865_v62  ;;  %v2079_v46 = vmul.f32 %v4443_v38, %v795_v15  ;;  %v882_v4 = vrot.slane %v881_v33, 2  ;;  %v891_v35 = vrot.slane %v890_v10, 2 }
 0x289   : > { %v2122_v0 = vmul.f32 %v4450_v11, %v4554_v57  ;;  %v912_v23 = vsel %vm492_vm5, %v795_v15, %v911_v24  ;;  %v812_v41 = vrot.slane %v811_v13, 1  ;;  %v821_v58 = vrot.slane %v820_v21, 1 }
 0x28a   : > { %v876_v56 = vadd.f32 %v875_v5, %v874_v9  ;;  %v2080_v3 = vmul.f32 %v4446_v40, %v804_v34  ;;  %v883_v39 = vadd.f32 %v882_v4, %v881_v33  ;;  %v892_v14 = vadd.f32 %v891_v35, %v890_v10 }
 0x28b   : > { %v915_v54 = vsel %vm492_vm5, %v804_v34, %v914_v20  ;;  %v813_v12 = vmax.f32 %v811_v13, %v812_v41  ;;  %v822_v62 = vmax.f32 %v820_v21, %v821_v58  ;;  %v2092_v6 = vsel %vm490_vm3, %v2091_v32, %v4498_v48 }
 0x28c   : > { %v4566_v2 = vmul.f32 0.03125, %v867_v36  ;;  %v884_v30 = vrot.slane %v883_v39, 1  ;;  %v893_v43 = vrot.slane %v892_v14, 1  ;;  %v2093_v17 = vrot.slane %v2079_v46, 6 }
 0x28d   : > { %v4569_v24 = vsel %vm494_vm7, %v813_v12, %v912_v23  ;;  %v4572_v9 = vsel %vm494_vm7, %v822_v62, %v915_v54  ;;  %v2081_v33 = vmul.f32 %v4443_v38, %v813_v12  ;;  %v2082_v20 = vmul.f32 %v4446_v40, %v822_v62 }
 0x28e   : > { %6881 = vst [vmem:[#allocation46_spill] sm:$0xff] %v4569_v24  ;;  %6882 = vst [vmem:[#allocation47_spill] sm:$0xff] %v4572_v9  ;;  %v4576_v13 = vmul.f32 0.03125, %v876_v56  ;;  %v885_v15 = vadd.f32 %v884_v30, %v883_v39  ;;  %v894_v25 = vadd.f32 %v893_v43, %v892_v14  ;;  %921 = vrot.lane.b32.xlu1 %v4572_v9, %s3849_s11  ;;  %919 = vrot.lane.b32.xlu0 %v4569_v24, %s3849_s11 }
 0x28f   : > { %v2099_v48 = vrot.slane %v2080_v3, 6  ;;  %v2117_v60 = vrot.slane %v4440_v1, %v4354_v63  ;;  %v2094_v34 = vsel %vm492_vm5, %v2093_v17, %v2092_v6  ;;  %v2095_v38 = vrot.slane %v2081_v33, 5 }
 0x290   : > { %v2098_v40 = vsel %vm490_vm3, %v2097_v19, %v4502_v22  ;;  %v4588_v5 = vmul.f32 0.03125, %v4490_v27  ;;  %v4590_v10 = vmul.f32 0.03125, %v885_v15  ;;  %v4592_v32 = vmul.f32 0.03125, %v894_v25 }
 0x291   : > { %v2100_v21 = vsel %vm492_vm5, %v2099_v48, %v2098_v40  ;;  %v2123_v36 = vmul.f32 %v2117_v60, %v4556_v28  ;;  %v4597_v46 = vsel %vm494_vm7, %v2095_v38, %v2094_v34  ;;  %v2101_v1 = vrot.slane %v2082_v20, 5 }
 0x292   : > { %6883 = vst [vmem:[#allocation48_spill] sm:$0xff] %v4597_v46  ;;  %v2124_v4 = vmul.f32 %v4450_v11, %v4566_v2  ;;  %v2120_v22 = vmul.f32 %v4450_v11, %v4492_v61  ;;  %983 = vrot.lane.b32.xlu1 %v4572_v9, %s3850_s14  ;;  %981 = vrot.lane.b32.xlu0 %v4569_v24, %s3850_s14  ;;  %v2136_v19 = vrot.slane %v2122_v0, 7 }
 0x293   : > { %v2125_v27 = vmul.f32 %v2117_v60, %v4576_v13  ;;  %v4609_v35 = vsel %vm494_vm7, %v2101_v1, %v2100_v21  ;;  %v2126_v23 = vmul.f32 %v4450_v11, %v4590_v10  ;;  %v2127_v41 = vmul.f32 %v2117_v60, %v4592_v32 }
 0x294   : > { %6884 = vst [vmem:[#allocation49_spill] sm:$0xff] %v4609_v35  ;;  %v2137_v58 = vsel %vm490_vm3, %v2136_v19, %v2120_v22  ;;  %v2138_v56 = vrot.slane %v2124_v4, 6  ;;  %v2121_v3 = vmul.f32 %v2117_v60, %v4588_v5  ;;  %v2142_v14 = vrot.slane %v2123_v36, 7  ;;  %v5127_v35 = vld [vmem:[#allocation7 + $0x3] ss:$8 sm:$0x3] }
 0x295   : > { %v2140_v39 = vrot.slane %v2126_v23, 5  ;;  %v2144_v54 = vrot.slane %v2125_v27, 6  ;;  %v2146_v11 = vrot.slane %v2127_v41, 5  ;;  %v937_v59 = vsel %vm490_vm3, %v4556_v28, %v4588_v5 }
 0x296   : > { %1030 = vrot.lane.b32.xlu1 %v4572_v9, %s3851_s6  ;;  %1028 = vrot.lane.b32.xlu0 %v4569_v24, %s3851_s6  ;;  %v2139_v0 = vsel %vm492_vm5, %v2138_v56, %v2137_v58  ;;  %v2143_v62 = vsel %vm490_vm3, %v2142_v14, %v2121_v3  ;;  %v938_v16 = vsel %vm492_vm5, %v4576_v13, %v937_v59 }
 0x297   : > { %v4622_v12 = vsel %vm494_vm7, %v2140_v39, %v2139_v0  ;;  %v2145_v6 = vsel %vm492_vm5, %v2144_v54, %v2143_v62  ;;  %v4880_v52 = vsel %vm494_vm7, %v4592_v32, %v938_v16  ;;  %v934_v28 = vsel %vm490_vm3, %v4554_v57, %v4492_v61 }
 0x298   : > { %6885 = vst [vmem:[#allocation50_spill] sm:$0xff] %v4622_v12  ;;  %v4627_v30 = vsel %vm494_vm7, %v2146_v11, %v2145_v6  ;;  %v935_v59 = vsel %vm492_vm5, %v4566_v2, %v934_v28 }
 0x299   : > { %6886 = vst [vmem:[#allocation51_spill] sm:$0xff] %v4627_v30  ;;  %v4897_v16 = vsel %vm494_vm7, %v4590_v10, %v935_v59 }
 0x29a   : > { %1077 = vrot.lane.b32.xlu1 %v4572_v9, %s3852_s25  ;;  %1075 = vrot.lane.b32.xlu0 %v4569_v24, %s3852_s25 }
 0x29e   : > { %1124 = vrot.lane.b32.xlu1 %v4572_v9, %s3853_s5  ;;  %1122 = vrot.lane.b32.xlu0 %v4569_v24, %s3853_s5 }
 0x2a2   : > { %1171 = vrot.lane.b32.xlu1 %v4572_v9, %s3854_s8  ;;  %1169 = vrot.lane.b32.xlu0 %v4569_v24, %s3854_s8 }
 0x2a6   : > { %1218 = vrot.lane.b32.xlu1 %v4572_v9, %s3855_s13  ;;  %1216 = vrot.lane.b32.xlu0 %v4569_v24, %s3855_s13 }
 0x2aa   : > { %1265 = vrot.lane.b32.xlu1 %v4572_v9, %s3856_s30  ;;  %1263 = vrot.lane.b32.xlu0 %v4569_v24, %s3856_s30 }
 0x2ae   : > { %1312 = vrot.lane.b32.xlu1 %v4572_v9, %s3857_s10  ;;  %1310 = vrot.lane.b32.xlu0 %v4569_v24, %s3857_s10 }
 0x2b2   : > { %1359 = vrot.lane.b32.xlu1 %v4572_v9, %s3858_s12  ;;  %1357 = vrot.lane.b32.xlu0 %v4569_v24, %s3858_s12 }
 0x2b6   : > { %1406 = vrot.lane.b32.xlu1 %v4572_v9, %s3859_s23  ;;  %1404 = vrot.lane.b32.xlu0 %v4569_v24, %s3859_s23 }
 0x2ba   : > { %1453 = vrot.lane.b32.xlu1 %v4572_v9, %s3860_s7  ;;  %1451 = vrot.lane.b32.xlu0 %v4569_v24, %s3860_s7 }
 0x2be   : > { %1500 = vrot.lane.b32.xlu1 %v4572_v9, %s3861_s26  ;;  %1498 = vrot.lane.b32.xlu0 %v4569_v24, %s3861_s26 }
 0x2c2   : > { %1547 = vrot.lane.b32.xlu1 %v4572_v9, %s6650_s29  ;;  %1545 = vrot.lane.b32.xlu0 %v4569_v24, %s6650_s29  ;;  %s6658_s29 = smov 16  }
 0x2c6   : > { %1594 = vrot.lane.b32.xlu1 %v4572_v9, %s6652_s20  ;;  %1592 = vrot.lane.b32.xlu0 %v4569_v24, %s6652_s20  ;;  %s6660_s20 = smov 15  }
 0x2ca   : > { %1641 = vrot.lane.b32.xlu1 %v4572_v9, %s6654_s22  ;;  %1639 = vrot.lane.b32.xlu0 %v4569_v24, %s6654_s22  ;;  %s6662_s22 = smov 14  }
 0x2ce   : > { %1688 = vrot.lane.b32.xlu1 %v4572_v9, %s6656_s9  ;;  %1686 = vrot.lane.b32.xlu0 %v4569_v24, %s6656_s9  ;;  %s6664_s9 = smov 13  }
 0x2d2   : > { %1735 = vrot.lane.b32.xlu1 %v4572_v9, %s6658_s29  ;;  %1733 = vrot.lane.b32.xlu0 %v4569_v24, %s6658_s29  ;;  %s6666_s29 = smov 3  }
 0x2d6   : > { %1782 = vrot.lane.b32.xlu1 %v4572_v9, %s6660_s20  ;;  %1780 = vrot.lane.b32.xlu0 %v4569_v24, %s6660_s20  ;;  %s6668_s20 = smov 2  }
 0x2da   : > { %1829 = vrot.lane.b32.xlu1 %v4572_v9, %s6662_s22  ;;  %1827 = vrot.lane.b32.xlu0 %v4569_v24, %s6662_s22  ;;  %s6670_s22 = smov 1  }
 0x2de   : > { %1876 = vrot.lane.b32.xlu1 %v4572_v9, %s6664_s9  ;;  %1874 = vrot.lane.b32.xlu0 %v4569_v24, %s6664_s9  ;;  %s6672_s9 = smov 127  }
 0x2e2   : > { %1923 = vrot.lane.b32.xlu1 %v4572_v9, %s6666_s29  ;;  %1921 = vrot.lane.b32.xlu0 %v4569_v24, %s6666_s29  ;;  %s6674_s29 = smov 126  }
 0x2e6   : > { %1970 = vrot.lane.b32.xlu1 %v4572_v9, %s6668_s20  ;;  %1968 = vrot.lane.b32.xlu0 %v4569_v24, %s6668_s20  ;;  %s3875_s20 = smov 125  }
 0x2ea   : > { %2017 = vrot.lane.b32.xlu1 %v4572_v9, %s6670_s22  ;;  %2015 = vrot.lane.b32.xlu0 %v4569_v24, %s6670_s22  ;;  %s6676_s22 = smov 115  }
 0x2ee   : > { %2154 = vrot.lane.b32.xlu1 %v4572_v9, %s6672_s9  ;;  %2152 = vrot.lane.b32.xlu0 %v4569_v24, %s6672_s9  ;;  %s6678_s9 = smov 114  }
 0x2f2   : > { %2201 = vrot.lane.b32.xlu1 %v4572_v9, %s6674_s29  ;;  %2199 = vrot.lane.b32.xlu0 %v4569_v24, %s6674_s29  ;;  %s6680_s29 = smov 113  }
 0x2f6   : > { %2248 = vrot.lane.b32.xlu1 %v4572_v9, %s3875_s20  ;;  %2246 = vrot.lane.b32.xlu0 %v4569_v24, %s3875_s20 }
 0x2fa   : > { %2295 = vrot.lane.b32.xlu1 %v4572_v9, %s6676_s22  ;;  %2293 = vrot.lane.b32.xlu0 %v4569_v24, %s6676_s22  ;;  %s6682_s22 = smov 112  }
 0x2fe   : > { %2342 = vrot.lane.b32.xlu1 %v4572_v9, %s6678_s9  ;;  %2340 = vrot.lane.b32.xlu0 %v4569_v24, %s6678_s9  ;;  %s6684_s9 = smov 111  }
 0x300   : > { %v4733_v43 = vpop.permute.xlu1 %921  ;;  %v4735_v17 = vpop.permute.xlu0 %919 }
 0x302   : > { %2389 = vrot.lane.b32.xlu1 %v4572_v9, %s6680_s29  ;;  %2387 = vrot.lane.b32.xlu0 %v4569_v24, %s6680_s29  ;;  %s6686_s29 = smov 110  }
 0x304   : > { %v4741_v33 = vpop.permute.xlu1 %983  ;;  %v4743_v20 = vpop.permute.xlu0 %981 }
 0x306   : > { %2436 = vrot.lane.b32.xlu1 %v4572_v9, %s6682_s22  ;;  %2434 = vrot.lane.b32.xlu0 %v4569_v24, %s6682_s22  ;;  %s6688_s22 = smov 109  }
 0x308   : > { %v4749_v15 = vpop.permute.xlu1 %1030  ;;  %v4751_v25 = vpop.permute.xlu0 %1028 }
 0x30a   : > { %2483 = vrot.lane.b32.xlu1 %v4572_v9, %s6684_s9  ;;  %2481 = vrot.lane.b32.xlu0 %v4569_v24, %s6684_s9  ;;  %s6690_s9 = smov 99  }
 0x30c   : > { %v4757_v48 = vpop.permute.xlu1 %1077  ;;  %v4759_v60 = vpop.permute.xlu0 %1075 }
 0x30e   : > { %2530 = vrot.lane.b32.xlu1 %v4572_v9, %s6686_s29  ;;  %2528 = vrot.lane.b32.xlu0 %v4569_v24, %s6686_s29  ;;  %s6692_s29 = smov 98  }
 0x310   : > { %v4765_v34 = vpop.permute.xlu1 %1124  ;;  %v4767_v38 = vpop.permute.xlu0 %1122 }
 0x312   : > { %2577 = vrot.lane.b32.xlu1 %v4572_v9, %s6688_s22  ;;  %2575 = vrot.lane.b32.xlu0 %v4569_v24, %s6688_s22  ;;  %s6694_s22 = smov 97  }
 0x314   : > { %v4773_v40 = vpop.permute.xlu1 %1171  ;;  %v4775_v21 = vpop.permute.xlu0 %1169 }
 0x316   : > { %2624 = vrot.lane.b32.xlu1 %v4572_v9, %s6690_s9  ;;  %2622 = vrot.lane.b32.xlu0 %v4569_v24, %s6690_s9  ;;  %s6696_s9 = smov 96  }
 0x318   : > { %v4781_v36 = vpop.permute.xlu1 %1218  ;;  %v4783_v1 = vpop.permute.xlu0 %1216 }
 0x31a   : > { %2671 = vrot.lane.b32.xlu1 %v4572_v9, %s6692_s29  ;;  %2669 = vrot.lane.b32.xlu0 %v4569_v24, %s6692_s29  ;;  %s6698_s29 = smov 95  }
 0x31c   : > { %v4789_v4 = vpop.permute.xlu1 %1265  ;;  %v4791_v22 = vpop.permute.xlu0 %1263 }
 0x31e   : > { %2718 = vrot.lane.b32.xlu1 %v4572_v9, %s6694_s22  ;;  %2716 = vrot.lane.b32.xlu0 %v4569_v24, %s6694_s22  ;;  %s6700_s22 = smov 94  }
 0x320   : > { %v4797_v27 = vpop.permute.xlu1 %1312  ;;  %v4799_v19 = vpop.permute.xlu0 %1310 }
 0x322   : > { %2765 = vrot.lane.b32.xlu1 %v4572_v9, %s6696_s9  ;;  %2763 = vrot.lane.b32.xlu0 %v4569_v24, %s6696_s9  ;;  %s6702_s9 = smov 93  }
 0x324   : > { %v4805_v23 = vpop.permute.xlu1 %1359  ;;  %v4807_v41 = vpop.permute.xlu0 %1357 }
 0x326   : > { %2812 = vrot.lane.b32.xlu1 %v4572_v9, %s6698_s29  ;;  %2810 = vrot.lane.b32.xlu0 %v4569_v24, %s6698_s29  ;;  %s6706_s29 = smov 83  }
 0x328   : > { %v4813_v58 = vpop.permute.xlu1 %1406  ;;  %v4815_v56 = vpop.permute.xlu0 %1404 }
 0x32a   : > { %2859 = vrot.lane.b32.xlu1 %v4572_v9, %s6700_s22  ;;  %2857 = vrot.lane.b32.xlu0 %v4569_v24, %s6700_s22  ;;  %s6710_s22 = smov 82  }
 0x32c   : > { %v4821_v3 = vpop.permute.xlu1 %1453  ;;  %v4823_v39 = vpop.permute.xlu0 %1451 }
 0x32e   : > { %2906 = vrot.lane.b32.xlu1 %v4572_v9, %s6702_s9  ;;  %2904 = vrot.lane.b32.xlu0 %v4569_v24, %s6702_s9  ;;  %s3892_s9 = smov 81  }
 0x330   : > { %v4829_v14 = vpop.permute.xlu1 %1500  ;;  %v4831_v0 = vpop.permute.xlu0 %1498 }
 0x331   : > { %6887 = vst [vmem:[#allocation52_spill] sm:$0xff] %v4829_v14  ;;  %6888 = vst [vmem:[#allocation53_spill] sm:$0xff] %v4831_v0  ;;  %v5258_v14 = vld [vmem:[#allocation7 + $0x23] ss:$8 sm:$0x3] }
 0x332   : > { %2953 = vrot.lane.b32.xlu1 %v4572_v9, %s6706_s29  ;;  %2951 = vrot.lane.b32.xlu0 %v4569_v24, %s6706_s29  ;;  %s6717_s29 = smov 80  }
 0x334   : > { %v4837_v54 = vpop.permute.xlu1 %1547  ;;  %v4839_v11 = vpop.permute.xlu0 %1545 }
 0x335   : > { %6889 = vst [vmem:[#allocation54_spill] sm:$0xff] %v4837_v54  ;;  %6890 = vst [vmem:[#allocation55_spill] sm:$0xff] %v4839_v11 }
 0x336   : > { %3000 = vrot.lane.b32.xlu1 %v4572_v9, %s6710_s22  ;;  %2998 = vrot.lane.b32.xlu0 %v4569_v24, %s6710_s22  ;;  %s3894_s22 = smov 79  }
 0x338   : > { %v4845_v62 = vpop.permute.xlu1 %1594  ;;  %v4847_v6 = vpop.permute.xlu0 %1592 }
 0x339   : > { %6891 = vst [vmem:[#allocation56_spill] sm:$0xff] %v4845_v62  ;;  %6892 = vst [vmem:[#allocation57_spill] sm:$0xff] %v4847_v6  ;;  %v5225_v62 = vld [vmem:[#allocation7 + $0x17] ss:$8 sm:$0x3] }
 0x33a   : > { %3047 = vrot.lane.b32.xlu1 %v4572_v9, %s3892_s9  ;;  %3045 = vrot.lane.b32.xlu0 %v4569_v24, %s3892_s9  ;;  %6975 = vst [vmem:[#allocation121_spill] sm:$0xff] %v5225_v62 }
 0x33c   : > { %v4853_v31 = vpop.permute.xlu1 %1641  ;;  %v4855_v18 = vpop.permute.xlu0 %1639 }
 0x33d   : > { %6893 = vst [vmem:[#allocation58_spill] sm:$0xff] %v4853_v31  ;;  %6894 = vst [vmem:[#allocation59_spill] sm:$0xff] %v4855_v18  ;;  %v5217_v31 = vld [vmem:[#allocation7 + $0x16] ss:$8 sm:$0x3] }
 0x33e   : > { %3094 = vrot.lane.b32.xlu1 %v4572_v9, %s6717_s29  ;;  %3092 = vrot.lane.b32.xlu0 %v4569_v24, %s6717_s29  ;;  %s3895_s29 = smov 78  }
 0x340   : > { %v4861_v37 = vpop.permute.xlu1 %1688  ;;  %v4863_v51 = vpop.permute.xlu0 %1686 }
 0x341   : > { %6895 = vst [vmem:[#allocation60_spill] sm:$0xff] %v4861_v37  ;;  %6896 = vst [vmem:[#allocation61_spill] sm:$0xff] %v4863_v51  ;;  %v5213_v37 = vld [vmem:[#allocation7 + $0x14] ss:$8 sm:$0x3] }
 0x342   : > { %3141 = vrot.lane.b32.xlu1 %v4572_v9, %s3894_s22  ;;  %3139 = vrot.lane.b32.xlu0 %v4569_v24, %s3894_s22 }
 0x344   : > { %v4874_v55 = vpop.permute.xlu1 %1735  ;;  %v4876_v29 = vpop.permute.xlu0 %1733 }
 0x345   : > { %6897 = vst [vmem:[#allocation62_spill] sm:$0xff] %v4874_v55  ;;  %6898 = vst [vmem:[#allocation63_spill] sm:$0xff] %v4876_v29  ;;  %v1059_v29 = vld [vmem:[#allocation7 + $0x63] ss:$8 sm:$0x3] }
 0x346   : > { %944 = vrot.lane.b32.xlu1 %v4880_v52, %s3849_s11  ;;  %3186 = vrot.lane.b32.xlu0 %v4569_v24, %s3895_s29  ;;  %v1012_v24 = vld [vmem:[#allocation7 + $0x62] ss:$8 sm:$0x3]  ;;  %v1064_v6 = vrot.slane %v1059_v29, %v4351_v50 }
 0x347   : > { %v1021_v9 = vrot.slane %v1012_v24, %v4354_v63 }
 0x348   : > { %v4891_v13 = vpop.permute.xlu1 %1782  ;;  %v4893_v5 = vpop.permute.xlu0 %1780 }
 0x349   : > { %6899 = vst [vmem:[#allocation64_spill] sm:$0xff] %v4891_v13  ;;  %6900 = vst [vmem:[#allocation65_spill] sm:$0xff] %v4893_v5  ;;  %v5186_v5 = vld [vmem:[#allocation7 + $0x13] ss:$8 sm:$0x3] }
 0x34a   : > { %990 = vrot.lane.b32.xlu1 %v4880_v52, %s3850_s14  ;;  %942 = vrot.lane.b32.xlu0 %v4897_v16, %s3849_s11  ;;  %s6925_s11 = smov 29   ;;  %6973 = vst [vmem:[#allocation120_spill] sm:$0xff] %v5186_v5  ;;  %v5252_v5 = vld [vmem:[#allocation7 + $0x22] ss:$8 sm:$0x3] }
 0x34b   : > { %6979 = vst [vmem:[#allocation124_spill] sm:$0xff] %v5252_v5 }
 0x34c   : > { %v4903_v32 = vpop.permute.xlu1 %1829  ;;  %v4905_v61 = vpop.permute.xlu0 %1827 }
 0x34d   : > { %6901 = vst [vmem:[#allocation66_spill] sm:$0xff] %v4903_v32  ;;  %6902 = vst [vmem:[#allocation67_spill] sm:$0xff] %v4905_v61  ;;  %v1017_v32 = vrot.slane %v1012_v24, %v4351_v50 }
 0x34e   : > { %1037 = vrot.lane.b32.xlu1 %v4880_v52, %s3851_s6  ;;  %988 = vrot.lane.b32.xlu0 %v4897_v16, %s3850_s14  ;;  %s6928_s14 = smov 19  }
 0x350   : > { %v4911_v57 = vpop.permute.xlu1 %1876  ;;  %v4913_v2 = vpop.permute.xlu0 %1874 }
 0x351   : > { %6903 = vst [vmem:[#allocation68_spill] sm:$0xff] %v4911_v57  ;;  %6904 = vst [vmem:[#allocation69_spill] sm:$0xff] %v4913_v2 }
 0x352   : > { %1084 = vrot.lane.b32.xlu1 %v4880_v52, %s3852_s25  ;;  %1035 = vrot.lane.b32.xlu0 %v4897_v16, %s3851_s6  ;;  %s6931_s6 = smov 18  }
 0x354   : > { %v4919_v10 = vpop.permute.xlu1 %1923  ;;  %v4921_v28 = vpop.permute.xlu0 %1921 }
 0x355   : > { %6905 = vst [vmem:[#allocation70_spill] sm:$0xff] %v4919_v10  ;;  %6906 = vst [vmem:[#allocation71_spill] sm:$0xff] %v4921_v28  ;;  %v5151_v10 = vld [vmem:[#allocation7 + $0x10] ss:$8 sm:$0x3] }
 0x356   : > { %1131 = vrot.lane.b32.xlu1 %v4880_v52, %s3853_s5  ;;  %1082 = vrot.lane.b32.xlu0 %v4897_v16, %s3852_s25  ;;  %s6934_s25 = smov 17   ;;  %v5174_v28 = vld [vmem:[#allocation7 + $0x11] ss:$8 sm:$0x3] }
 0x358   : > { %v4927_v59 = vpop.permute.xlu1 %1970  ;;  %v4929_v47 = vpop.permute.xlu0 %1968 }
 0x359   : > { %6907 = vst [vmem:[#allocation72_spill] sm:$0xff] %v4927_v59  ;;  %6908 = vst [vmem:[#allocation73_spill] sm:$0xff] %v4929_v47  ;;  %v5184_v47 = vld [vmem:[#allocation7 + $0x12] ss:$8 sm:$0x3] }
 0x35a   : > { %1178 = vrot.lane.b32.xlu1 %v4880_v52, %s3854_s8  ;;  %1129 = vrot.lane.b32.xlu0 %v4897_v16, %s3853_s5  ;;  %s6937_s5 = smov 16  }
 0x35c   : > { %v4935_v7 = vpop.permute.xlu1 %2017  ;;  %v4937_v42 = vpop.permute.xlu0 %2015 }
 0x35d   : > { %6909 = vst [vmem:[#allocation74_spill] sm:$0xff] %v4935_v7  ;;  %6910 = vst [vmem:[#allocation75_spill] sm:$0xff] %v4937_v42  ;;  %v5137_v42 = vld [vmem:[#allocation7 + $0x5] ss:$8 sm:$0x3] }
 0x35e   : > { %1225 = vrot.lane.b32.xlu1 %v4880_v52, %s3855_s13  ;;  %1176 = vrot.lane.b32.xlu0 %v4897_v16, %s3854_s8  ;;  %s6940_s8 = smov 15   ;;  %v5139_v7 = vld [vmem:[#allocation7 + $0x6] ss:$8 sm:$0x3] }
 0x360   : > { %v4943_v49 = vpop.permute.xlu1 %2154  ;;  %v4945_v44 = vpop.permute.xlu0 %2152 }
 0x361   : > { %6911 = vst [vmem:[#allocation76_spill] sm:$0xff] %v4943_v49  ;;  %6912 = vst [vmem:[#allocation77_spill] sm:$0xff] %v4945_v44  ;;  %v5149_v44 = vld [vmem:[#allocation7 + $0x7] ss:$8 sm:$0x3]  ;;  %v1068_v49 = vrot.slane %v1059_v29, %v4354_v63 }
 0x362   : > { %1272 = vrot.lane.b32.xlu1 %v4880_v52, %s3856_s30  ;;  %1223 = vrot.lane.b32.xlu0 %v4897_v16, %s3855_s13  ;;  %s6943_s13 = smov 14  }
 0x364   : > { %v4951_v26 = vpop.permute.xlu1 %2201  ;;  %v4953_v8 = vpop.permute.xlu0 %2199 }
 0x365   : > { %6913 = vst [vmem:[#allocation78_spill] sm:$0xff] %v4951_v26  ;;  %6914 = vst [vmem:[#allocation79_spill] sm:$0xff] %v4953_v8  ;;  %v5117_v26 = vld [vmem:[#allocation7 + $0x1] ss:$8 sm:$0x3] }
 0x366   : > { %1319 = vrot.lane.b32.xlu1 %v4880_v52, %s3857_s10  ;;  %1270 = vrot.lane.b32.xlu0 %v4897_v16, %s3856_s30  ;;  %s6946_s30 = smov 13  }
 0x368   : > { %v4959_v45 = vpop.permute.xlu1 %2248  ;;  %v4961_v53 = vpop.permute.xlu0 %2246 }
 0x369   : > { %6915 = vst [vmem:[#allocation80_spill] sm:$0xff] %v4959_v45  ;;  %6916 = vst [vmem:[#allocation81_spill] sm:$0xff] %v4961_v53 }
 0x36a   : > { %1366 = vrot.lane.b32.xlu1 %v4880_v52, %s3858_s12  ;;  %1317 = vrot.lane.b32.xlu0 %v4897_v16, %s3857_s10  ;;  %s6949_s10 = smov 3  }
 0x36c   : > { %v4967_v30 = vpop.permute.xlu1 %2295  ;;  %v4969_v12 = vpop.permute.xlu0 %2293 }
 0x36d   : > { %6917 = vst [vmem:[#allocation82_spill] sm:$0xff] %v4967_v30  ;;  %6918 = vst [vmem:[#allocation83_spill] sm:$0xff] %v4969_v12 }
 0x36e   : > { %1413 = vrot.lane.b32.xlu1 %v4880_v52, %s3859_s23  ;;  %1364 = vrot.lane.b32.xlu0 %v4897_v16, %s3858_s12  ;;  %s6952_s12 = smov 2  }
 0x370   : > { %v4975_v8 = vpop.permute.xlu1 %2342  ;;  %v4977_v45 = vpop.permute.xlu0 %2340 }
 0x371   : > { %6919 = vst [vmem:[#allocation84_spill] sm:$0xff] %v4975_v8  ;;  %6920 = vst [vmem:[#allocation85_spill] sm:$0xff] %v4977_v45 }
 0x372   : > { %1460 = vrot.lane.b32.xlu1 %v4880_v52, %s3860_s7  ;;  %1411 = vrot.lane.b32.xlu0 %v4897_v16, %s3859_s23  ;;  %s6955_s23 = smov 1  }
 0x374   : > { %v4983_v53 = vpop.permute.xlu1 %2389  ;;  %v4985_v30 = vpop.permute.xlu0 %2387 }
 0x375   : > { %6921 = vst [vmem:[#allocation86_spill] sm:$0xff] %v4983_v53  ;;  %6922 = vst [vmem:[#allocation87_spill] sm:$0xff] %v4985_v30 }
 0x376   : > { %1507 = vrot.lane.b32.xlu1 %v4880_v52, %s3861_s26  ;;  %1458 = vrot.lane.b32.xlu0 %v4897_v16, %s3860_s7  ;;  %s6958_s7 = smov 127  }
 0x378   : > { %v4991_v12 = vpop.permute.xlu1 %2436  ;;  %v4993_v8 = vpop.permute.xlu0 %2434 }
 0x379   : > { %6923 = vst [vmem:[#allocation88_spill] sm:$0xff] %v4991_v12  ;;  %6924 = vst [vmem:[#allocation89_spill] sm:$0xff] %v4993_v8 }
 0x37a   : > { %1554 = vrot.lane.b32.xlu1 %v4880_v52, %s6925_s11  ;;  %1505 = vrot.lane.b32.xlu0 %v4897_v16, %s3861_s26  ;;  %s6961_s26 = smov 126  }
 0x37c   : > { %v4999_v45 = vpop.permute.xlu1 %2483  ;;  %v5001_v53 = vpop.permute.xlu0 %2481 }
 0x37d   : > { %6926 = vst [vmem:[#allocation90_spill] sm:$0xff] %v4999_v45  ;;  %6927 = vst [vmem:[#allocation91_spill] sm:$0xff] %v5001_v53 }
 0x37e   : > { %1601 = vrot.lane.b32.xlu1 %v4880_v52, %s6928_s14  ;;  %1552 = vrot.lane.b32.xlu0 %v4897_v16, %s6925_s11  ;;  %s6966_s11 = smov 115  }
 0x380   : > { %v5007_v30 = vpop.permute.xlu1 %2530  ;;  %v5009_v12 = vpop.permute.xlu0 %2528 }
 0x381   : > { %6929 = vst [vmem:[#allocation92_spill] sm:$0xff] %v5007_v30  ;;  %6930 = vst [vmem:[#allocation93_spill] sm:$0xff] %v5009_v12 }
 0x382   : > { %1648 = vrot.lane.b32.xlu1 %v4880_v52, %s6931_s6  ;;  %1599 = vrot.lane.b32.xlu0 %v4897_v16, %s6928_s14  ;;  %s6969_s14 = smov 114  }
 0x384   : > { %v5015_v8 = vpop.permute.xlu1 %2577  ;;  %v5017_v45 = vpop.permute.xlu0 %2575 }
 0x385   : > { %6932 = vst [vmem:[#allocation94_spill] sm:$0xff] %v5015_v8  ;;  %6933 = vst [vmem:[#allocation95_spill] sm:$0xff] %v5017_v45 }
 0x386   : > { %1695 = vrot.lane.b32.xlu1 %v4880_v52, %s6934_s25  ;;  %1646 = vrot.lane.b32.xlu0 %v4897_v16, %s6931_s6  ;;  %s6974_s6 = smov 112  }
 0x388   : > { %v5023_v53 = vpop.permute.xlu1 %2624  ;;  %v5025_v30 = vpop.permute.xlu0 %2622 }
 0x389   : > { %6935 = vst [vmem:[#allocation96_spill] sm:$0xff] %v5023_v53  ;;  %6936 = vst [vmem:[#allocation97_spill] sm:$0xff] %v5025_v30 }
 0x38a   : > { %1742 = vrot.lane.b32.xlu1 %v4880_v52, %s6937_s5  ;;  %1693 = vrot.lane.b32.xlu0 %v4897_v16, %s6934_s25  ;;  %s6976_s25 = smov 111  }
 0x38c   : > { %v5031_v12 = vpop.permute.xlu1 %2671  ;;  %v5033_v8 = vpop.permute.xlu0 %2669 }
 0x38d   : > { %6938 = vst [vmem:[#allocation98_spill] sm:$0xff] %v5031_v12  ;;  %6939 = vst [vmem:[#allocation99_spill] sm:$0xff] %v5033_v8 }
 0x38e   : > { %1789 = vrot.lane.b32.xlu1 %v4880_v52, %s6940_s8  ;;  %1740 = vrot.lane.b32.xlu0 %v4897_v16, %s6937_s5 }
 0x390   : > { %v5039_v45 = vpop.permute.xlu1 %2718  ;;  %v5041_v53 = vpop.permute.xlu0 %2716 }
 0x391   : > { %6941 = vst [vmem:[#allocation100_spill] sm:$0xff] %v5039_v45  ;;  %6942 = vst [vmem:[#allocation101_spill] sm:$0xff] %v5041_v53 }
 0x392   : > { %1836 = vrot.lane.b32.xlu1 %v4880_v52, %s6943_s13  ;;  %1787 = vrot.lane.b32.xlu0 %v4897_v16, %s6940_s8  ;;  %s6980_s8 = smov 110  }
 0x394   : > { %v5047_v30 = vpop.permute.xlu1 %2765  ;;  %v5049_v12 = vpop.permute.xlu0 %2763 }
 0x395   : > { %6944 = vst [vmem:[#allocation102_spill] sm:$0xff] %v5047_v30  ;;  %6945 = vst [vmem:[#allocation103_spill] sm:$0xff] %v5049_v12 }
 0x396   : > { %1883 = vrot.lane.b32.xlu1 %v4880_v52, %s6946_s30  ;;  %1834 = vrot.lane.b32.xlu0 %v4897_v16, %s6943_s13  ;;  %s6981_s13 = smov 109  }
 0x398   : > { %v5055_v8 = vpop.permute.xlu1 %2812  ;;  %v5057_v45 = vpop.permute.xlu0 %2810 }
 0x399   : > { %6947 = vst [vmem:[#allocation104_spill] sm:$0xff] %v5055_v8  ;;  %6948 = vst [vmem:[#allocation105_spill] sm:$0xff] %v5057_v45 }
 0x39a   : > { %1930 = vrot.lane.b32.xlu1 %v4880_v52, %s6949_s10  ;;  %1881 = vrot.lane.b32.xlu0 %v4897_v16, %s6946_s30  ;;  %s6982_s30 = smov 99  }
 0x39c   : > { %v5063_v53 = vpop.permute.xlu1 %2859  ;;  %v5065_v30 = vpop.permute.xlu0 %2857 }
 0x39d   : > { %6950 = vst [vmem:[#allocation106_spill] sm:$0xff] %v5063_v53  ;;  %6951 = vst [vmem:[#allocation107_spill] sm:$0xff] %v5065_v30 }
 0x39e   : > { %1977 = vrot.lane.b32.xlu1 %v4880_v52, %s6952_s12  ;;  %1928 = vrot.lane.b32.xlu0 %v4897_v16, %s6949_s10  ;;  %s6989_s10 = smov 98  }
 0x3a0   : > { %v5071_v12 = vpop.permute.xlu1 %2906  ;;  %v5073_v8 = vpop.permute.xlu0 %2904 }
 0x3a1   : > { %6953 = vst [vmem:[#allocation108_spill] sm:$0xff] %v5071_v12  ;;  %6954 = vst [vmem:[#allocation109_spill] sm:$0xff] %v5073_v8 }
 0x3a2   : > { %2024 = vrot.lane.b32.xlu1 %v4880_v52, %s6955_s23  ;;  %1975 = vrot.lane.b32.xlu0 %v4897_v16, %s6952_s12  ;;  %s6992_s12 = smov 97  }
 0x3a4   : > { %v5079_v45 = vpop.permute.xlu1 %2953  ;;  %v5081_v53 = vpop.permute.xlu0 %2951 }
 0x3a5   : > { %6956 = vst [vmem:[#allocation110_spill] sm:$0xff] %v5079_v45  ;;  %6957 = vst [vmem:[#allocation111_spill] sm:$0xff] %v5081_v53 }
 0x3a6   : > { %2161 = vrot.lane.b32.xlu1 %v4880_v52, %s6958_s7  ;;  %2022 = vrot.lane.b32.xlu0 %v4897_v16, %s6955_s23  ;;  %s6995_s23 = smov 96  }
 0x3a8   : > { %v5087_v30 = vpop.permute.xlu1 %3000  ;;  %v5089_v12 = vpop.permute.xlu0 %2998 }
 0x3a9   : > { %6959 = vst [vmem:[#allocation112_spill] sm:$0xff] %v5087_v30  ;;  %6960 = vst [vmem:[#allocation113_spill] sm:$0xff] %v5089_v12 }
 0x3aa   : > { %2208 = vrot.lane.b32.xlu1 %v4880_v52, %s6961_s26  ;;  %2159 = vrot.lane.b32.xlu0 %v4897_v16, %s6958_s7  ;;  %s7000_s7 = smov 95  }
 0x3ac   : > { %v5095_v8 = vpop.permute.xlu1 %3047  ;;  %v5097_v45 = vpop.permute.xlu0 %3045 }
 0x3ad   : > { %6962 = vst [vmem:[#allocation114_spill] sm:$0xff] %v5095_v8  ;;  %6963 = vst [vmem:[#allocation115_spill] sm:$0xff] %v5097_v45  ;;  %v5115_v45 = vld [vmem:[#allocation7] ss:$8 sm:$0x3] }
 0x3ae   : > { %2255 = vrot.lane.b32.xlu1 %v4880_v52, %s3875_s20  ;;  %2206 = vrot.lane.b32.xlu0 %v4897_v16, %s6961_s26  ;;  %s7003_s26 = smov 94  }
 0x3b0   : > { %v5103_v53 = vpop.permute.xlu1 %3094  ;;  %v5105_v30 = vpop.permute.xlu0 %3092 }
 0x3b1   : > { %6964 = vst [vmem:[#allocation116_spill] sm:$0xff] %v5103_v53  ;;  %6965 = vst [vmem:[#allocation117_spill] sm:$0xff] %v5105_v30  ;;  %v6970_v53 = vld [vmem:[#allocation22_spill] sm:$0xff] }
 0x3b2   : > { %2302 = vrot.lane.b32.xlu1 %v4880_v52, %s6966_s11  ;;  %2253 = vrot.lane.b32.xlu0 %v4897_v16, %s3875_s20  ;;  %vm923_vm11 = vcmp.lt.s32.totalorder %v6970_v53, 51  ;;  %v5122_v30 = vld [vmem:[#allocation7 + $0x2] ss:$8 sm:$0x3]  ;;  %vm985_vm12 = vcmp.lt.s32.totalorder %v6970_v53, 50  ;;  %s6972_s20 = smov 113  }
 0x3b3   : > { %vm1032_vm13 = vcmp.lt.s32.totalorder %v6970_v53, 49  ;;  %vm1079_vm14 = vcmp.lt.s32.totalorder %v6970_v53, 48  ;;  %vm1126_vm15 = vcmp.lt.s32.totalorder %v6970_v53, 47  ;;  %vm1173_vm0 = vcmp.lt.s32.totalorder %v6970_v53, 46 }
 0x3b4   : > { %v5111_v12 = vpop.permute.xlu1 %3141  ;;  %v5113_v8 = vpop.permute.xlu0 %3139  ;;  %vm1220_vm1 = vcmp.lt.s32.totalorder %v6970_v53, 45  ;;  %vm1267_vm2 = vcmp.lt.s32.totalorder %v6970_v53, 35  ;;  %vm1314_vm3 = vcmp.lt.s32.totalorder %v6970_v53, 34  ;;  %vm1361_vm4 = vcmp.lt.s32.totalorder %v6970_v53, 33 }
 0x3b5   : > { %6967 = vst [vmem:[#allocation118_spill] sm:$0xff] %v5111_v12  ;;  %6968 = vst [vmem:[#allocation119_spill] sm:$0xff] %v5113_v8  ;;  %v5129_v12 = vld [vmem:[#allocation7 + $0x4] ss:$8 sm:$0x3]  ;;  %vm1408_vm5 = vcmp.lt.s32.totalorder %v6970_v53, 32 }
 0x3b6   : > { %2349 = vrot.lane.b32.xlu1 %v4880_v52, %s6969_s14  ;;  %2300 = vrot.lane.b32.xlu0 %v4897_v16, %s6966_s11  ;;  %vm1455_vm6 = vcmp.lt.s32.totalorder %v6970_v53, 31  ;;  %vm1502_vm7 = vcmp.lt.s32.totalorder %v6970_v53, 30  ;;  %vm1549_vm8 = vcmp.lt.s32.totalorder %v6970_v53, 29  ;;  %s7006_s11 = smov 93   ;;  %vm1596_vm9 = vcmp.lt.s32.totalorder %v6970_v53, 19 }
 0x3b7   : > { %vm1643_vm10 = vcmp.lt.s32.totalorder %v6970_v53, 18 }
 0x3b8   : > { %v945_v8 = vpop.permute.xlu1 %944  ;;  %v5131_v46 = vpop.permute.xlu0 %3186 }
 0x3b9   : > { %6971 = vst [vmem:[#allocation22_spill] sm:$0xff] %v5131_v46  ;;  %v965_v46 = vld [vmem:[#allocation7 + $0x61] ss:$8 sm:$0x3] }
 0x3ba   : > { %2396 = vrot.lane.b32.xlu1 %v4880_v52, %s6972_s20  ;;  %2347 = vrot.lane.b32.xlu0 %v4897_v16, %s6969_s14  ;;  %v970_v59 = vrot.slane %v965_v46, %v4351_v50  ;;  %v974_v13 = vrot.slane %v965_v46, %v4354_v63  ;;  %s7011_s14 = smov 83  }
 0x3bc   : > { %v991_v57 = vpop.permute.xlu1 %990  ;;  %v943_v61 = vpop.permute.xlu0 %942 }
 0x3bd   : > { %v946_v55 = vsel %vm923_vm11, %v943_v61, %v945_v8  ;;  %v947_v46 = vsel %vm923_vm11, %v945_v8, %v943_v61  ;;  %v5215_v8 = vld [vmem:[#allocation7 + $0x15] ss:$8 sm:$0x3] }
 0x3be   : > { %2443 = vrot.lane.b32.xlu1 %v4880_v52, %s6974_s6  ;;  %2394 = vrot.lane.b32.xlu0 %v4897_v16, %s6972_s20  ;;  %v977_v51 = vmul.f32 %v970_v59, %v947_v46  ;;  %v978_v11 = vmul.f32 %v974_v13, %v946_v55  ;;  %v1106_v55 = vld [vmem:[#allocation7 + $0x64] ss:$8 sm:$0x3]  ;;  %s7017_s20 = smov 82  }
 0x3c0   : > { %v1038_v61 = vpop.permute.xlu1 %1037  ;;  %v989_v18 = vpop.permute.xlu0 %988 }
 0x3c1   : > { %v992_v24 = vsel %vm985_vm12, %v989_v18, %v991_v57  ;;  %v993_v2 = vsel %vm985_vm12, %v991_v57, %v989_v18  ;;  %v5246_v57 = vld [vmem:[#allocation7 + $0x21] ss:$8 sm:$0x3] }
 0x3c2   : > { %v1024_v54 = vmul.f32 %v1017_v32, %v993_v2  ;;  %v1025_v0 = vmul.f32 %v1021_v9, %v992_v24  ;;  %2490 = vrot.lane.b32.xlu1 %v4880_v52, %s6976_s25  ;;  %2441 = vrot.lane.b32.xlu0 %v4897_v16, %s6974_s6  ;;  %v5244_v32 = vld [vmem:[#allocation7 + $0x20] ss:$8 sm:$0x3]  ;;  %6978 = vst [vmem:[#allocation123_spill] sm:$0xff] %v5246_v57  ;;  %s7030_s6 = smov 80  }
 0x3c3   : > { %6977 = vst [vmem:[#allocation122_spill] sm:$0xff] %v5244_v32 }
 0x3c4   : > { %v1026_v2 = vadd.f32 %v1024_v54, %v977_v51  ;;  %v1027_v59 = vadd.f32 %v1025_v0, %v978_v11  ;;  %v1085_v46 = vpop.permute.xlu1 %1084  ;;  %v1036_v24 = vpop.permute.xlu0 %1035  ;;  %v1111_v54 = vrot.slane %v1106_v55, %v4351_v50  ;;  %v1115_v11 = vrot.slane %v1106_v55, %v4354_v63 }
 0x3c5   : > { %v1039_v9 = vsel %vm1032_vm13, %v1036_v24, %v1038_v61  ;;  %v1040_v13 = vsel %vm1032_vm13, %v1038_v61, %v1036_v24  ;;  %v5281_v24 = vld [vmem:[#allocation7 + $0x25] ss:$8 sm:$0x3] }
 0x3c6   : > { %v1071_v51 = vmul.f32 %v1064_v6, %v1040_v13  ;;  %v1072_v0 = vmul.f32 %v1068_v49, %v1039_v9  ;;  %2537 = vrot.lane.b32.xlu1 %v4880_v52, %s6980_s8  ;;  %2488 = vrot.lane.b32.xlu0 %v4897_v16, %s6976_s25  ;;  %v1153_v49 = vld [vmem:[#allocation7 + $0x65] ss:$8 sm:$0x3]  ;;  %v5279_v13 = vld [vmem:[#allocation7 + $0x24] ss:$8 sm:$0x3] }
 0x3c7   : > { %s3562_s25 = sshll.u32 %s3946_s19, 12 }
 0x3c8   : > { %v1073_v61 = vadd.f32 %v1071_v51, %v1026_v2  ;;  %v1074_v29 = vadd.f32 %v1072_v0, %v1027_v59  ;;  %v1132_v18 = vpop.permute.xlu1 %1131  ;;  %v1083_v6 = vpop.permute.xlu0 %1082  ;;  %v1158_v2 = vrot.slane %v1153_v49, %v4351_v50  ;;  %v1162_v59 = vrot.slane %v1153_v49, %v4354_v63 }
 0x3c9   : > { %v1086_v55 = vsel %vm1079_vm14, %v1083_v6, %v1085_v46  ;;  %v1087_v9 = vsel %vm1079_vm14, %v1085_v46, %v1083_v6  ;;  %v987_v6 = vsel %vm985_vm12, %v4741_v33, %v4743_v20  ;;  %v924_v46 = vsel %vm923_vm11, %v4735_v17, %v4733_v43 }
 0x3ca   : > { %v1118_v5 = vmul.f32 %v1111_v54, %v1087_v9  ;;  %v1119_v62 = vmul.f32 %v1115_v11, %v1086_v55  ;;  %2584 = vrot.lane.b32.xlu1 %v4880_v52, %s6981_s13  ;;  %2535 = vrot.lane.b32.xlu0 %v4897_v16, %s6980_s8  ;;  %v1200_v54 = vld [vmem:[#allocation7 + $0x66] ss:$8 sm:$0x3]  ;;  %v986_v11 = vsel %vm985_vm12, %v4743_v20, %v4741_v33  ;;  %vm1737_vm12 = vcmp.lt.s32.totalorder %v6970_v53, 16 }
 0x3cb   : > { %v925_v0 = vsel %vm923_vm11, %v4733_v43, %v4735_v17  ;;  %v6983_v43 = vrot.slane %v5117_v26, %v4351_v50  ;;  %vm1690_vm11 = vcmp.lt.s32.totalorder %v6970_v53, 17 }
 0x3cc   : > { %v1120_v49 = vadd.f32 %v1118_v5, %v1073_v61  ;;  %v1121_v55 = vadd.f32 %v1119_v62, %v1074_v29  ;;  %v1179_v9 = vpop.permute.xlu1 %1178  ;;  %v1130_v32 = vpop.permute.xlu0 %1129  ;;  %v1205_v5 = vrot.slane %v1200_v54, %v4351_v50  ;;  %v1209_v29 = vrot.slane %v1200_v54, %v4354_v63 }
 0x3cd   : > { %v1133_v51 = vsel %vm1126_vm15, %v1130_v32, %v1132_v18  ;;  %v1134_v33 = vsel %vm1126_vm15, %v1132_v18, %v1130_v32  ;;  %v1007_v17 = vmul.f32 %v6983_v43, %v987_v6  ;;  %v6984_v61 = vrot.slane %v5117_v26, %v4354_v63  ;;  %v1247_v43 = vld [vmem:[#allocation7 + $0x67] ss:$8 sm:$0x3] }
 0x3ce   : > { %v1165_v20 = vmul.f32 %v1158_v2, %v1134_v33  ;;  %v1166_v62 = vmul.f32 %v1162_v59, %v1133_v51  ;;  %2631 = vrot.lane.b32.xlu1 %v4880_v52, %s6982_s30  ;;  %v1033_v18 = vsel %vm1032_vm13, %v4751_v25, %v4749_v15  ;;  %v1034_v32 = vsel %vm1032_vm13, %v4749_v15, %v4751_v25 }
 0x3cf   : > { %v1008_v57 = vmul.f32 %v6984_v61, %v986_v11  ;;  %2582 = vrot.lane.b32.xlu0 %v4897_v16, %s6981_s13  ;;  %v6985_v2 = vrot.slane %v5115_v45, %v4351_v50  ;;  %v6986_v26 = vrot.slane %v5115_v45, %v4354_v63  ;;  %v1080_v15 = vsel %vm1079_vm14, %v4759_v60, %v4757_v48 }
 0x3d0   : > { %v1167_v54 = vadd.f32 %v1165_v20, %v1120_v49  ;;  %v1168_v11 = vadd.f32 %v1166_v62, %v1121_v55  ;;  %v1226_v6 = vpop.permute.xlu1 %1225  ;;  %v1177_v33 = vpop.permute.xlu0 %1176  ;;  %v1081_v25 = vsel %vm1079_vm14, %v4757_v48, %v4759_v60  ;;  %v6988_v55 = vrot.slane %v5122_v30, %v4354_v63  ;;  %v5371_v62 = vld [vmem:[#allocation7 + $0x26] ss:$8 sm:$0x3] }
 0x3d1   : > { %v960_v59 = vmul.f32 %v6985_v2, %v925_v0  ;;  %v961_v51 = vmul.f32 %v6986_v26, %v924_v46  ;;  %v1180_v45 = vsel %vm1173_vm0, %v1177_v33, %v1179_v9  ;;  %v1181_v0 = vsel %vm1173_vm0, %v1179_v9, %v1177_v33 }
 0x3d2   : > { %v6987_v46 = vrot.slane %v5122_v30, %v4351_v50  ;;  %v1055_v20 = vmul.f32 %v6988_v55, %v1033_v18  ;;  %v1212_v61 = vmul.f32 %v1205_v5, %v1181_v0  ;;  %v1213_v48 = vmul.f32 %v1209_v29, %v1180_v45  ;;  %2678 = vrot.lane.b32.xlu1 %v4880_v52, %s6989_s10 }
 0x3d3   : > { %v1009_v60 = vadd.f32 %v1007_v17, %v960_v59  ;;  %v1010_v2 = vadd.f32 %v1008_v57, %v961_v51  ;;  %2629 = vrot.lane.b32.xlu0 %v4897_v16, %s6982_s30  ;;  %v1252_v9 = vrot.slane %v1247_v43, %v4351_v50  ;;  %v6990_v30 = vrot.slane %v5127_v35, %v4351_v50  ;;  %v1294_v17 = vld [vmem:[#allocation7 + $0x70] ss:$8 sm:$0x3]  ;;  %s6553_s30 = scalar_lea.hbm %s6617_s4, %s3562_s25 }
 0x3d4   : > { %v1054_v49 = vmul.f32 %v6987_v46, %v1034_v32  ;;  %v1256_v32 = vrot.slane %v1247_v43, %v4354_v63  ;;  %v6991_v5 = vrot.slane %v5127_v35, %v4354_v63  ;;  %v1214_v26 = vadd.f32 %v1212_v61, %v1167_v54  ;;  %v1273_v45 = vpop.permute.xlu1 %1272  ;;  %v1224_v54 = vpop.permute.xlu0 %1223 }
 0x3d5   : > { %v1101_v18 = vmul.f32 %v6990_v30, %v1081_v25  ;;  %v1215_v33 = vadd.f32 %v1213_v48, %v1168_v11  ;;  %v1127_v57 = vsel %vm1126_vm15, %v4767_v38, %v4765_v34  ;;  %v1128_v59 = vsel %vm1126_vm15, %v4765_v34, %v4767_v38 }
 0x3d6   : > { %v1102_v29 = vmul.f32 %v6991_v5, %v1080_v15  ;;  %v1987_v35 = vrot.slane %v5371_v62, %v4351_v50  ;;  %v1991_v51 = vrot.slane %v5371_v62, %v4354_v63  ;;  %v1056_v11 = vadd.f32 %v1054_v49, %v1009_v60  ;;  %2725 = vrot.lane.b32.xlu1 %v4880_v52, %s6992_s12 }
 0x3d7   : > { %v1057_v43 = vadd.f32 %v1055_v20, %v1010_v2  ;;  %v1227_v15 = vsel %vm1220_vm1, %v1224_v54, %v1226_v6  ;;  %v1228_v25 = vsel %vm1220_vm1, %v1226_v6, %v1224_v54  ;;  %2676 = vrot.lane.b32.xlu0 %v4897_v16, %s6989_s10  ;;  %v1299_v0 = vrot.slane %v1294_v17, %v4351_v50  ;;  %v1341_v2 = vld [vmem:[#allocation7 + $0x71] ss:$8 sm:$0x3]  ;;  %s3426_s10 = scalar_lea.sflag [#allocation4], %s4062_s1 }
 0x3d8   : > { %v1259_v34 = vmul.f32 %v1252_v9, %v1228_v25  ;;  %v1260_v38 = vmul.f32 %v1256_v32, %v1227_v15  ;;  %v1303_v46 = vrot.slane %v1294_v17, %v4354_v63  ;;  %v1103_v49 = vadd.f32 %v1101_v18, %v1056_v11  ;;  %v1320_v60 = vpop.permute.xlu1 %1319  ;;  %v1271_v5 = vpop.permute.xlu0 %1270  ;;  %v1388_v15 = vld [vmem:[#allocation7 + $0x72] ss:$8 sm:$0x3] }
 0x3d9   : > { %v1104_v55 = vadd.f32 %v1102_v29, %v1057_v43  ;;  %v6993_v20 = vrot.slane %v5129_v12, %v4351_v50  ;;  %v6994_v6 = vrot.slane %v5129_v12, %v4354_v63  ;;  %v1174_v9 = vsel %vm1173_vm0, %v4775_v21, %v4773_v40 }
 0x3da   : > { %v1175_v32 = vsel %vm1173_vm0, %v4773_v40, %v4775_v21  ;;  %v1261_v30 = vadd.f32 %v1259_v34, %v1214_v26  ;;  %v1262_v18 = vadd.f32 %v1260_v38, %v1215_v33  ;;  %v1221_v12 = vsel %vm1220_vm1, %v4783_v1, %v4781_v36  ;;  %2772 = vrot.lane.b32.xlu1 %v4880_v52, %s6995_s23 }
 0x3db   : > { %v1148_v61 = vmul.f32 %v6993_v20, %v1128_v59  ;;  %v1149_v48 = vmul.f32 %v6994_v6, %v1127_v57  ;;  %v1222_v29 = vsel %vm1220_vm1, %v4781_v36, %v4783_v1  ;;  %v1274_v17 = vsel %vm1267_vm2, %v1271_v5, %v1273_v45  ;;  %2723 = vrot.lane.b32.xlu0 %v4897_v16, %s6992_s12 }
 0x3dc   : > { %v1275_v40 = vsel %vm1267_vm2, %v1273_v45, %v1271_v5  ;;  %v1307_v26 = vmul.f32 %v1303_v46, %v1274_v17  ;;  %v1346_v33 = vrot.slane %v1341_v2, %v4351_v50  ;;  %v1350_v36 = vrot.slane %v1341_v2, %v4354_v63  ;;  %v1367_v43 = vpop.permute.xlu1 %1366  ;;  %v1318_v46 = vpop.permute.xlu0 %1317 }
 0x3dd   : > { %v1306_v21 = vmul.f32 %v1299_v0, %v1275_v40  ;;  %v1150_v1 = vadd.f32 %v1148_v61, %v1103_v49  ;;  %v1151_v57 = vadd.f32 %v1149_v48, %v1104_v55  ;;  %v6996_v59 = vrot.slane %v5137_v42, %v4351_v50 }
 0x3de   : > { %v6997_v54 = vrot.slane %v5137_v42, %v4354_v63  ;;  %v1268_v25 = vsel %vm1267_vm2, %v4791_v22, %v4789_v4  ;;  %v1269_v34 = vsel %vm1267_vm2, %v4789_v4, %v4791_v22  ;;  %v1309_v0 = vadd.f32 %v1307_v26, %v1262_v18  ;;  %2819 = vrot.lane.b32.xlu1 %v4880_v52, %s7000_s7 }
 0x3df   : > { %v1195_v45 = vmul.f32 %v6996_v59, %v1175_v32  ;;  %v1308_v38 = vadd.f32 %v1306_v21, %v1261_v30  ;;  %v6998_v49 = vrot.slane %v5139_v7, %v4351_v50  ;;  %v6999_v55 = vrot.slane %v5139_v7, %v4354_v63  ;;  %2770 = vrot.lane.b32.xlu0 %v4897_v16, %s6995_s23  ;;  %s3898_s23 = smov [#allocation8]  }
 0x3e0   : > { %v1196_v11 = vmul.f32 %v6997_v54, %v1174_v9  ;;  %v1321_v61 = vsel %vm1314_vm3, %v1318_v46, %v1320_v60  ;;  %v1322_v6 = vsel %vm1314_vm3, %v1320_v60, %v1318_v46  ;;  %v1393_v48 = vrot.slane %v1388_v15, %v4351_v50  ;;  %v1414_v5 = vpop.permute.xlu1 %1413  ;;  %v1365_v26 = vpop.permute.xlu0 %1364 }
 0x3e1   : > { %v1242_v42 = vmul.f32 %v6998_v49, %v1222_v29  ;;  %v1243_v20 = vmul.f32 %v6999_v55, %v1221_v12  ;;  %v1353_v4 = vmul.f32 %v1346_v33, %v1322_v6  ;;  %v1354_v22 = vmul.f32 %v1350_v36, %v1321_v61  ;;  %v1435_v12 = vld [vmem:[#allocation7 + $0x73] ss:$8 sm:$0x3] }
 0x3e2   : > { %v1397_v7 = vrot.slane %v1388_v15, %v4354_v63  ;;  %v1197_v2 = vadd.f32 %v1195_v45, %v1150_v1  ;;  %v1198_v9 = vadd.f32 %v1196_v11, %v1151_v57  ;;  %v7001_v32 = vrot.slane %v5149_v44, %v4351_v50  ;;  %2866 = vrot.lane.b32.xlu1 %v4880_v52, %s7003_s26 }
 0x3e3   : > { %v7002_v60 = vrot.slane %v5149_v44, %v4354_v63  ;;  %v1315_v29 = vsel %vm1314_vm3, %v4799_v19, %v4797_v27  ;;  %v1316_v17 = vsel %vm1314_vm3, %v4797_v27, %v4799_v19  ;;  %v1355_v40 = vadd.f32 %v1353_v4, %v1308_v38  ;;  %2817 = vrot.lane.b32.xlu0 %v4897_v16, %s7000_s7  ;;  %v1482_v38 = vld [vmem:[#allocation7 + $0x74] ss:$8 sm:$0x3]  ;;  %s3778_s7 = sshll.u32 %s3898_s23, 4  ;;  %s3779_s7 = int_to_ptr.vmem [resolvable:$false] %s3778_s7 }
 0x3e4   : > { %v1289_v30 = vmul.f32 %v7001_v32, %v1269_v34  ;;  %v1356_v21 = vadd.f32 %v1354_v22, %v1309_v0  ;;  %v1244_v33 = vadd.f32 %v1242_v42, %v1197_v2  ;;  %v1245_v36 = vadd.f32 %v1243_v20, %v1198_v9  ;;  %v1461_v34 = vpop.permute.xlu1 %1460  ;;  %v1412_v55 = vpop.permute.xlu0 %1411 }
 0x3e5   : > { %v1290_v18 = vmul.f32 %v7002_v60, %v1268_v25  ;;  %v1368_v44 = vsel %vm1361_vm4, %v1365_v26, %v1367_v43  ;;  %v1369_v1 = vsel %vm1361_vm4, %v1367_v43, %v1365_v26  ;;  %v1440_v27 = vrot.slane %v1435_v12, %v4351_v50 }
 0x3e6   : > { %v1400_v57 = vmul.f32 %v1393_v48, %v1369_v1  ;;  %v1401_v59 = vmul.f32 %v1397_v7, %v1368_v44  ;;  %v1444_v19 = vrot.slane %v1435_v12, %v4354_v63  ;;  %v1291_v45 = vadd.f32 %v1289_v30, %v1244_v33  ;;  %2913 = vrot.lane.b32.xlu1 %v4880_v52, %s7006_s11  ;;  %v1529_v30 = vld [vmem:[#allocation7 + $0x75] ss:$8 sm:$0x3] }
 0x3e7   : > { %v1292_v54 = vadd.f32 %v1290_v18, %v1245_v36  ;;  %v7004_v11 = vrot.slane %v5151_v10, %v4351_v50  ;;  %v7005_v43 = vrot.slane %v5151_v10, %v4354_v63  ;;  %v1362_v0 = vsel %vm1361_vm4, %v4807_v41, %v4805_v23  ;;  %2864 = vrot.lane.b32.xlu0 %v4897_v16, %s7003_s26  ;;  %s3780_s26 = scalar_lea.vmem %s3779_s7, 8192 }
 0x3e8   : > { %v1363_v46 = vsel %vm1361_vm4, %v4805_v23, %v4807_v41  ;;  %v1402_v49 = vadd.f32 %v1400_v57, %v1355_v40  ;;  %v1403_v42 = vadd.f32 %v1401_v59, %v1356_v21  ;;  %v1409_v10 = vsel %vm1408_vm5, %v4815_v56, %v4813_v58  ;;  %v1508_v32 = vpop.permute.xlu1 %1507  ;;  %v7012_v57 = vld [vmem:[#allocation120_spill] sm:$0xff] }
 0x3e9   : > { %v1336_v15 = vmul.f32 %v7004_v11, %v1316_v17  ;;  %v1337_v25 = vmul.f32 %v7005_v43, %v1315_v29  ;;  %v1410_v20 = vsel %vm1408_vm5, %v4813_v58, %v4815_v56  ;;  %v1415_v61 = vsel %vm1408_vm5, %v1412_v55, %v1414_v5  ;;  %v1459_v29 = vpop.permute.xlu0 %1458  ;;  %v1576_v11 = vld [vmem:[#allocation7 + $0x76] ss:$8 sm:$0x3] }
 0x3ea   : > { %v1416_v23 = vsel %vm1408_vm5, %v1414_v5, %v1412_v55  ;;  %v1448_v6 = vmul.f32 %v1444_v19, %v1415_v61  ;;  %v1487_v58 = vrot.slane %v1482_v38, %v4351_v50  ;;  %v1491_v56 = vrot.slane %v1482_v38, %v4354_v63  ;;  %2960 = vrot.lane.b32.xlu1 %v4880_v52, %s7011_s14  ;;  %v7016_v43 = vld [vmem:[#allocation53_spill] sm:$0xff] }
 0x3eb   : > { %v1447_v41 = vmul.f32 %v1440_v27, %v1416_v23  ;;  %v1338_v4 = vadd.f32 %v1336_v15, %v1291_v45  ;;  %v1339_v22 = vadd.f32 %v1337_v25, %v1292_v54  ;;  %v7007_v48 = vrot.slane %v5174_v28, %v4351_v50  ;;  %2911 = vrot.lane.b32.xlu0 %v4897_v16, %s7006_s11  ;;  %v7015_v15 = vld [vmem:[#allocation52_spill] sm:$0xff] }
 0x3ec   : > { %v7008_v2 = vrot.slane %v5174_v28, %v4354_v63  ;;  %v1456_v60 = vsel %vm1455_vm6, %v4823_v39, %v4821_v3  ;;  %v1457_v18 = vsel %vm1455_vm6, %v4821_v3, %v4823_v39  ;;  %v1450_v12 = vadd.f32 %v1448_v6, %v1403_v42  ;;  %v1555_v54 = vpop.permute.xlu1 %1554 }
 0x3ed   : > { %v1383_v7 = vmul.f32 %v7007_v48, %v1363_v46  ;;  %v1449_v5 = vadd.f32 %v1447_v41, %v1402_v49  ;;  %v7009_v17 = vrot.slane %v5184_v47, %v4351_v50  ;;  %v7010_v40 = vrot.slane %v5184_v47, %v4354_v63  ;;  %v1506_v46 = vpop.permute.xlu0 %1505 }
 0x3ee   : > { %v1384_v9 = vmul.f32 %v7008_v2, %v1362_v0  ;;  %v1462_v26 = vsel %vm1455_vm6, %v1459_v29, %v1461_v34  ;;  %v1463_v33 = vsel %vm1455_vm6, %v1461_v34, %v1459_v29  ;;  %v1534_v36 = vrot.slane %v1529_v30, %v4351_v50  ;;  %3007 = vrot.lane.b32.xlu1 %v4880_v52, %s7017_s20  ;;  %v1623_v2 = vld [vmem:[#allocation7 + $0x77] ss:$8 sm:$0x3] }
 0x3ef   : > { %v1430_v28 = vmul.f32 %v7009_v17, %v1410_v20  ;;  %v1431_v21 = vmul.f32 %v7010_v40, %v1409_v10  ;;  %v1494_v3 = vmul.f32 %v1487_v58, %v1463_v33  ;;  %v1495_v39 = vmul.f32 %v1491_v56, %v1462_v26  ;;  %2958 = vrot.lane.b32.xlu0 %v4897_v16, %s7011_s14  ;;  %v7022_v29 = vld [vmem:[#allocation56_spill] sm:$0xff]  ;;  %v7023_v17 = vld [vmem:[#allocation57_spill] sm:$0xff] }
 0x3f0   : > { %v1538_v47 = vrot.slane %v1529_v30, %v4354_v63  ;;  %v1385_v44 = vadd.f32 %v1383_v7, %v1338_v4  ;;  %v1386_v1 = vadd.f32 %v1384_v9, %v1339_v22  ;;  %v7013_v59 = vrot.slane %v7012_v57, %v4351_v50  ;;  %v1602_v7 = vpop.permute.xlu1 %1601  ;;  %v7020_v9 = vld [vmem:[#allocation54_spill] sm:$0xff] }
 0x3f1   : > { %v7014_v19 = vrot.slane %v7012_v57, %v4354_v63  ;;  %v1503_v25 = vsel %vm1502_vm7, %v7016_v43, %v7015_v15  ;;  %v1504_v34 = vsel %vm1502_vm7, %v7015_v15, %v7016_v43  ;;  %v1496_v38 = vadd.f32 %v1494_v3, %v1449_v5 }
 0x3f2   : > { %v1477_v27 = vmul.f32 %v7013_v59, %v1457_v18  ;;  %v1497_v0 = vadd.f32 %v1495_v39, %v1450_v12  ;;  %v1432_v49 = vadd.f32 %v1430_v28, %v1385_v44  ;;  %v1433_v42 = vadd.f32 %v1431_v21, %v1386_v1  ;;  %v1553_v12 = vpop.permute.xlu0 %1552  ;;  %3054 = vrot.lane.b32.xlu1 %v4880_v52, %s3892_s9 }
 0x3f3   : > { %v1478_v45 = vmul.f32 %v7014_v19, %v1456_v60  ;;  %v1509_v55 = vsel %vm1502_vm7, %v1506_v46, %v1508_v32  ;;  %v1510_v10 = vsel %vm1502_vm7, %v1508_v32, %v1506_v46  ;;  %v1581_v23 = vrot.slane %v1576_v11, %v4351_v50  ;;  %v7021_v32 = vld [vmem:[#allocation55_spill] sm:$0xff]  ;;  %3005 = vrot.lane.b32.xlu0 %v4897_v16, %s7017_s20 }
 0x3f4   : > { %v1541_v20 = vmul.f32 %v1534_v36, %v1510_v10  ;;  %v1542_v61 = vmul.f32 %v1538_v47, %v1509_v55  ;;  %v1585_v41 = vrot.slane %v1576_v11, %v4354_v63  ;;  %v1479_v6 = vadd.f32 %v1477_v27, %v1432_v49  ;;  %v1649_v27 = vpop.permute.xlu1 %1648  ;;  %v1670_v19 = vld [vmem:[#allocation7 + $0x80] ss:$8 sm:$0x3] }
 0x3f5   : > { %v1480_v58 = vadd.f32 %v1478_v45, %v1433_v42  ;;  %v7018_v56 = vrot.slane %v5213_v37, %v4351_v50  ;;  %v7019_v22 = vrot.slane %v5213_v37, %v4354_v63  ;;  %v1550_v30 = vsel %vm1549_vm8, %v7021_v32, %v7020_v9  ;;  %v7026_v45 = vld [vmem:[#allocation58_spill] sm:$0xff] }
 0x3f6   : > { %v1551_v60 = vsel %vm1549_vm8, %v7020_v9, %v7021_v32  ;;  %v1543_v18 = vadd.f32 %v1541_v20, %v1496_v38  ;;  %v1544_v5 = vadd.f32 %v1542_v61, %v1497_v0  ;;  %v1597_v37 = vsel %vm1596_vm9, %v7023_v17, %v7022_v29  ;;  %3101 = vrot.lane.b32.xlu1 %v4880_v52, %s7030_s6 }
 0x3f7   : > { %v1524_v4 = vmul.f32 %v7018_v56, %v1504_v34  ;;  %v1525_v48 = vmul.f32 %v7019_v22, %v1503_v25  ;;  %v1598_v28 = vsel %vm1596_vm9, %v7022_v29, %v7023_v17  ;;  %v1556_v40 = vsel %vm1549_vm8, %v1553_v12, %v1555_v54  ;;  %v1600_v34 = vpop.permute.xlu0 %1599  ;;  %3052 = vrot.lane.b32.xlu0 %v4897_v16, %s3892_s9  ;;  %s3896_s9 = smov 77  }
 0x3f8   : > { %v1557_v21 = vsel %vm1549_vm8, %v1555_v54, %v1553_v12  ;;  %vm1784_vm13 = vcmp.lt.s32.totalorder %v6970_v53, 15  ;;  %v1589_v33 = vmul.f32 %v1585_v41, %v1556_v40  ;;  %v1628_v3 = vrot.slane %v1623_v2, %v4351_v50  ;;  %v7027_v54 = vld [vmem:[#allocation59_spill] sm:$0xff]  ;;  %v7031_v41 = vld [vmem:[#allocation121_spill] sm:$0xff]  ;;  %v1696_v22 = vpop.permute.xlu1 %1695 }
 0x3f9   : > { %v1588_v26 = vmul.f32 %v1581_v23, %v1557_v21  ;;  %v1632_v39 = vrot.slane %v1623_v2, %v4354_v63  ;;  %v1526_v36 = vadd.f32 %v1524_v4, %v1479_v6  ;;  %v1527_v47 = vadd.f32 %v1525_v48, %v1480_v58  ;;  %v1717_v48 = vld [vmem:[#allocation7 + $0x81] ss:$8 sm:$0x3]  ;;  %v7035_v2 = vld [vmem:[#allocation61_spill] sm:$0xff] }
 0x3fa   : > { %v7024_v44 = vrot.slane %v5215_v8, %v4351_v50  ;;  %v7025_v57 = vrot.slane %v5215_v8, %v4354_v63  ;;  %v1644_v11 = vsel %vm1643_vm10, %v7027_v54, %v7026_v45  ;;  %v1645_v15 = vsel %vm1643_vm10, %v7026_v45, %v7027_v54  ;;  %3148 = vrot.lane.b32.xlu1 %v4880_v52, %s3894_s22 }
 0x3fb   : > { %v1590_v43 = vadd.f32 %v1588_v26, %v1543_v18  ;;  %v1591_v25 = vadd.f32 %v1589_v33, %v1544_v5  ;;  %v7028_v38 = vrot.slane %v5217_v31, %v4351_v50  ;;  %v7029_v0 = vrot.slane %v5217_v31, %v4354_v63  ;;  %v1647_v18 = vpop.permute.xlu0 %1646  ;;  %3099 = vrot.lane.b32.xlu0 %v4897_v16, %s7030_s6 }
 0x3fc   : > { %v1571_v1 = vmul.f32 %v7024_v44, %v1551_v60  ;;  %v1572_v59 = vmul.f32 %v7025_v57, %v1550_v30  ;;  %v1603_v49 = vsel %vm1596_vm9, %v1600_v34, %v1602_v7  ;;  %v1604_v42 = vsel %vm1596_vm9, %v1602_v7, %v1600_v34  ;;  %v7034_v7 = vld [vmem:[#allocation60_spill] sm:$0xff]  ;;  %v1764_v57 = vld [vmem:[#allocation7 + $0x82] ss:$8 sm:$0x3] }
 0x3fd   : > { %v1618_v8 = vmul.f32 %v7028_v38, %v1598_v28  ;;  %v1619_v46 = vmul.f32 %v7029_v0, %v1597_v37  ;;  %vm1831_vm14 = vcmp.lt.s32.totalorder %v6970_v53, 14  ;;  %v1635_v55 = vmul.f32 %v1628_v3, %v1604_v42  ;;  %v7036_v3 = vld [vmem:[#allocation122_spill] sm:$0xff] }
 0x3fe   : > { %v1636_v10 = vmul.f32 %v1632_v39, %v1603_v49  ;;  %v1675_v20 = vrot.slane %v1670_v19, %v4351_v50  ;;  %v1679_v31 = vrot.slane %v1670_v19, %v4354_v63  ;;  %v1573_v61 = vadd.f32 %v1571_v1, %v1526_v36  ;;  %v1743_v1 = vpop.permute.xlu1 %1742 }
 0x3ff   : > { %v1574_v23 = vadd.f32 %v1572_v59, %v1527_v47  ;;  %v7032_v6 = vrot.slane %v7031_v41, %v4351_v50  ;;  %v7033_v56 = vrot.slane %v7031_v41, %v4354_v63  ;;  %v1691_v9 = vsel %vm1690_vm11, %v7035_v2, %v7034_v7  ;;  %v7039_v59 = vld [vmem:[#allocation62_spill] sm:$0xff]  ;;  %3146 = vrot.lane.b32.xlu0 %v4897_v16, %s3894_s22 }
 0x400   : > { %v1692_v32 = vsel %vm1690_vm11, %v7034_v7, %v7035_v2  ;;  %v1637_v30 = vadd.f32 %v1635_v55, %v1590_v43  ;;  %v1638_v60 = vadd.f32 %v1636_v10, %v1591_v25  ;;  %v1620_v5 = vadd.f32 %v1618_v8, %v1573_v61  ;;  %v7041_v43 = vld [vmem:[#allocation64_spill] sm:$0xff]  ;;  %v7042_v25 = vld [vmem:[#allocation65_spill] sm:$0xff]  ;;  %v7044_v61 = vld [vmem:[#allocation123_spill] sm:$0xff] }
 0x401   : > { %v1665_v58 = vmul.f32 %v7032_v6, %v1645_v15  ;;  %v1666_v4 = vmul.f32 %v7033_v56, %v1644_v11  ;;  %v1621_v12 = vadd.f32 %v1619_v46, %v1574_v23  ;;  %vm1878_vm15 = vcmp.lt.s32.totalorder %v6970_v53, 13  ;;  %v1694_v15 = vpop.permute.xlu0 %1693  ;;  %v7043_v46 = vld [vmem:[#allocation47_spill] sm:$0xff] }
 0x402   : > { %v1650_v29 = vsel %vm1643_vm10, %v1647_v18, %v1649_v27  ;;  %v1651_v17 = vsel %vm1643_vm10, %v1649_v27, %v1647_v18  ;;  %v1722_v40 = vrot.slane %v1717_v48, %v4351_v50  ;;  %v1726_v21 = vrot.slane %v1717_v48, %v4354_v63  ;;  %v7040_v27 = vld [vmem:[#allocation63_spill] sm:$0xff]  ;;  %3188 = vrot.lane.b32.xlu1 %v7043_v46, %s3895_s29  ;;  %v1790_v56 = vpop.permute.xlu1 %1789 }
 0x403   : > { %v1682_v37 = vmul.f32 %v1675_v20, %v1651_v17  ;;  %v1683_v28 = vmul.f32 %v1679_v31, %v1650_v29  ;;  %v1667_v26 = vadd.f32 %v1665_v58, %v1620_v5  ;;  %v1668_v33 = vadd.f32 %v1666_v4, %v1621_v12  ;;  %v1811_v4 = vld [vmem:[#allocation7 + $0x83] ss:$8 sm:$0x3]  ;;  %3193 = vrot.lane.b32.xlu0 %v4897_v16, %s3895_s29 }
 0x404   : > { %v7037_v39 = vrot.slane %v7036_v3, %v4351_v50  ;;  %v7038_v47 = vrot.slane %v7036_v3, %v4354_v63  ;;  %v1738_v19 = vsel %vm1737_vm12, %v7040_v27, %v7039_v59  ;;  %v1739_v45 = vsel %vm1737_vm12, %v7039_v59, %v7040_v27  ;;  %v7050_v5 = vld [vmem:[#allocation66_spill] sm:$0xff]  ;;  %v7051_v12 = vld [vmem:[#allocation67_spill] sm:$0xff] }
 0x405   : > { %vm1925_vm0 = vcmp.lt.s32.totalorder %v6970_v53, 3  ;;  %v1684_v54 = vadd.f32 %v1682_v37, %v1637_v30  ;;  %v1685_v11 = vadd.f32 %v1683_v28, %v1638_v60  ;;  %v1785_v34 = vsel %vm1784_vm13, %v7042_v25, %v7041_v43  ;;  %v1741_v18 = vpop.permute.xlu0 %1740 }
 0x406   : > { %v1712_v36 = vmul.f32 %v7037_v39, %v1692_v32  ;;  %v1713_v44 = vmul.f32 %v7038_v47, %v1691_v9  ;;  %v1786_v38 = vsel %vm1784_vm13, %v7041_v43, %v7042_v25  ;;  %v1697_v8 = vsel %vm1690_vm11, %v1694_v15, %v1696_v22  ;;  %v5724_v32 = vld [vmem:[#allocation7 + $0x27] ss:$8 sm:$0x3]  ;;  %3195 = vrot.lane.b32.xlu1 %v4880_v52, %s3895_s29  ;;  %v1837_v47 = vpop.permute.xlu1 %1836  ;;  %s7133_s29 = sshll.u32 %s4062_s1, 8 }
 0x407   : > { %v1698_v0 = vsel %vm1690_vm11, %v1696_v22, %v1694_v15  ;;  %v1730_v42 = vmul.f32 %v1726_v21, %v1697_v8  ;;  %v1769_v55 = vrot.slane %v1764_v57, %v4351_v50  ;;  %v1773_v10 = vrot.slane %v1764_v57, %v4354_v63  ;;  %v7047_v22 = vld [vmem:[#allocation124_spill] sm:$0xff]  ;;  %s6505_s22 = scalar_lea.vmem [#allocation8], %s7133_s29 }
 0x408   : > { %v1729_v49 = vmul.f32 %v1722_v40, %v1698_v0  ;;  %v1714_v20 = vadd.f32 %v1712_v36, %v1667_v26  ;;  %v1715_v31 = vadd.f32 %v1713_v44, %v1668_v33  ;;  %v7045_v23 = vrot.slane %v7044_v61, %v4351_v50  ;;  %v7052_v44 = vld [vmem:[#allocation68_spill] sm:$0xff]  ;;  %s3440_s8 = sshll.u32 %s6505_s22, 4  ;;  %s6562_s8 = int_to_ptr.vmem [resolvable:$true] %s3440_s8 }
 0x409   : > { %v7046_v6 = vrot.slane %v7044_v61, %v4354_v63  ;;  %vm1972_vm1 = vcmp.lt.s32.totalorder %v6970_v53, 2  ;;  %v7048_v48 = vrot.slane %v7047_v22, %v4351_v50  ;;  %v7049_v2 = vrot.slane %v7047_v22, %v4354_v63  ;;  %v5766_v0 = vld [vmem:[#allocation7 + $0x31] ss:$8 sm:$0x3]  ;;  %v7059_v61 = vld [vmem:[#allocation70_spill] sm:$0xff]  ;;  %s3774_s12 = scalar_lea.vmem %s6562_s8, 4096  ;;  %p3781_p9 = scmp.lt.s32.totalorder %s6562_s8, %s3779_s7 }
 0x40a   : > { %v1759_v41 = vmul.f32 %v7045_v23, %v1739_v45  ;;  %v1731_v30 = vadd.f32 %v1729_v49, %v1684_v54  ;;  %v1732_v60 = vadd.f32 %v1730_v42, %v1685_v11  ;;  %v1832_v29 = vsel %vm1831_vm14, %v7051_v12, %v7050_v5  ;;  %v1788_v45 = vpop.permute.xlu0 %1787  ;;  %3235 = vrot.lane.b32.xlu1 %v7043_v46, %s3896_s9  ;;  %v7060_v23 = vld [vmem:[#allocation71_spill] sm:$0xff]  ;;  %p3775_p2 = scmp.ne.s32.totalorder %s6562_s8, %s3774_s12  ;;  %p3782_p10 = scmp.lt.s32.totalorder %s3780_s26, %s3774_s12 }
 0x40b   : > { %v1760_v58 = vmul.f32 %v7046_v6, %v1738_v19  ;;  %v1806_v7 = vmul.f32 %v7048_v48, %v1786_v38  ;;  %v1807_v9 = vmul.f32 %v7049_v2, %v1785_v34  ;;  %v1833_v17 = vsel %vm1831_vm14, %v7050_v5, %v7051_v12  ;;  %v1884_v6 = vpop.permute.xlu1 %1883  ;;  %v7063_v12 = vld [vmem:[#allocation72_spill] sm:$0xff] }
 0x40c   : > { %v1744_v37 = vsel %vm1737_vm12, %v1741_v18, %v1743_v1  ;;  %v1745_v28 = vsel %vm1737_vm12, %v1743_v1, %v1741_v18  ;;  %v1816_v26 = vrot.slane %v1811_v4, %v4351_v50  ;;  %v1820_v33 = vrot.slane %v1811_v4, %v4354_v63  ;;  %v7053_v1 = vld [vmem:[#allocation69_spill] sm:$0xff]  ;;  %p3776_p4 = pnand %p3775_p2, %p7157_p0  ;;  %p3783_p1 = por %p3782_p10, %p3781_p9 }
 0x40d   : > { %v1776_v40 = vmul.f32 %v1769_v55, %v1745_v28  ;;  %v1777_v21 = vmul.f32 %v1773_v10, %v1744_v37  ;;  %v1761_v3 = vadd.f32 %v1759_v41, %v1714_v20  ;;  %v1762_v39 = vadd.f32 %v1760_v58, %v1715_v31  ;;  %v7056_v55 = vld [vmem:[#allocation46_spill] sm:$0xff] }
 0x40e   : > { %vm2019_vm2 = vcmp.lt.s32.totalorder %v6970_v53, 1  ;;  %v2034_v36 = vrot.slane %v5724_v32, %v4351_v50  ;;  %v1879_v57 = vsel %vm1878_vm15, %v7053_v1, %v7052_v44  ;;  %v1880_v59 = vsel %vm1878_vm15, %v7052_v44, %v7053_v1  ;;  %3233 = vrot.lane.b32.xlu0 %v7056_v55, %s3896_s9  ;;  %v1835_v22 = vpop.permute.xlu0 %1834  ;;  %3242 = vrot.lane.b32.xlu1 %v4880_v52, %s3896_s9  ;;  %p3777_p5 = pneg %p3776_p4 }
 0x40f   : > { %v1778_v27 = vadd.f32 %v1776_v40, %v1731_v30  ;;  %v1779_v19 = vadd.f32 %v1777_v21, %v1732_v60  ;;  %v7054_v54 = vrot.slane %v5258_v14, %v4351_v50  ;;  %v7055_v15 = vrot.slane %v5258_v14, %v4354_v63  ;;  %v1858_v30 = vld [vmem:[#allocation7 + $0x84] ss:$8 sm:$0x3]  ;;  %v1931_v21 = vpop.permute.xlu1 %1930 }
 0x410   : > { %v1791_v25 = vsel %vm1784_vm13, %v1788_v45, %v1790_v56  ;;  %v1792_v34 = vsel %vm1784_vm13, %v1790_v56, %v1788_v45  ;;  %v1808_v38 = vadd.f32 %v1806_v7, %v1761_v3  ;;  %v1809_v8 = vadd.f32 %v1807_v9, %v1762_v39  ;;  %v5786_v56 = vld [vmem:[#allocation7 + $0x32] ss:$8 sm:$0x3]  ;;  %v7066_v3 = vld [vmem:[#allocation75_spill] sm:$0xff]  ;;  %p3784_p12 = pnand %p3783_p1, %p3777_p5 }
 0x411   : > { %v1853_v11 = vmul.f32 %v7054_v54, %v1833_v17  ;;  %v1854_v43 = vmul.f32 %v7055_v15, %v1832_v29  ;;  %v1823_v49 = vmul.f32 %v1816_v26, %v1792_v34  ;;  %v1824_v42 = vmul.f32 %v1820_v33, %v1791_v25  ;;  %v7064_v29 = vld [vmem:[#allocation73_spill] sm:$0xff]  ;;  %v1905_v26 = vld [vmem:[#allocation7 + $0x85] ss:$8 sm:$0x3] }
 0x412   : > { %v7057_v14 = vrot.slane %v5279_v13, %v4351_v50  ;;  %v7058_v20 = vrot.slane %v5279_v13, %v4354_v63  ;;  %v1926_v46 = vsel %vm1925_vm0, %v7060_v23, %v7059_v61  ;;  %v1927_v41 = vsel %vm1925_vm0, %v7059_v61, %v7060_v23  ;;  %3240 = vrot.lane.b32.xlu0 %v4897_v16, %s3896_s9  ;;  %v7065_v33 = vld [vmem:[#allocation74_spill] sm:$0xff] }
 0x413   : > { %v2038_v58 = vrot.slane %v5724_v32, %v4354_v63  ;;  %vm2156_vm3 = vcmp.lt.s32.totalorder %v6970_v53, 127  ;;  %v1825_v13 = vadd.f32 %v1823_v49, %v1778_v27  ;;  %v1826_v4 = vadd.f32 %v1824_v42, %v1779_v19  ;;  %v1952_v54 = vld [vmem:[#allocation7 + $0x86] ss:$8 sm:$0x3] }
 0x414   : > { %v1900_v10 = vmul.f32 %v7057_v14, %v1880_v59  ;;  %v1901_v31 = vmul.f32 %v7058_v20, %v1879_v57  ;;  %v1855_v48 = vadd.f32 %v1853_v11, %v1808_v38  ;;  %v1856_v7 = vadd.f32 %v1854_v43, %v1809_v8  ;;  %v1882_v57 = vpop.permute.xlu0 %1881  ;;  %v1978_v38 = vpop.permute.xlu1 %1977  ;;  %v1999_v8 = vld [vmem:[#allocation7 + $0x87] ss:$8 sm:$0x3] }
 0x415   : > { %v2171_v2 = vrot.slane %v5766_v0, %v4351_v50  ;;  %v2175_v9 = vrot.slane %v5766_v0, %v4354_v63  ;;  %v7061_v32 = vrot.slane %v5281_v24, %v4351_v50  ;;  %v7062_v18 = vrot.slane %v5281_v24, %v4354_v63 }
 0x416   : > { %v1973_v17 = vsel %vm1972_vm1, %v7064_v29, %v7063_v12  ;;  %v1974_v37 = vsel %vm1972_vm1, %v7063_v12, %v7064_v29  ;;  %v1902_v52 = vadd.f32 %v1900_v10, %v1855_v48  ;;  %v1903_v28 = vadd.f32 %v1901_v31, %v1856_v7  ;;  %v7067_v48 = vld [vmem:[#allocation76_spill] sm:$0xff]  ;;  %v7068_v7 = vld [vmem:[#allocation77_spill] sm:$0xff] }
 0x417   : > { %v1947_v60 = vmul.f32 %v7061_v32, %v1927_v41  ;;  %v1948_v5 = vmul.f32 %v7062_v18, %v1926_v46  ;;  %v2218_v40 = vrot.slane %v5786_v56, %v4351_v50  ;;  %v2222_v24 = vrot.slane %v5786_v56, %v4354_v63  ;;  %v2260_v18 = vld [vmem:[#allocation7 + $0x33] ss:$8 sm:$0x3] }
 0x418   : > { %v2020_v39 = vsel %vm2019_vm2, %v7066_v3, %v7065_v33  ;;  %v2021_v16 = vsel %vm2019_vm2, %v7065_v33, %v7066_v3  ;;  %v1863_v44 = vrot.slane %v1858_v30, %v4351_v50  ;;  %v1867_v1 = vrot.slane %v1858_v30, %v4354_v63  ;;  %v1929_v14 = vpop.permute.xlu0 %1928 }
 0x419   : > { %v1994_v59 = vmul.f32 %v1987_v35, %v1974_v37  ;;  %v1995_v27 = vmul.f32 %v1991_v51, %v1973_v17  ;;  %vm2203_vm4 = vcmp.lt.s32.totalorder %v6970_v53, 126  ;;  %v1838_v19 = vsel %vm1831_vm14, %v1835_v22, %v1837_v47 }
 0x41a   : > { %v1839_v45 = vsel %vm1831_vm14, %v1837_v47, %v1835_v22  ;;  %v1949_v11 = vadd.f32 %v1947_v60, %v1902_v52  ;;  %v1950_v15 = vadd.f32 %v1948_v5, %v1903_v28  ;;  %v1910_v43 = vrot.slane %v1905_v26, %v4351_v50  ;;  %v2025_v60 = vpop.permute.xlu1 %2024 }
 0x41b   : > { %v1914_v25 = vrot.slane %v1905_v26, %v4354_v63  ;;  %v2041_v35 = vmul.f32 %v2034_v36, %v2021_v16  ;;  %v2042_v34 = vmul.f32 %v2038_v58, %v2020_v39  ;;  %v1885_v62 = vsel %vm1878_vm15, %v1882_v57, %v1884_v6 }
 0x41c   : > { %v1886_v51 = vsel %vm1878_vm15, %v1884_v6, %v1882_v57  ;;  %v1870_v49 = vmul.f32 %v1863_v44, %v1839_v45  ;;  %v1871_v42 = vmul.f32 %v1867_v1, %v1838_v19  ;;  %v1957_v47 = vrot.slane %v1952_v54, %v4351_v50  ;;  %v2046_v6 = vld [vmem:[#allocation7 + $0x90] ss:$8 sm:$0x3]  ;;  %v1976_v37 = vpop.permute.xlu0 %1975  ;;  %v7071_v19 = vld [vmem:[#allocation78_spill] sm:$0xff]  ;;  %v7072_v45 = vld [vmem:[#allocation79_spill] sm:$0xff] }
 0x41d   : > { %v1961_v55 = vrot.slane %v1952_v54, %v4354_v63  ;;  %v1996_v10 = vadd.f32 %v1994_v59, %v1949_v11  ;;  %v1997_v20 = vadd.f32 %v1995_v27, %v1950_v15  ;;  %vm2250_vm5 = vcmp.lt.s32.totalorder %v6970_v53, 125  ;;  %v7069_v44 = vld [vmem:[#allocation48_spill] sm:$0xff] }
 0x41e   : > { %v1932_v36 = vsel %vm1925_vm0, %v1929_v14, %v1931_v21  ;;  %v1933_v31 = vsel %vm1925_vm0, %v1931_v21, %v1929_v14  ;;  %v1917_v61 = vmul.f32 %v1910_v43, %v1886_v51  ;;  %v1918_v23 = vmul.f32 %v1914_v25, %v1885_v62  ;;  %v5866_v27 = vpop.permute.xlu1 %2161  ;;  %v2307_v15 = vld [vmem:[#allocation7 + $0x34] ss:$8 sm:$0x3] }
 0x41f   : > { %v2004_v46 = vrot.slane %v1999_v8, %v4351_v50  ;;  %v2008_v41 = vrot.slane %v1999_v8, %v4354_v63  ;;  %v2043_v58 = vadd.f32 %v2041_v35, %v1996_v10  ;;  %v2044_v22 = vadd.f32 %v2042_v34, %v1997_v20  ;;  %v7073_v14 = vld [vmem:[#allocation80_spill] sm:$0xff]  ;;  %v7074_v10 = vld [vmem:[#allocation81_spill] sm:$0xff] }
 0x420   : > { %v2157_v30 = vsel %vm2156_vm3, %v7068_v7, %v7067_v48  ;;  %v2158_v32 = vsel %vm2156_vm3, %v7067_v48, %v7068_v7  ;;  %v1872_v5 = vadd.f32 %v1870_v49, %v1825_v13  ;;  %v1873_v12 = vadd.f32 %v1871_v42, %v1826_v4  ;;  %v7070_v4 = vld [vmem:[#allocation49_spill] sm:$0xff]  ;;  %v2023_v35 = vpop.permute.xlu0 %2022  ;;  %v7077_v48 = vld [vmem:[#allocation50_spill] sm:$0xff] }
 0x421   : > { %v1964_v29 = vmul.f32 %v1957_v47, %v1933_v31  ;;  %v1965_v17 = vmul.f32 %v1961_v55, %v1932_v36  ;;  %v1979_v52 = vsel %vm1972_vm1, %v1976_v37, %v1978_v38  ;;  %v1980_v28 = vsel %vm1972_vm1, %v1978_v38, %v1976_v37  ;;  %v2354_v36 = vld [vmem:[#allocation7 + $0x35] ss:$8 sm:$0x3] }
 0x422   : > { %v2051_v21 = vrot.slane %v2046_v6, %v4351_v50  ;;  %v2055_v26 = vrot.slane %v2046_v6, %v4354_v63  ;;  %v1919_v33 = vadd.f32 %v1917_v61, %v1872_v5  ;;  %v1920_v3 = vadd.f32 %v1918_v23, %v1873_v12  ;;  %v7076_v6 = vld [vmem:[#allocation83_spill] sm:$0xff]  ;;  %v2401_v12 = vld [vmem:[#allocation7 + $0x36] ss:$8 sm:$0x3] }
 0x423   : > { %v2011_v39 = vmul.f32 %v2004_v46, %v1980_v28  ;;  %v2012_v16 = vmul.f32 %v2008_v41, %v1979_v52  ;;  %v2105_v13 = vadd.f32 %v7069_v44, %v2043_v58  ;;  %v2106_v1 = vadd.f32 %v7070_v4, %v2044_v22  ;;  %v7075_v41 = vld [vmem:[#allocation82_spill] sm:$0xff]  ;;  %v2448_v44 = vld [vmem:[#allocation7 + $0x37] ss:$8 sm:$0x3] }
 0x424   : > { %v2265_v57 = vrot.slane %v2260_v18, %v4351_v50  ;;  %v2269_v59 = vrot.slane %v2260_v18, %v4354_v63  ;;  %v2204_v54 = vsel %vm2203_vm4, %v7072_v45, %v7071_v19  ;;  %v2205_v11 = vsel %vm2203_vm4, %v7071_v19, %v7072_v45  ;;  %v7082_v19 = vld [vmem:[#allocation87_spill] sm:$0xff] }
 0x425   : > { %v1966_v43 = vadd.f32 %v1964_v29, %v1919_v33  ;;  %v1967_v25 = vadd.f32 %v1965_v17, %v1920_v3  ;;  %v2178_v34 = vmul.f32 %v2171_v2, %v2157_v30  ;;  %v2179_v62 = vmul.f32 %v2175_v9, %v2158_v32  ;;  %v5894_v9 = vpop.permute.xlu1 %2208  ;;  %v7078_v30 = vld [vmem:[#allocation51_spill] sm:$0xff]  ;;  %v7079_v33 = vld [vmem:[#allocation84_spill] sm:$0xff]  ;;  %v7080_v3 = vld [vmem:[#allocation85_spill] sm:$0xff] }
 0x426   : > { %v2026_v51 = vsel %vm2019_vm2, %v2023_v35, %v2025_v60  ;;  %v2027_v38 = vsel %vm2019_vm2, %v2025_v60, %v2023_v35  ;;  %v2225_v55 = vmul.f32 %v2218_v40, %v2204_v54  ;;  %v2226_v2 = vmul.f32 %v2222_v24, %v2205_v11  ;;  %v5904_v24 = vpop.permute.xlu0 %2159  ;;  %v2495_v35 = vld [vmem:[#allocation7 + $0x40] ss:$8 sm:$0x3] }
 0x427   : > { %v2013_v8 = vadd.f32 %v2011_v39, %v1966_v43  ;;  %v2014_v49 = vadd.f32 %v2012_v16, %v1967_v25  ;;  %v2058_v42 = vmul.f32 %v2051_v21, %v2027_v38  ;;  %v2059_v47 = vmul.f32 %v2055_v26, %v2026_v51 }
 0x428   : > { %vm2297_vm6 = vcmp.lt.s32.totalorder %v6970_v53, 115  ;;  %v2312_v0 = vrot.slane %v2307_v15, %v4351_v50  ;;  %v2251_v20 = vsel %vm2250_vm5, %v7074_v10, %v7073_v14  ;;  %v2252_v40 = vsel %vm2250_vm5, %v7073_v14, %v7074_v10 }
 0x429   : > { %v2060_v31 = vadd.f32 %v2058_v42, %v2013_v8  ;;  %v2061_v56 = vadd.f32 %v2059_v47, %v2014_v49  ;;  %v2180_v61 = vadd.f32 %v2178_v34, %v2105_v13  ;;  %v2181_v23 = vadd.f32 %v2179_v62, %v2106_v1  ;;  %v5923_v29 = vpop.permute.xlu1 %2255  ;;  %v7083_v42 = vld [vmem:[#allocation88_spill] sm:$0xff]  ;;  %v7084_v47 = vld [vmem:[#allocation89_spill] sm:$0xff] }
 0x42a   : > { %v2316_v46 = vrot.slane %v2307_v15, %v4354_v63  ;;  %vm2344_vm7 = vcmp.lt.s32.totalorder %v6970_v53, 114  ;;  %v2298_v58 = vsel %vm2297_vm6, %v7076_v6, %v7075_v41  ;;  %v2299_v22 = vsel %vm2297_vm6, %v7075_v41, %v7076_v6  ;;  %v5927_v28 = vpop.permute.xlu0 %2206 }
 0x42b   : > { %v5917_v7 = vadd.f32 %v7077_v48, %v2060_v31  ;;  %v5920_v32 = vadd.f32 %v7078_v30, %v2061_v56  ;;  %v2272_v60 = vmul.f32 %v2265_v57, %v2251_v20  ;;  %v2273_v18 = vmul.f32 %v2269_v59, %v2252_v40  ;;  %v7081_v59 = vld [vmem:[#allocation86_spill] sm:$0xff]  ;;  %v7086_v56 = vld [vmem:[#allocation91_spill] sm:$0xff] }
 0x42c   : > { %v2359_v5 = vrot.slane %v2354_v36, %v4351_v50  ;;  %v2227_v17 = vadd.f32 %v2225_v55, %v2180_v61  ;;  %v2228_v37 = vadd.f32 %v2226_v2, %v2181_v23  ;;  %v2363_v52 = vrot.slane %v2354_v36, %v4354_v63  ;;  %v7085_v31 = vld [vmem:[#allocation90_spill] sm:$0xff] }
 0x42d   : > { %vm2391_vm8 = vcmp.lt.s32.totalorder %v6970_v53, 113  ;;  %v2319_v21 = vmul.f32 %v2312_v0, %v2298_v58  ;;  %v2320_v26 = vmul.f32 %v2316_v46, %v2299_v22  ;;  %v2345_v39 = vsel %vm2344_vm7, %v7080_v3, %v7079_v33  ;;  %v5948_v11 = vpop.permute.xlu1 %2302  ;;  %v2542_v0 = vld [vmem:[#allocation7 + $0x41] ss:$8 sm:$0x3] }
 0x42e   : > { %v2346_v16 = vsel %vm2344_vm7, %v7079_v33, %v7080_v3  ;;  %v2406_v13 = vrot.slane %v2401_v12, %v4351_v50  ;;  %v2410_v4 = vrot.slane %v2401_v12, %v4354_v63  ;;  %vm2438_vm9 = vcmp.lt.s32.totalorder %v6970_v53, 112  ;;  %v5951_v34 = vpop.permute.xlu0 %2253  ;;  %v2589_v22 = vld [vmem:[#allocation7 + $0x42] ss:$8 sm:$0x3]  ;;  %v7087_v12 = vld [vmem:[#allocation92_spill] sm:$0xff] }
 0x42f   : > { %v2274_v1 = vadd.f32 %v2272_v60, %v2227_v17  ;;  %v2275_v57 = vadd.f32 %v2273_v18, %v2228_v37  ;;  %v2392_v45 = vsel %vm2391_vm8, %v7082_v19, %v7081_v59  ;;  %v2393_v54 = vsel %vm2391_vm8, %v7081_v59, %v7082_v19  ;;  %v7088_v17 = vld [vmem:[#allocation93_spill] sm:$0xff] }
 0x430   : > { %v2366_v15 = vmul.f32 %v2359_v5, %v2345_v39  ;;  %v2367_v43 = vmul.f32 %v2363_v52, %v2346_v16  ;;  %v2453_v25 = vrot.slane %v2448_v44, %v4351_v50  ;;  %v2457_v38 = vrot.slane %v2448_v44, %v4354_v63 }
 0x431   : > { %v2321_v62 = vadd.f32 %v2319_v21, %v2274_v1  ;;  %v2322_v51 = vadd.f32 %v2320_v26, %v2275_v57  ;;  %vm2485_vm10 = vcmp.lt.s32.totalorder %v6970_v53, 111  ;;  %v2413_v8 = vmul.f32 %v2406_v13, %v2392_v45  ;;  %v5966_v20 = vpop.permute.xlu1 %2349  ;;  %v2636_v21 = vld [vmem:[#allocation7 + $0x43] ss:$8 sm:$0x3] }
 0x432   : > { %v2414_v49 = vmul.f32 %v2410_v4, %v2393_v54  ;;  %v2439_v55 = vsel %vm2438_vm9, %v7084_v47, %v7083_v42  ;;  %v2440_v2 = vsel %vm2438_vm9, %v7083_v42, %v7084_v47  ;;  %v2500_v14 = vrot.slane %v2495_v35, %v4351_v50  ;;  %v5976_v46 = vpop.permute.xlu0 %2300  ;;  %v7089_v13 = vld [vmem:[#allocation94_spill] sm:$0xff]  ;;  %v7090_v4 = vld [vmem:[#allocation95_spill] sm:$0xff] }
 0x433   : > { %v2504_v10 = vrot.slane %v2495_v35, %v4354_v63  ;;  %vm2532_vm11 = vcmp.lt.s32.totalorder %v6970_v53, 110  ;;  %v2368_v40 = vadd.f32 %v2366_v15, %v2321_v62  ;;  %v2369_v36 = vadd.f32 %v2367_v43, %v2322_v51  ;;  %v2683_v54 = vld [vmem:[#allocation7 + $0x44] ss:$8 sm:$0x3] }
 0x434   : > { %v2486_v61 = vsel %vm2485_vm10, %v7086_v56, %v7085_v31  ;;  %v2487_v23 = vsel %vm2485_vm10, %v7085_v31, %v7086_v56  ;;  %v2460_v41 = vmul.f32 %v2453_v25, %v2439_v55  ;;  %v2461_v6 = vmul.f32 %v2457_v38, %v2440_v2  ;;  %v7091_v38 = vld [vmem:[#allocation96_spill] sm:$0xff]  ;;  %v2730_v47 = vld [vmem:[#allocation7 + $0x45] ss:$8 sm:$0x3] }
 0x435   : > { %v2547_v58 = vrot.slane %v2542_v0, %v4351_v50  ;;  %v2415_v48 = vadd.f32 %v2413_v8, %v2368_v40  ;;  %v2416_v30 = vadd.f32 %v2414_v49, %v2369_v36  ;;  %v2551_v60 = vrot.slane %v2542_v0, %v4354_v63  ;;  %v5989_v26 = vpop.permute.xlu1 %2396  ;;  %v7092_v8 = vld [vmem:[#allocation97_spill] sm:$0xff]  ;;  %v7093_v40 = vld [vmem:[#allocation98_spill] sm:$0xff]  ;;  %v7094_v36 = vld [vmem:[#allocation99_spill] sm:$0xff] }
 0x436   : > { %vm2579_vm12 = vcmp.lt.s32.totalorder %v6970_v53, 109  ;;  %v2507_v18 = vmul.f32 %v2500_v14, %v2486_v61  ;;  %v2508_v5 = vmul.f32 %v2504_v10, %v2487_v23  ;;  %v2533_v37 = vsel %vm2532_vm11, %v7088_v17, %v7087_v12  ;;  %v5994_v39 = vpop.permute.xlu0 %2347 }
 0x437   : > { %v2534_v52 = vsel %vm2532_vm11, %v7087_v12, %v7088_v17  ;;  %v2594_v33 = vrot.slane %v2589_v22, %v4351_v50  ;;  %v2598_v3 = vrot.slane %v2589_v22, %v4354_v63  ;;  %vm2626_vm13 = vcmp.lt.s32.totalorder %v6970_v53, 99  ;;  %v7095_v12 = vld [vmem:[#allocation100_spill] sm:$0xff]  ;;  %v7096_v17 = vld [vmem:[#allocation101_spill] sm:$0xff] }
 0x438   : > { %v2462_v16 = vadd.f32 %v2460_v41, %v2415_v48  ;;  %v2463_v44 = vadd.f32 %v2461_v6, %v2416_v30  ;;  %v2580_v1 = vsel %vm2579_vm12, %v7090_v4, %v7089_v13  ;;  %v2581_v57 = vsel %vm2579_vm12, %v7089_v13, %v7090_v4  ;;  %v2777_v6 = vld [vmem:[#allocation7 + $0x46] ss:$8 sm:$0x3] }
 0x439   : > { %v2554_v59 = vmul.f32 %v2547_v58, %v2533_v37  ;;  %v2555_v19 = vmul.f32 %v2551_v60, %v2534_v52  ;;  %v2641_v45 = vrot.slane %v2636_v21, %v4351_v50  ;;  %v2645_v25 = vrot.slane %v2636_v21, %v4354_v63  ;;  %v6007_v35 = vpop.permute.xlu1 %2443  ;;  %v2824_v21 = vld [vmem:[#allocation7 + $0x47] ss:$8 sm:$0x3] }
 0x43a   : > { %v2509_v15 = vadd.f32 %v2507_v18, %v2462_v16  ;;  %v2510_v43 = vadd.f32 %v2508_v5, %v2463_v44  ;;  %vm2673_vm14 = vcmp.lt.s32.totalorder %v6970_v53, 98  ;;  %v2601_v62 = vmul.f32 %v2594_v33, %v2580_v1  ;;  %v6017_v55 = vpop.permute.xlu0 %2394  ;;  %v2871_v16 = vld [vmem:[#allocation7 + $0x50] ss:$8 sm:$0x3]  ;;  %v7097_v4 = vld [vmem:[#allocation102_spill] sm:$0xff]  ;;  %v7098_v1 = vld [vmem:[#allocation103_spill] sm:$0xff] }
 0x43b   : > { %v2602_v51 = vmul.f32 %v2598_v3, %v2581_v57  ;;  %v2627_v49 = vsel %vm2626_vm13, %v7092_v8, %v7091_v38  ;;  %v2628_v42 = vsel %vm2626_vm13, %v7091_v38, %v7092_v8  ;;  %v2688_v2 = vrot.slane %v2683_v54, %v4351_v50 }
 0x43c   : > { %v2692_v0 = vrot.slane %v2683_v54, %v4354_v63  ;;  %vm2720_vm15 = vcmp.lt.s32.totalorder %v6970_v53, 97  ;;  %v2556_v14 = vadd.f32 %v2554_v59, %v2509_v15  ;;  %v2557_v10 = vadd.f32 %v2555_v19, %v2510_v43 }
 0x43d   : > { %v2674_v31 = vsel %vm2673_vm14, %v7094_v36, %v7093_v40  ;;  %v2675_v56 = vsel %vm2673_vm14, %v7093_v40, %v7094_v36  ;;  %v2648_v61 = vmul.f32 %v2641_v45, %v2627_v49  ;;  %v2649_v23 = vmul.f32 %v2645_v25, %v2628_v42  ;;  %v6031_v58 = vpop.permute.xlu1 %2490  ;;  %v2918_v25 = vld [vmem:[#allocation7 + $0x51] ss:$8 sm:$0x3] }
 0x43e   : > { %v2735_v41 = vrot.slane %v2730_v47, %v4351_v50  ;;  %v2603_v22 = vadd.f32 %v2601_v62, %v2556_v14  ;;  %v2604_v48 = vadd.f32 %v2602_v51, %v2557_v10  ;;  %v2739_v30 = vrot.slane %v2730_v47, %v4354_v63  ;;  %v6035_v60 = vpop.permute.xlu0 %2441  ;;  %v7099_v47 = vld [vmem:[#allocation104_spill] sm:$0xff] }
 0x43f   : > { %vm6810_vm0 = vcmp.lt.s32.totalorder %v6970_v53, 96  ;;  %v2695_v18 = vmul.f32 %v2688_v2, %v2674_v31  ;;  %v2696_v5 = vmul.f32 %v2692_v0, %v2675_v56  ;;  %v2721_v37 = vsel %vm2720_vm15, %v7096_v17, %v7095_v12  ;;  %v7100_v2 = vld [vmem:[#allocation105_spill] sm:$0xff] }
 0x440   : > { %v2722_v52 = vsel %vm2720_vm15, %v7095_v12, %v7096_v17  ;;  %v2782_v33 = vrot.slane %v2777_v6, %v4351_v50  ;;  %v2786_v3 = vrot.slane %v2777_v6, %v4354_v63  ;;  %vm6811_vm1 = vcmp.lt.s32.totalorder %v6970_v53, 95  ;;  %v6072_v10 = vld [vmem:[#allocation7 + $0x52] ss:$8 sm:$0x3]  ;;  %v7101_v6 = vld [vmem:[#allocation106_spill] sm:$0xff] }
 0x441   : > { %v2650_v44 = vadd.f32 %v2648_v61, %v2603_v22  ;;  %v2651_v13 = vadd.f32 %v2649_v23, %v2604_v48  ;;  %v2768_v57 = vsel %vm6810_vm0, %v7098_v1, %v7097_v4  ;;  %v2769_v59 = vsel %vm6810_vm0, %v7097_v4, %v7098_v1  ;;  %v6056_v19 = vpop.permute.xlu1 %2537  ;;  %v6078_v56 = vld [vmem:[#allocation7 + $0x53] ss:$8 sm:$0x3]  ;;  %v7102_v22 = vld [vmem:[#allocation107_spill] sm:$0xff] }
 0x442   : > { %v2742_v45 = vmul.f32 %v2735_v41, %v2721_v37  ;;  %v2743_v54 = vmul.f32 %v2739_v30, %v2722_v52  ;;  %v2829_v15 = vrot.slane %v2824_v21, %v4351_v50  ;;  %v2833_v43 = vrot.slane %v2824_v21, %v4354_v63  ;;  %v6060_v62 = vpop.permute.xlu0 %2488  ;;  %v6097_v52 = vld [vmem:[#allocation7 + $0x54] ss:$8 sm:$0x3]  ;;  %v2183_v21 = vld [vmem:[#allocation7 + $0x92] ss:$8 sm:$0x3] }
 0x443   : > { %v2697_v51 = vadd.f32 %v2695_v18, %v2650_v44  ;;  %v2698_v38 = vadd.f32 %v2696_v5, %v2651_v13  ;;  %vm2861_vm2 = vcmp.lt.s32.totalorder %v6970_v53, 94  ;;  %v2876_v8 = vrot.slane %v2871_v16, %v4351_v50  ;;  %v7103_v1 = vld [vmem:[#allocation108_spill] sm:$0xff] }
 0x444   : > { %v2789_v49 = vmul.f32 %v2782_v33, %v2768_v57  ;;  %v2790_v42 = vmul.f32 %v2786_v3, %v2769_v59  ;;  %v2815_v0 = vsel %vm6811_vm1, %v7100_v2, %v7099_v47  ;;  %v2816_v14 = vsel %vm6811_vm1, %v7099_v47, %v7100_v2  ;;  %v7104_v57 = vld [vmem:[#allocation109_spill] sm:$0xff] }
 0x445   : > { %v2880_v40 = vrot.slane %v2871_v16, %v4354_v63  ;;  %vm6812_vm0 = vcmp.lt.s32.totalorder %v6970_v53, 93  ;;  %v2923_v36 = vrot.slane %v2918_v25, %v4351_v50  ;;  %v2927_v31 = vrot.slane %v2918_v25, %v4354_v63  ;;  %v6080_v61 = vpop.permute.xlu1 %2584 }
 0x446   : > { %v2744_v23 = vadd.f32 %v2742_v45, %v2697_v51  ;;  %v2745_v41 = vadd.f32 %v2743_v54, %v2698_v38  ;;  %v2862_v48 = vsel %vm2861_vm2, %v7102_v22, %v7101_v6  ;;  %v2863_v30 = vsel %vm2861_vm2, %v7101_v6, %v7102_v22  ;;  %v6091_v18 = vpop.permute.xlu0 %2535  ;;  %v6111_v54 = vld [vmem:[#allocation7 + $0x55] ss:$8 sm:$0x3]  ;;  %v6136_v6 = vld [vmem:[#allocation7 + $0x56] ss:$8 sm:$0x3] }
 0x447   : > { %vm2955_vm1 = vcmp.lt.s32.totalorder %v6970_v53, 83  ;;  %v2836_v5 = vmul.f32 %v2829_v15, %v2815_v0  ;;  %v2837_v12 = vmul.f32 %v2833_v43, %v2816_v14  ;;  %v2970_v17 = vrot.slane %v6072_v10, %v4351_v50  ;;  %v2277_v22 = vld [vmem:[#allocation7 + $0x94] ss:$8 sm:$0x3] }
 0x448   : > { %v2974_v37 = vrot.slane %v6072_v10, %v4354_v63  ;;  %v2791_v33 = vadd.f32 %v2789_v49, %v2744_v23  ;;  %v2792_v3 = vadd.f32 %v2790_v42, %v2745_v41  ;;  %v3017_v16 = vrot.slane %v6078_v56, %v4351_v50 }
 0x449   : > { %v3021_v44 = vrot.slane %v6078_v56, %v4354_v63  ;;  %v2883_v13 = vmul.f32 %v2876_v8, %v2862_v48  ;;  %v2884_v4 = vmul.f32 %v2880_v40, %v2863_v30  ;;  %v2909_v59 = vsel %vm6812_vm0, %v7104_v57, %v7103_v1  ;;  %v6113_v15 = vpop.permute.xlu1 %2631  ;;  %v2230_v8 = vld [vmem:[#allocation7 + $0x93] ss:$8 sm:$0x3] }
 0x44a   : > { %v2910_v45 = vsel %vm6812_vm0, %v7103_v1, %v7104_v57  ;;  %v3064_v43 = vrot.slane %v6097_v52, %v4351_v50  ;;  %v3068_v25 = vrot.slane %v6097_v52, %v4354_v63  ;;  %v2188_v51 = vrot.slane %v2183_v21, %v4351_v50  ;;  %v6121_v49 = vpop.permute.xlu0 %2582  ;;  %v2324_v57 = vld [vmem:[#allocation7 + $0x95] ss:$8 sm:$0x3] }
 0x44b   : > { %v2192_v38 = vrot.slane %v2183_v21, %v4354_v63  ;;  %v2838_v42 = vadd.f32 %v2836_v5, %v2791_v33  ;;  %v2839_v47 = vadd.f32 %v2837_v12, %v2792_v3  ;;  %vm3002_vm0 = vcmp.lt.s32.totalorder %v6970_v53, 82 }
 0x44c   : > { %v2163_v2 = vsel %vm2156_vm3, %v5904_v24, %v5866_v27  ;;  %v2164_v0 = vsel %vm2156_vm3, %v5866_v27, %v5904_v24  ;;  %v2930_v14 = vmul.f32 %v2923_v36, %v2909_v59  ;;  %v2931_v40 = vmul.f32 %v2927_v31, %v2910_v45 }
 0x44d   : > { %v3111_v23 = vrot.slane %v6111_v54, %v4351_v50  ;;  %v3115_v41 = vrot.slane %v6111_v54, %v4354_v63  ;;  %v2885_v48 = vadd.f32 %v2883_v13, %v2838_v42  ;;  %v2886_v30 = vadd.f32 %v2884_v4, %v2839_v47  ;;  %v6140_v21 = vpop.permute.xlu1 %2678 }
 0x44e   : > { %v2235_v5 = vrot.slane %v2230_v8, %v4351_v50  ;;  %v2239_v12 = vrot.slane %v2230_v8, %v4354_v63  ;;  %v2195_v27 = vmul.f32 %v2188_v51, %v2163_v2  ;;  %v2196_v24 = vmul.f32 %v2192_v38, %v2164_v0  ;;  %v6150_v33 = vpop.permute.xlu0 %2629  ;;  %v7105_v51 = vld [vmem:[#allocation110_spill] sm:$0xff]  ;;  %v7106_v38 = vld [vmem:[#allocation111_spill] sm:$0xff]  ;;  %v2371_v0 = vld [vmem:[#allocation7 + $0x96] ss:$8 sm:$0x3] }
 0x44f   : > { %v2210_v36 = vsel %vm2203_vm4, %v5927_v28, %v5894_v9  ;;  %v2211_v31 = vsel %vm2203_vm4, %v5894_v9, %v5927_v28  ;;  %v3158_v3 = vrot.slane %v6136_v6, %v4351_v50  ;;  %v2282_v4 = vrot.slane %v2277_v22, %v4351_v50 }
 0x450   : > { %v2286_v1 = vrot.slane %v2277_v22, %v4354_v63  ;;  %v2932_v59 = vadd.f32 %v2930_v14, %v2885_v48  ;;  %v2933_v45 = vadd.f32 %v2931_v40, %v2886_v30  ;;  %v2257_v9 = vsel %vm2250_vm5, %v5951_v34, %v5923_v29 }
 0x451   : > { %v2258_v28 = vsel %vm2250_vm5, %v5923_v29, %v5951_v34  ;;  %v2956_v8 = vsel %vm2955_vm1, %v7106_v38, %v7105_v51  ;;  %v2957_v42 = vsel %vm2955_vm1, %v7105_v51, %v7106_v38  ;;  %v2242_v47 = vmul.f32 %v2235_v5, %v2210_v36  ;;  %v6174_v14 = vpop.permute.xlu1 %2725  ;;  %v2418_v36 = vld [vmem:[#allocation7 + $0x97] ss:$8 sm:$0x3]  ;;  %v2465_v51 = vld [vmem:[#allocation7 + $0xa0] ss:$8 sm:$0x3] }
 0x452   : > { %v2243_v2 = vmul.f32 %v2239_v12, %v2211_v31  ;;  %v2197_v40 = vadd.f32 %v2195_v27, %v5917_v7  ;;  %v2198_v22 = vadd.f32 %v2196_v24, %v5920_v32  ;;  %v2329_v29 = vrot.slane %v2324_v57, %v4351_v50  ;;  %v6180_v48 = vpop.permute.xlu0 %2676 }
 0x453   : > { %v2333_v34 = vrot.slane %v2324_v57, %v4354_v63  ;;  %v2289_v30 = vmul.f32 %v2282_v4, %v2257_v9  ;;  %v2290_v13 = vmul.f32 %v2286_v1, %v2258_v28  ;;  %v2304_v5 = vsel %vm2297_vm6, %v5976_v46, %v5948_v11 }
 0x454   : > { %v2305_v7 = vsel %vm2297_vm6, %v5948_v11, %v5976_v46  ;;  %v2977_v32 = vmul.f32 %v2970_v17, %v2956_v8  ;;  %v2978_v12 = vmul.f32 %v2974_v37, %v2957_v42  ;;  %v2376_v27 = vrot.slane %v2371_v0, %v4351_v50  ;;  %v7107_v17 = vld [vmem:[#allocation112_spill] sm:$0xff]  ;;  %v7108_v37 = vld [vmem:[#allocation113_spill] sm:$0xff] }
 0x455   : > { %v2380_v24 = vrot.slane %v2371_v0, %v4354_v63  ;;  %vm3049_vm3 = vcmp.lt.s32.totalorder %v6970_v53, 81  ;;  %v2244_v31 = vadd.f32 %v2242_v47, %v2197_v40  ;;  %v2245_v4 = vadd.f32 %v2243_v2, %v2198_v22  ;;  %v6207_v10 = vpop.permute.xlu1 %2772 }
 0x456   : > { %v2351_v11 = vsel %vm2344_vm7, %v5994_v39, %v5966_v20  ;;  %v2352_v46 = vsel %vm2344_vm7, %v5966_v20, %v5994_v39  ;;  %v3003_v1 = vsel %vm3002_vm0, %v7108_v37, %v7107_v17  ;;  %v3004_v57 = vsel %vm3002_vm0, %v7107_v17, %v7108_v37  ;;  %v6217_v38 = vpop.permute.xlu0 %2723 }
 0x457   : > { %v2336_v9 = vmul.f32 %v2329_v29, %v2304_v5  ;;  %v2337_v28 = vmul.f32 %v2333_v34, %v2305_v7  ;;  %v2291_v8 = vadd.f32 %v2289_v30, %v2244_v31  ;;  %v2292_v42 = vadd.f32 %v2290_v13, %v2245_v4  ;;  %v2512_v30 = vld [vmem:[#allocation7 + $0xa1] ss:$8 sm:$0x3]  ;;  %v2559_v31 = vld [vmem:[#allocation7 + $0xa2] ss:$8 sm:$0x3] }
 0x458   : > { %v2423_v20 = vrot.slane %v2418_v36, %v4351_v50  ;;  %v2427_v39 = vrot.slane %v2418_v36, %v4354_v63  ;;  %v2383_v47 = vmul.f32 %v2376_v27, %v2351_v11  ;;  %v2384_v2 = vmul.f32 %v2380_v24, %v2352_v46 }
 0x459   : > { %v2398_v0 = vsel %vm2391_vm8, %v6017_v55, %v5989_v26  ;;  %v2399_v40 = vsel %vm2391_vm8, %v5989_v26, %v6017_v55  ;;  %v3024_v13 = vmul.f32 %v3017_v16, %v3003_v1  ;;  %v3025_v22 = vmul.f32 %v3021_v44, %v3004_v57  ;;  %v6237_v5 = vpop.permute.xlu1 %2819 }
 0x45a   : > { %v2470_v29 = vrot.slane %v2465_v51, %v4351_v50  ;;  %v2474_v34 = vrot.slane %v2465_v51, %v4354_v63  ;;  %vm3096_vm4 = vcmp.lt.s32.totalorder %v6970_v53, 80  ;;  %v2338_v7 = vadd.f32 %v2336_v9, %v2291_v8  ;;  %v6248_v56 = vpop.permute.xlu0 %2770  ;;  %v2606_v9 = vld [vmem:[#allocation7 + $0xa3] ss:$8 sm:$0x3] }
 0x45b   : > { %v2339_v27 = vadd.f32 %v2337_v28, %v2292_v42  ;;  %v2445_v26 = vsel %vm2438_vm9, %v6035_v60, %v6007_v35  ;;  %v2446_v55 = vsel %vm2438_vm9, %v6007_v35, %v6035_v60  ;;  %v2979_v16 = vadd.f32 %v2977_v32, %v2932_v59 }
 0x45c   : > { %v2980_v44 = vadd.f32 %v2978_v12, %v2933_v45  ;;  %v2430_v24 = vmul.f32 %v2423_v20, %v2398_v0  ;;  %v2431_v36 = vmul.f32 %v2427_v39, %v2399_v40  ;;  %v2385_v4 = vadd.f32 %v2383_v47, %v2338_v7  ;;  %v7110_v20 = vld [vmem:[#allocation115_spill] sm:$0xff] }
 0x45d   : > { %v2386_v11 = vadd.f32 %v2384_v2, %v2339_v27  ;;  %v2517_v46 = vrot.slane %v2512_v30, %v4351_v50  ;;  %v2521_v17 = vrot.slane %v2512_v30, %v4354_v63  ;;  %v2477_v37 = vmul.f32 %v2470_v29, %v2445_v26  ;;  %v6260_v59 = vpop.permute.xlu1 %2866  ;;  %v2653_v40 = vld [vmem:[#allocation7 + $0xa4] ss:$8 sm:$0x3] }
 0x45e   : > { %v2478_v1 = vmul.f32 %v2474_v34, %v2446_v55  ;;  %v2492_v35 = vsel %vm2485_vm10, %v6060_v62, %v6031_v58  ;;  %v2493_v60 = vsel %vm2485_vm10, %v6031_v58, %v6060_v62  ;;  %v3026_v45 = vadd.f32 %v3024_v13, %v2979_v16  ;;  %v6264_v28 = vpop.permute.xlu0 %2817  ;;  %v7109_v62 = vld [vmem:[#allocation114_spill] sm:$0xff] }
 0x45f   : > { %v3027_v32 = vadd.f32 %v3025_v22, %v2980_v44  ;;  %v2564_v12 = vrot.slane %v2559_v31, %v4351_v50  ;;  %v2568_v57 = vrot.slane %v2559_v31, %v4354_v63  ;;  %v2432_v51 = vadd.f32 %v2430_v24, %v2385_v4 }
 0x460   : > { %v2433_v8 = vadd.f32 %v2431_v36, %v2386_v11  ;;  %v2539_v42 = vsel %vm2532_vm11, %v6091_v18, %v6056_v19  ;;  %v2540_v58 = vsel %vm2532_vm11, %v6056_v19, %v6091_v18  ;;  %v3050_v39 = vsel %vm3049_vm3, %v7110_v20, %v7109_v62  ;;  %v2700_v36 = vld [vmem:[#allocation7 + $0xa5] ss:$8 sm:$0x3] }
 0x461   : > { %v3051_v47 = vsel %vm3049_vm3, %v7109_v62, %v7110_v20  ;;  %v2524_v2 = vmul.f32 %v2517_v46, %v2492_v35  ;;  %v2525_v0 = vmul.f32 %v2521_v17, %v2493_v60  ;;  %v2479_v13 = vadd.f32 %v2477_v37, %v2432_v51  ;;  %v6284_v19 = vpop.permute.xlu1 %2913  ;;  %v2747_v37 = vld [vmem:[#allocation7 + $0xa6] ss:$8 sm:$0x3] }
 0x462   : > { %v2480_v22 = vadd.f32 %v2478_v1, %v2433_v8  ;;  %v2611_v29 = vrot.slane %v2606_v9, %v4351_v50  ;;  %v2615_v34 = vrot.slane %v2606_v9, %v4354_v63  ;;  %v2571_v18 = vmul.f32 %v2564_v12, %v2539_v42  ;;  %v6294_v26 = vpop.permute.xlu0 %2864 }
 0x463   : > { %v2572_v30 = vmul.f32 %v2568_v57, %v2540_v58  ;;  %v2586_v7 = vsel %vm2579_vm12, %v6121_v49, %v6080_v61  ;;  %v2587_v27 = vsel %vm2579_vm12, %v6080_v61, %v6121_v49  ;;  %v3071_v55 = vmul.f32 %v3064_v43, %v3050_v39  ;;  %v7111_v43 = vld [vmem:[#allocation116_spill] sm:$0xff]  ;;  %v2794_v39 = vld [vmem:[#allocation7 + $0xa7] ss:$8 sm:$0x3] }
 0x464   : > { %v3072_v16 = vmul.f32 %v3068_v25, %v3051_v47  ;;  %v2658_v44 = vrot.slane %v2653_v40, %v4351_v50  ;;  %v2662_v24 = vrot.slane %v2653_v40, %v4354_v63  ;;  %vm3143_vm5 = vcmp.lt.s32.totalorder %v6970_v53, 79  ;;  %v7112_v25 = vld [vmem:[#allocation117_spill] sm:$0xff] }
 0x465   : > { %v2526_v31 = vadd.f32 %v2524_v2, %v2479_v13  ;;  %v2527_v4 = vadd.f32 %v2525_v0, %v2480_v22  ;;  %v2633_v61 = vsel %vm2626_vm13, %v6150_v33, %v6113_v15  ;;  %v2634_v52 = vsel %vm2626_vm13, %v6113_v15, %v6150_v33  ;;  %v6321_v1 = vpop.permute.xlu1 %2960  ;;  %v2841_v13 = vld [vmem:[#allocation7 + $0xb0] ss:$8 sm:$0x3] }
 0x466   : > { %v3097_v49 = vsel %vm3096_vm4, %v7112_v25, %v7111_v43  ;;  %v3098_v11 = vsel %vm3096_vm4, %v7111_v43, %v7112_v25  ;;  %v2618_v46 = vmul.f32 %v2611_v29, %v2586_v7  ;;  %v2619_v17 = vmul.f32 %v2615_v34, %v2587_v27  ;;  %v6325_v33 = vpop.permute.xlu0 %2911 }
 0x467   : > { %v2573_v35 = vadd.f32 %v2571_v18, %v2526_v31  ;;  %v2574_v60 = vadd.f32 %v2572_v30, %v2527_v4  ;;  %v2705_v12 = vrot.slane %v2700_v36, %v4351_v50  ;;  %v2709_v15 = vrot.slane %v2700_v36, %v4354_v63 }
 0x468   : > { %v2665_v57 = vmul.f32 %v2658_v44, %v2633_v61  ;;  %v2666_v9 = vmul.f32 %v2662_v24, %v2634_v52  ;;  %v2680_v51 = vsel %vm2673_vm14, %v6180_v48, %v6140_v21  ;;  %v2681_v8 = vsel %vm2673_vm14, %v6140_v21, %v6180_v48  ;;  %v2888_v44 = vld [vmem:[#allocation7 + $0xb1] ss:$8 sm:$0x3]  ;;  %v7117_v61 = vld [vmem:[#allocation118_spill] sm:$0xff]  ;;  %v7118_v52 = vld [vmem:[#allocation119_spill] sm:$0xff] }
 0x469   : > { %v3118_v42 = vmul.f32 %v3111_v23, %v3097_v49  ;;  %v3119_v58 = vmul.f32 %v3115_v41, %v3098_v11  ;;  %v2752_v62 = vrot.slane %v2747_v37, %v4351_v50  ;;  %v2756_v20 = vrot.slane %v2747_v37, %v4354_v63  ;;  %v6351_v48 = vpop.permute.xlu1 %3007 }
 0x46a   : > { %v2620_v47 = vadd.f32 %v2618_v46, %v2573_v35  ;;  %v2621_v2 = vadd.f32 %v2619_v17, %v2574_v60  ;;  %v2727_v21 = vsel %vm2720_vm15, %v6217_v38, %v6174_v14  ;;  %v2728_v23 = vsel %vm2720_vm15, %v6174_v14, %v6217_v38  ;;  %v2959_v22 = vpop.permute.xlu0 %2958  ;;  %v2935_v46 = vld [vmem:[#allocation7 + $0xb2] ss:$8 sm:$0x3] }
 0x46b   : > { %v3073_v54 = vadd.f32 %v3071_v55, %v3026_v45  ;;  %v3074_v41 = vadd.f32 %v3072_v16, %v3027_v32  ;;  %v2712_v0 = vmul.f32 %v2705_v12, %v2680_v51  ;;  %v2713_v40 = vmul.f32 %v2709_v15, %v2681_v8 }
 0x46c   : > { %v2667_v29 = vadd.f32 %v2665_v57, %v2620_v47  ;;  %v2668_v34 = vadd.f32 %v2666_v9, %v2621_v2  ;;  %v2799_v18 = vrot.slane %v2794_v39, %v4351_v50  ;;  %v2803_v30 = vrot.slane %v2794_v39, %v4354_v63  ;;  %v2982_v57 = vld [vmem:[#allocation7 + $0xb3] ss:$8 sm:$0x3] }
 0x46d   : > { %v2759_v7 = vmul.f32 %v2752_v62, %v2727_v21  ;;  %v2760_v27 = vmul.f32 %v2756_v20, %v2728_v23  ;;  %vm7113_vm6 = vcmp.lt.s32.totalorder %v6970_v53, 96  ;;  %v6363_v45 = vadd.f32 %v3118_v42, %v3073_v54  ;;  %v6369_v24 = vpop.permute.xlu1 %3054  ;;  %v3029_v20 = vld [vmem:[#allocation7 + $0xb4] ss:$8 sm:$0x3] }
 0x46e   : > { %v2774_v14 = vsel %vm7113_vm6, %v6248_v56, %v6207_v10  ;;  %vm7114_vm7 = vmmov %vm7113_vm6  ;;  %v6365_v32 = vadd.f32 %v3119_v58, %v3074_v41  ;;  %v2846_v55 = vrot.slane %v2841_v13, %v4351_v50  ;;  %v2850_v16 = vrot.slane %v2841_v13, %v4354_v63  ;;  %v3076_v54 = vld [vmem:[#allocation7 + $0xb5] ss:$8 sm:$0x3]  ;;  %v3123_v41 = vld [vmem:[#allocation7 + $0xb6] ss:$8 sm:$0x3] }
 0x46f   : > { %v2775_v38 = vsel %vm7114_vm7, %v6207_v10, %v6248_v56  ;;  %v2714_v36 = vadd.f32 %v2712_v0, %v2667_v29  ;;  %v2715_v31 = vadd.f32 %v2713_v40, %v2668_v34  ;;  %vm7115_vm8 = vcmp.lt.s32.totalorder %v6970_v53, 95  ;;  %v3006_v56 = vpop.permute.xlu0 %3005 }
 0x470   : > { %v2821_v4 = vsel %vm7115_vm8, %v6264_v28, %v6237_v5  ;;  %vm7116_vm9 = vmmov %vm7115_vm8  ;;  %v3144_v43 = vsel %vm3143_vm5, %v7118_v52, %v7117_v61  ;;  %v3145_v25 = vsel %vm3143_vm5, %v7117_v61, %v7118_v52  ;;  %v2806_v49 = vmul.f32 %v2799_v18, %v2774_v14 }
 0x471   : > { %v2822_v10 = vsel %vm7116_vm9, %v6237_v5, %v6264_v28  ;;  %v2807_v11 = vmul.f32 %v2803_v30, %v2775_v38  ;;  %v2761_v17 = vadd.f32 %v2759_v7, %v2714_v36  ;;  %v2762_v37 = vadd.f32 %v2760_v27, %v2715_v31  ;;  %v3102_v9 = vpop.permute.xlu1 %3101  ;;  %v3200_v27 = vld [vmem:[#allocation7 + $0x57] ss:$8 sm:$0x3] }
 0x472   : > { %v2893_v35 = vrot.slane %v2888_v44, %v4351_v50  ;;  %v2897_v5 = vrot.slane %v2888_v44, %v4354_v63  ;;  %v2853_v28 = vmul.f32 %v2846_v55, %v2821_v4  ;;  %v2854_v60 = vmul.f32 %v2850_v16, %v2822_v10  ;;  %v3170_v44 = vld [vmem:[#allocation7 + $0xb7] ss:$8 sm:$0x3] }
 0x473   : > { %v2868_v12 = vsel %vm2861_vm2, %v6294_v26, %v6260_v59  ;;  %v2869_v15 = vsel %vm2861_vm2, %v6260_v59, %v6294_v26  ;;  %v6400_v51 = vmul.f32 %v3158_v3, %v3144_v43  ;;  %v7119_v8 = vrot.slane %v6136_v6, %v4354_v63  ;;  %v3053_v39 = vpop.permute.xlu0 %3052  ;;  %v3217_v43 = vld [vmem:[#allocation7 + $0xc0] ss:$8 sm:$0x3] }
 0x474   : > { %v2940_v58 = vrot.slane %v2935_v46, %v4351_v50  ;;  %v2944_v62 = vrot.slane %v2935_v46, %v4354_v63  ;;  %v2808_v47 = vadd.f32 %v2806_v49, %v2761_v17  ;;  %v2809_v59 = vadd.f32 %v2807_v11, %v2762_v37 }
 0x475   : > { %v6405_v42 = vmul.f32 %v7119_v8, %v3145_v25  ;;  %vm7120_vm10 = vcmp.lt.s32.totalorder %v6970_v53, 93  ;;  %v2900_v3 = vmul.f32 %v2893_v35, %v2868_v12  ;;  %v2901_v2 = vmul.f32 %v2897_v5, %v2869_v15  ;;  %v3149_v34 = vpop.permute.xlu1 %3148  ;;  %v3247_v5 = vld [vmem:[#allocation7 + $0x60] ss:$8 sm:$0x3] }
 0x476   : > { %v2915_v26 = vsel %vm7120_vm10, %v6325_v33, %v6284_v19  ;;  %vm7121_vm11 = vmmov %vm7120_vm10  ;;  %v2987_v21 = vrot.slane %v2982_v57, %v4351_v50  ;;  %v2991_v23 = vrot.slane %v2982_v57, %v4354_v63  ;;  %v2855_v0 = vadd.f32 %v2853_v28, %v2808_v47 }
 0x477   : > { %v2916_v6 = vsel %vm7121_vm11, %v6284_v19, %v6325_v33  ;;  %v2856_v40 = vadd.f32 %v2854_v60, %v2809_v59  ;;  %v3034_v13 = vrot.slane %v3029_v20, %v4351_v50  ;;  %v3038_v29 = vrot.slane %v3029_v20, %v4354_v63  ;;  %v3100_v7 = vpop.permute.xlu0 %3099 }
 0x478   : > { %v2947_v18 = vmul.f32 %v2940_v58, %v2915_v26  ;;  %v2948_v30 = vmul.f32 %v2944_v62, %v2916_v6  ;;  %v2962_v19 = vsel %vm2955_vm1, %v2959_v22, %v6321_v1  ;;  %v2963_v33 = vsel %vm2955_vm1, %v6321_v1, %v2959_v22  ;;  %v3264_v26 = vld [vmem:[#allocation7 + $0xc1] ss:$8 sm:$0x3] }
 0x479   : > { %v3081_v14 = vrot.slane %v3076_v54, %v4351_v50  ;;  %v3085_v38 = vrot.slane %v3076_v54, %v4354_v63  ;;  %v3128_v55 = vrot.slane %v3123_v41, %v4351_v50  ;;  %v3132_v16 = vrot.slane %v3123_v41, %v4354_v63  ;;  %v3189_v52 = vpop.permute.xlu1 %3188 }
 0x47a   : > { %v2902_v36 = vadd.f32 %v2900_v3, %v2855_v0  ;;  %v2903_v31 = vadd.f32 %v2901_v2, %v2856_v40  ;;  %v3009_v4 = vsel %vm3002_vm0, %v3006_v56, %v6351_v48  ;;  %v3010_v1 = vsel %vm3002_vm0, %v6351_v48, %v3006_v56 }
 0x47b   : > { %v2994_v22 = vmul.f32 %v2987_v21, %v2962_v19  ;;  %v2995_v10 = vmul.f32 %v2991_v23, %v2963_v33  ;;  %vm3190_vm12 = vcmp.lt.s32.totalorder %v6970_v53, 78  ;;  %v3205_v61 = vrot.slane %v3200_v27, %v4351_v50  ;;  %v3147_v17 = vpop.permute.xlu0 %3146 }
 0x47c   : > { %v2949_v25 = vadd.f32 %v2947_v18, %v2902_v36  ;;  %v2950_v49 = vadd.f32 %v2948_v30, %v2903_v31  ;;  %v3209_v11 = vrot.slane %v3200_v27, %v4354_v63  ;;  %v3175_v46 = vrot.slane %v3170_v44, %v4351_v50 }
 0x47d   : > { %v3041_v37 = vmul.f32 %v3034_v13, %v3009_v4  ;;  %v3042_v35 = vmul.f32 %v3038_v29, %v3010_v1  ;;  %v3056_v48 = vsel %vm3049_vm3, %v3053_v39, %v6369_v24  ;;  %v3057_v56 = vsel %vm3049_vm3, %v6369_v24, %v3053_v39  ;;  %v3196_v62 = vpop.permute.xlu1 %3195 }
 0x47e   : > { %v3179_v28 = vrot.slane %v3170_v44, %v4354_v63  ;;  %v3222_v60 = vrot.slane %v3217_v43, %v4351_v50  ;;  %v3226_v12 = vrot.slane %v3217_v43, %v4354_v63  ;;  %vm3237_vm13 = vcmp.lt.s32.totalorder %v6970_v53, 77 }
 0x47f   : > { %v2996_v15 = vadd.f32 %v2994_v22, %v2949_v25  ;;  %v2997_v57 = vadd.f32 %v2995_v10, %v2950_v49  ;;  %v3103_v8 = vsel %vm3096_vm4, %v3100_v7, %v3102_v9  ;;  %v3104_v58 = vsel %vm3096_vm4, %v3102_v9, %v3100_v7  ;;  %v3194_v39 = vpop.permute.xlu0 %3193  ;;  %v7122_v9 = vld [vmem:[#allocation22_spill] sm:$0xff] }
 0x480   : > { %v3088_v20 = vmul.f32 %v3081_v14, %v3056_v48  ;;  %v3089_v24 = vmul.f32 %v3085_v38, %v3057_v56  ;;  %v3252_v47 = vrot.slane %v3247_v5, %v4351_v50  ;;  %v3256_v59 = vrot.slane %v3247_v5, %v4354_v63 }
 0x481   : > { %v3043_v6 = vadd.f32 %v3041_v37, %v2996_v15  ;;  %v3044_v3 = vadd.f32 %v3042_v35, %v2997_v57  ;;  %v3150_v2 = vsel %vm3143_vm5, %v3147_v17, %v3149_v34  ;;  %v3151_v21 = vsel %vm3143_vm5, %v3149_v34, %v3147_v17  ;;  %v3236_v29 = vpop.permute.xlu1 %3235 }
 0x482   : > { %v3135_v23 = vmul.f32 %v3128_v55, %v3103_v8  ;;  %v3136_v54 = vmul.f32 %v3132_v16, %v3104_v58  ;;  %v3191_v41 = vsel %vm3190_vm12, %v7122_v9, %v3189_v52  ;;  %v3192_v0 = vsel %vm3190_vm12, %v3189_v52, %v7122_v9 }
 0x483   : > { %v3197_v40 = vsel %vm3190_vm12, %v3194_v39, %v3196_v62  ;;  %v3198_v13 = vsel %vm3190_vm12, %v3196_v62, %v3194_v39  ;;  %v3269_v18 = vrot.slane %v3264_v26, %v4351_v50  ;;  %v3273_v34 = vrot.slane %v3264_v26, %v4354_v63  ;;  %v3234_v27 = vpop.permute.xlu0 %3233 }
 0x484   : > { %v3090_v30 = vadd.f32 %v3088_v20, %v3043_v6  ;;  %v3091_v19 = vadd.f32 %v3089_v24, %v3044_v3  ;;  %v3182_v33 = vmul.f32 %v3175_v46, %v3150_v2  ;;  %v3183_v7 = vmul.f32 %v3179_v28, %v3151_v21 }
 0x485   : > { %v3212_v14 = vmul.f32 %v3205_v61, %v3191_v41  ;;  %v3213_v38 = vmul.f32 %v3209_v11, %v3192_v0  ;;  %v3238_v55 = vsel %vm3237_vm13, %v3234_v27, %v3236_v29  ;;  %v3239_v16 = vsel %vm3237_vm13, %v3236_v29, %v3234_v27  ;;  %v3243_v10 = vpop.permute.xlu1 %3242 }
 0x486   : > { %v3137_v44 = vadd.f32 %v3135_v23, %v3090_v30  ;;  %v3138_v36 = vadd.f32 %v3136_v54, %v3091_v19  ;;  %v3229_v31 = vmul.f32 %v3222_v60, %v3197_v40  ;;  %v3230_v4 = vmul.f32 %v3226_v12, %v3198_v13  ;;  %v7125_v19 = vld [vmem:[#allocation27_spill] sm:$0xff] }
 0x487   : > { %v3167_v1 = vadd.f32 %v6400_v51, %v6363_v45  ;;  %v3168_v22 = vadd.f32 %v6405_v42, %v6365_v32  ;;  %v3259_v43 = vmul.f32 %v3252_v47, %v3238_v55  ;;  %v3260_v25 = vmul.f32 %v3256_v59, %v3239_v16  ;;  %v3241_v49 = vpop.permute.xlu0 %3240  ;;  %v7123_v47 = vld [vmem:[#allocation23_spill] sm:$0xff]  ;;  %v7127_v55 = vld [vmem:[#allocation25_spill] sm:$0xff] }
 0x488   : > { %v3184_v52 = vadd.f32 %v3182_v33, %v3137_v44  ;;  %v3185_v61 = vadd.f32 %v3183_v7, %v3138_v36  ;;  %v3244_v17 = vsel %vm3237_vm13, %v3241_v49, %v3243_v10  ;;  %v3245_v37 = vsel %vm3237_vm13, %v3243_v10, %v3241_v49  ;;  %v7126_v7 = vld [vmem:[#allocation24_spill] sm:$0xff]  ;;  %v7131_v10 = vld [vmem:[#allocation31_spill] sm:$0xff] }
 0x489   : > { %v3214_v11 = vadd.f32 %v3212_v14, %v3167_v1  ;;  %v3215_v46 = vadd.f32 %v3213_v38, %v3168_v22  ;;  %v3276_v45 = vmul.f32 %v3269_v18, %v3244_v17  ;;  %v3277_v51 = vmul.f32 %v3273_v34, %v3245_v37  ;;  %v7124_v34 = vld [vmem:[#allocation26_spill] sm:$0xff]  ;;  %v7128_v44 = vld [vmem:[#allocation28_spill] sm:$0xff] }
 0x48a   : > { %v3231_v35 = vadd.f32 %v3229_v31, %v3184_v52  ;;  %v3232_v48 = vadd.f32 %v3230_v4, %v3185_v61  ;;  %v3897_v53 = vmov 1966171168   ;;  %v7129_v31 = vld [vmem:[#allocation29_spill] sm:$0xff]  ;;  %v7130_v1 = vld [vmem:[#allocation30_spill] sm:$0xff]  ;;  %v7132_v61 = vld [vmem:[#allocation32_spill] sm:$0xff] }
 0x48b   : > { %v3261_v56 = vadd.f32 %v3259_v43, %v3214_v11  ;;  %v3262_v32 = vadd.f32 %v3260_v25, %v3215_v46  ;;  %v3298_v20 = vunpack.c.l.s4 %v3897_v53  ;;  %v7135_v25 = vld [vmem:[#allocation35_spill] sm:$0xff]  ;;  %v7136_v11 = vld [vmem:[#allocation36_spill] sm:$0xff]  ;;  %v7137_v17 = vld [vmem:[#allocation34_spill] sm:$0xff] }
 0x48c   : > { %v3278_v42 = vadd.f32 %v3276_v45, %v3231_v35  ;;  %v3279_v5 = vadd.f32 %v3277_v51, %v3232_v48  ;;  %v7138_v35 = vld [vmem:[#allocation37_spill] sm:$0xff]  ;;  %v7139_v45 = vld [vmem:[#allocation38_spill] sm:$0xff] }
 0x48d   : > { %v3299_v24 = vunpack.c.0.s8 %v3298_v20  ;;  %v7146_v53 = vld [vmem:[#allocation45_spill] sm:$0xff] }
 0x48e   : > { %v3280_v28 = vadd.f32 %v3278_v42, %v3261_v56  ;;  %v3281_v60 = vadd.f32 %v3279_v5, %v3262_v32  ;;  %v7140_v56 = vld [vmem:[#allocation39_spill] sm:$0xff]  ;;  %v7141_v42 = vld [vmem:[#allocation40_spill] sm:$0xff] }
 0x48f   : > { %v3302_v59 = vsub.s32 %v3299_v24, %v7123_v47  ;;  %v7147_v24 = vld [vmem:[#allocation16_spill] sm:$0xff]  ;;  %v7148_v47 = vld [vmem:[#allocation17_spill] sm:$0xff] }
 0x490   : > { %v3551_v12 = vmul.f32 -1.442695, %v3280_v28  ;;  %v3552_v15 = vmul.f32 -1.442695, %v3281_v60  ;;  %v7142_v28 = vld [vmem:[#allocation41_spill] sm:$0xff] }
 0x492   : > { %3686 = vpow2.f32 %v3551_v12  ;;  %v7143_v12 = vld [vmem:[#allocation42_spill] sm:$0xff] }
 0x493   : > { %3688 = vpow2.f32 %v3552_v15 }
 0x49f   : > { %v3687_v57 = vpop.eup %3686 }
 0x4a0   : > { %v3689_v8 = vpop.eup %3688  ;;  %v3288_v58 = vadd.f32 1.0, %v3687_v57  ;;  %v7144_v57 = vld [vmem:[#allocation43_spill] sm:$0xff] }
 0x4a1   : > { %v3289_v62 = vadd.f32 1.0, %v3689_v8 }
 0x4a2   : > { %3690 = vrcp.f32 %v3288_v58  ;;  %v7145_v58 = vld [vmem:[#allocation44_spill] sm:$0xff] }
 0x4a3   : > { %3692 = vrcp.f32 %v3289_v62 }
 0x4af   : > { %v3691_v39 = vpop.eup %3690 }
 0x4b0   : > { %v3693_v26 = vpop.eup %3692 }
 0x4b1   : > { %v3296_v6 = vcombine.low %v3691_v39, %v3693_v26  ;;  %v7149_v26 = vld [vmem:[#allocation14_spill] sm:$0xff] }
 0x4b3   : > { %v3303_v3 = vrot.slane %v3296_v6, %v3302_v59 }
 0x4b5   : > { %v3304_v2 = vcombine.high %v3303_v3, %v3303_v3  ;;  %v3311_v21 = vrot.slane %v3303_v3, %v3302_v59  ;;  %v7150_v3 = vld [vmem:[#allocation15_spill] sm:$0xff] }
 0x4b7   : > { %v3318_v23 = vrot.slane %v3304_v2, %v3302_v59  ;;  %v3319_v54 = vcombine.high %v3311_v21, %v3311_v21  ;;  %v3324_v9 = vrot.slane %v3311_v21, %v4351_v50  ;;  %v3328_v41 = vrot.slane %v3311_v21, %v4354_v63  ;;  %v7151_v21 = vld [vmem:[#allocation12_spill] sm:$0xff] }
 0x4b9   : > { %v3320_v0 = vcombine.high %v3318_v23, %v3318_v23  ;;  %v3332_v40 = vrot.slane %v3318_v23, %v4351_v50  ;;  %v3336_v13 = vrot.slane %v3318_v23, %v4354_v63  ;;  %v3340_v29 = vrot.slane %v3319_v54, %v4351_v50 }
 0x4ba   : > { %v3344_v18 = vrot.slane %v3319_v54, %v4354_v63  ;;  %v3361_v30 = vmul.f32 %v3324_v9, %v7124_v34  ;;  %v3362_v33 = vmul.f32 %v3328_v41, %v7125_v19  ;;  %v3363_v27 = vmul.f32 %v3324_v9, %v7126_v7  ;;  %v7152_v54 = vld [vmem:[#allocation13_spill] sm:$0xff] }
 0x4bb   : > { %v3348_v14 = vrot.slane %v3320_v0, %v4351_v50  ;;  %v3352_v38 = vrot.slane %v3320_v0, %v4354_v63  ;;  %v3364_v16 = vmul.f32 %v3328_v41, %v7127_v55  ;;  %v3365_v36 = vmul.f32 %v3324_v9, %v7128_v44  ;;  %v7134_v50 = vld [vmem:[#allocation33_spill] sm:$0xff] }
 0x4bc   : > { %v3366_v4 = vmul.f32 %v3328_v41, %v7129_v31  ;;  %v3367_v22 = vmul.f32 %v3324_v9, %v7130_v1  ;;  %v3368_v52 = vmul.f32 %v3328_v41, %v7131_v10  ;;  %v3369_v43 = vmul.f32 %v3332_v40, %v7132_v61  ;;  %3393 = vst [vmem:[%s6505_s22] sm:$0xff] %v3361_v30  ;;  %v7153_v41 = vld [vmem:[#allocation18_spill] sm:$0xff]  ;;  %v7156_v34 = vld [vmem:[#allocation21_spill] sm:$0xff] }
 0x4bd   : > { %3394 = vst [vmem:[%s6505_s22 + $0x8] sm:$0xff] %v3362_v33  ;;  %3395 = vst [vmem:[%s6505_s22 + $0x10] sm:$0xff] %v3363_v27  ;;  %v3370_v63 = vmul.f32 %v3336_v13, %v7134_v50  ;;  %v3371_v49 = vmul.f32 %v3332_v40, %v7135_v25  ;;  %v3372_v46 = vmul.f32 %v3336_v13, %v7136_v11 }
 0x4be   : > { %v3373_v37 = vmul.f32 %v3332_v40, %v7137_v17  ;;  %3396 = vst [vmem:[%s6505_s22 + $0x18] sm:$0xff] %v3364_v16  ;;  %3397 = vst [vmem:[%s6505_s22 + $0x20] sm:$0xff] %v3365_v36  ;;  %v3374_v48 = vmul.f32 %v3336_v13, %v7138_v35  ;;  %v3375_v51 = vmul.f32 %v3332_v40, %v7139_v45  ;;  %v7154_v40 = vld [vmem:[#allocation19_spill] sm:$0xff] }
 0x4bf   : > { %v3376_v32 = vmul.f32 %v3336_v13, %v7140_v56  ;;  %v3377_v5 = vmul.f32 %v3340_v29, %v7141_v42  ;;  %3398 = vst [vmem:[%s6505_s22 + $0x28] sm:$0xff] %v3366_v4  ;;  %3399 = vst [vmem:[%s6505_s22 + $0x30] sm:$0xff] %v3367_v22  ;;  %v3378_v60 = vmul.f32 %v3344_v18, %v7142_v28 }
 0x4c0   : > { %3400 = vst [vmem:[%s6505_s22 + $0x38] sm:$0xff] %v3368_v52  ;;  %3401 = vst [vmem:[%s6505_s22 + $0x40] sm:$0xff] %v3369_v43  ;;  %v3379_v15 = vmul.f32 %v3340_v29, %v7143_v12  ;;  %v3380_v8 = vmul.f32 %v3344_v18, %v7144_v57  ;;  %v3381_v62 = vmul.f32 %v3340_v29, %v7145_v58 }
 0x4c1   : > { %3402 = vst [vmem:[%s6505_s22 + $0x48] sm:$0xff] %v3370_v63  ;;  %3403 = vst [vmem:[%s6505_s22 + $0x50] sm:$0xff] %v3371_v49  ;;  %v3382_v20 = vmul.f32 %v3344_v18, %v7146_v53  ;;  %v3383_v39 = vmul.f32 %v3340_v29, %v7147_v24  ;;  %v3384_v59 = vmul.f32 %v3344_v18, %v7148_v47  ;;  %v7155_v29 = vld [vmem:[#allocation20_spill] sm:$0xff] }
 0x4c2   : > { %3404 = vst [vmem:[%s6505_s22 + $0x58] sm:$0xff] %v3372_v46  ;;  %3405 = vst [vmem:[%s6505_s22 + $0x60] sm:$0xff] %v3373_v37  ;;  %v3385_v6 = vmul.f32 %v3348_v14, %v7149_v26  ;;  %v3386_v2 = vmul.f32 %v3352_v38, %v7150_v3  ;;  %v3387_v23 = vmul.f32 %v3348_v14, %v7151_v21 }
 0x4c3   : > { %3406 = vst [vmem:[%s6505_s22 + $0x68] sm:$0xff] %v3374_v48  ;;  %3407 = vst [vmem:[%s6505_s22 + $0x70] sm:$0xff] %v3375_v51  ;;  %v3388_v9 = vmul.f32 %v3352_v38, %v7152_v54  ;;  %v3389_v0 = vmul.f32 %v3348_v14, %v7153_v41  ;;  %v3390_v13 = vmul.f32 %v3352_v38, %v7154_v40 }
 0x4c4   : > { %3408 = vst [vmem:[%s6505_s22 + $0x78] sm:$0xff] %v3376_v32  ;;  %3409 = vst [vmem:[%s6505_s22 + $0x80] sm:$0xff] %v3377_v5  ;;  %v3391_v18 = vmul.f32 %v3348_v14, %v7155_v29  ;;  %v3392_v30 = vmul.f32 %v3352_v38, %v7156_v34 }
 0x4c5   : > { %3410 = vst [vmem:[%s6505_s22 + $0x88] sm:$0xff] %v3378_v60  ;;  %3411 = vst [vmem:[%s6505_s22 + $0x90] sm:$0xff] %v3379_v15 }
 0x4c6   : > { %3412 = vst [vmem:[%s6505_s22 + $0x98] sm:$0xff] %v3380_v8  ;;  %3413 = vst [vmem:[%s6505_s22 + $0xa0] sm:$0xff] %v3381_v62 }
 0x4c7   : > { %3414 = vst [vmem:[%s6505_s22 + $0xa8] sm:$0xff] %v3382_v20  ;;  %3415 = vst [vmem:[%s6505_s22 + $0xb0] sm:$0xff] %v3383_v39 }
 0x4c8   : > { %3416 = vst [vmem:[%s6505_s22 + $0xb8] sm:$0xff] %v3384_v59  ;;  %3417 = vst [vmem:[%s6505_s22 + $0xc0] sm:$0xff] %v3385_v6 }
 0x4c9   : > { %3418 = vst [vmem:[%s6505_s22 + $0xc8] sm:$0xff] %v3386_v2  ;;  %3419 = vst [vmem:[%s6505_s22 + $0xd0] sm:$0xff] %v3387_v23 }
 0x4ca   : > { %3420 = vst [vmem:[%s6505_s22 + $0xd8] sm:$0xff] %v3388_v9  ;;  %3421 = vst [vmem:[%s6505_s22 + $0xe0] sm:$0xff] %v3389_v0 }
 0x4cb   : > { %3422 = vst [vmem:[%s6505_s22 + $0xe8] sm:$0xff] %v3390_v13  ;;  %3423 = vst [vmem:[%s6505_s22 + $0xf0] sm:$0xff] %v3391_v18 }
 0x4cc   : > { %3424 = vst [vmem:[%s6505_s22 + $0xf8] sm:$0xff] %v3392_v30 }
 0x4cd   : > { %3787 = shalt.err (!%p3784_p12)
}
 0x4ce   : > { %s3788_s11 = scalar_lea.hbm %s6553_s30, 4096  ;;  %s3792_s6 = scalar_lea.hbm %s6617_s4, 8192 }
 0x4cf   : > { %p3789_p6 = scmp.ne.s32.totalorder %s6553_s30, %s3788_s11  ;;  %p3793_p13 = scmp.lt.s32.totalorder %s6553_s30, %s6617_s4 }
 0x4d0   : > { %p3794_p3 = scmp.lt.s32.totalorder %s3792_s6, %s3788_s11 }
 0x4d1   : > { %p3790_p7 = pnand %p3789_p6, %p7157_p0 }
 0x4d2   : > { %p3795_p8 = por %p3794_p3, %p3793_p13 }
 0x4d3   : > { %p3791_p11 = pneg %p3790_p7 }
 0x4d5   : > { %p3796_p2 = pnand %p3795_p8, %p3791_p11 }
 0x4d7   : > { %3799 = shalt.err (!%p3796_p2)
}
 0x4d8   : > { %s3899_s22 = smov 256  }
 0x4d9   : > { %3573 = dma.vmem_to_hbm [thread:$0]  (%p7157_p0), %s6562_s8, 4096, %s6553_s30, %s3426_s10, %s3899_s22, %s3899_s22, %s6937_s5  }
 0x4da PF: > { %s3455_s25 = sand.u32 1, %s3830_s15   ;;  %p7158_p4 = scmp.ne.s32.totalorder %s6817_s28, 0 }
 0x4db   : > { %p7159_p5 = scmp.ge.s32.totalorder %s3842_s18, 2  ;;  %s3456_s19 = scalar_lea.sflag [#allocation4], %s3455_s25 }
 0x4dd   : > { %p3587_p9 = pnand %p7159_p5, %p7158_p4 }
 0x4df   : > { %p3588_p10 = pneg %p3587_p9 }
 0x4e1   : > { %3825 = dma.done.wait (%p3588_p10), %s3456_s19, 4096  }
 0x4e2   : > { %3827 = vsyncadd (%p3588_p10), %s3456_s19, 4294963200  ;;  %p18_p1 = scmp.ge.s32.totalorder %s3950_s21, 4   ;;  %s7160_s15 = smov %s3834_s16 }
 0x4e3   : > { %s7161_s16 = smov %s3838_s17  ;;  %s7162_s17 = smov %s3962_s24 }
 0x4e4   : > { %s7163_s18 = smov %s3950_s21  ;;  %20 = sbr.rel (!%p18_p1) target bundleno = 8 (0x8), region = 186 }
 0x4e9   :  { %3461 = vsyncpa [#allocation3], 1 }
 0x4ea   :  { %3463 = vsyncpa [#allocation3 + $0x1], 1 }
 0x4eb   :  { %3464 = vsyncpa [#allocation6], 1 }
 0x4ec   :  { %3465 = vsyncpa [#allocation4], 1 }
 0x4ed   :  { %3467 = vsyncpa [#allocation4 + $0x1], 1 }

</bundles_post_ra>
